<compile_context>
chip_gen: v7x
topology: tpu7x:2x2x1
jax: 0.10.0
libtpu: 0.0.40
codegen_flags: <defaults>
</compile_context>

<pallas_src>
import math

import jax
import jax.numpy as jnp
from jax.experimental import pallas as pl
from jax.experimental.pallas import tpu as pltpu

# ----------------------- small synthetic config -----------------------
IMG = 16          # img_size
PATCH = 4         # patch_size
IN_CH = 3         # in_chans
OUT_CH = 8        # out_chans
OUT_PATCH = 1     # out_patch_size
EMBED = 32        # embed_dim
DEPTH = 2         # depth
HEADS = 4         # num_heads
MLP_RATIO = 4.0

HEAD_DIM = EMBED // HEADS
HIDDEN = int(EMBED * MLP_RATIO)            # 128
HP = IMG // PATCH                          # patches per side
NP = HP * HP                               # num_patches (16)
N_REAL = NP + 1                            # tokens incl. cls (17)
NPAD = 24                                  # padded token count (multiple of 8)
PATCH_DIM = IN_CH * PATCH * PATCH          # 48
PDIM_PAD = 128                             # padded patch dim (lane-dense K)
OUT_DIM = OUT_CH * OUT_PATCH * OUT_PATCH   # 8
SCALE = HEAD_DIM ** (-0.5)
LN_EPS = 1e-6

assert NPAD % 8 == 0 and NPAD >= N_REAL and (NPAD - NP) % 8 == 0
assert NP * OUT_DIM == 128                 # lane-dense output row per batch elem


# ----------------------- in-kernel helpers -----------------------
def _layernorm(x, w, b):
    mu = jnp.mean(x, axis=-1, keepdims=True)
    var = jnp.mean((x - mu) ** 2, axis=-1, keepdims=True)
    return (x - mu) * jax.lax.rsqrt(var + LN_EPS) * w + b


def _gelu_exact(x):
    # torch.nn.GELU() default = exact erf formulation
    return 0.5 * x * (1.0 + jax.lax.erf(x * (1.0 / math.sqrt(2.0))))


def _softmax_lastdim(s):
    m = jnp.max(s, axis=-1, keepdims=True)
    e = jnp.exp(s - m)
    return e * pl.reciprocal(jnp.sum(e, axis=-1, keepdims=True), approx=True)


# ----------------------- fused Pallas kernel -----------------------
def _build_fused_kernel(bblk):
    R = bblk * NPAD     # folded rows for all row-wise matmuls
    RP = bblk * NP      # folded rows for the task head

    def kernel(patches_ref, pe_w_ref, tok_bias_ref, w_a_ref, w_fc2_ref,
               vec_ref, hd_w_ref, hd_v_ref, out_ref):
        f32 = jnp.float32

        # ---- patch embedding (conv as matmul).  Tokens are already padded to
        # NPAD host-side (pad rows are all-zero, so emb is zero there); the
        # conv bias / positional embeddings / cls token arrive as one
        # pre-tiled (R, EMBED) additive bias -> no in-kernel concatenate. ----
        emb = jnp.dot(patches_ref[...].reshape(R, PDIM_PAD), pe_w_ref[...],
                      preferred_element_type=f32)
        x = emb + tok_bias_ref[...]                                # (R, EMBED)

        # attention column mask: padded tokens are never attended to
        col = jax.lax.broadcasted_iota(jnp.int32, (NPAD, NPAD), 1)
        neg_mask = jnp.where(col >= N_REAL, f32(-1e30), f32(0.0))

        for d in range(DEPTH):                    # unrolled (DEPTH = 2)
            wa = w_a_ref[d]                       # (EMBED, 256): [qkv|proj|fc1]
            wqkv = wa[:, 0:3 * EMBED]
            wproj = wa[:, 3 * EMBED:4 * EMBED]
            wfc1 = wa[:, 4 * EMBED:4 * EMBED + HIDDEN]
            wfc2 = w_fc2_ref[d]                   # (HIDDEN, EMBED)
            vec = vec_ref[d]                      # (8, 128) packed vectors
            ln1w = vec[0:1, 0:EMBED];             ln1b = vec[0:1, EMBED:2 * EMBED]
            ln2w = vec[0:1, 2 * EMBED:3 * EMBED]; ln2b = vec[0:1, 3 * EMBED:4 * EMBED]
            bqkv = vec[1:2, 0:3 * EMBED];         bproj = vec[1:2, 3 * EMBED:4 * EMBED]
            bfc1 = vec[2:3, 0:HIDDEN];            bfc2 = vec[3:4, 0:EMBED]

            # ---------- attention branch ----------
            h = _layernorm(x, ln1w, ln1b)
            qkv = jnp.dot(h, wqkv, preferred_element_type=f32) + bqkv   # (R, 96)

            # Fold heads into the leading batch axis (leading-dim concatenate
            # only; no minor-dim relayout), then ONE batched score einsum,
            # ONE softmax and ONE context einsum for all heads.
            def _heads(col0):
                return jnp.concatenate(
                    [qkv[:, col0 + i * HEAD_DIM: col0 + (i + 1) * HEAD_DIM]
                     .reshape(bblk, NPAD, HEAD_DIM) for i in range(HEADS)],
                    axis=0)                                   # (HEADS*bblk, NPAD, HD)
            qh = _heads(0)
            kh = _heads(EMBED)
            vh = _heads(2 * EMBED)

            sc = jnp.einsum('bqd,bkd->bqk', qh, kh,
                            preferred_element_type=f32) * SCALE + neg_mask
            pr = _softmax_lastdim(sc)
            ctx = jnp.einsum('bqk,bkd->bqd', pr, vh,
                             preferred_element_type=f32)      # (HEADS*bblk, NPAD, HD)

            # Per-head output-projection contributions folded via static row
            # slices of wproj (avoids a minor-dim concatenate relayout).
            att = bproj
            for i in range(HEADS):
                ctx2d = ctx[i * bblk:(i + 1) * bblk].reshape(R, HEAD_DIM)
                att = att + jnp.dot(ctx2d, wproj[i * HEAD_DIM:(i + 1) * HEAD_DIM, :],
                                    preferred_element_type=f32)
            x = x + att

            # ---------- MLP branch ----------
            h = _layernorm(x, ln2w, ln2b)
            h = jnp.dot(h, wfc1, preferred_element_type=f32) + bfc1
            h = _gelu_exact(h)
            h = jnp.dot(h, wfc2, preferred_element_type=f32) + bfc2
            x = x + h

        # ---- drop cls/pad tokens, fc_norm + task head ----
        t = x.reshape(bblk, NPAD, EMBED)[:, :NP, :].reshape(RP, EMBED)
        hdw = hd_w_ref[...]                       # (EMBED, 128): [w1 | w2 | pad]
        hdv = hd_v_ref[...]                       # (8, 128): row 0 packed vectors
        h = _layernorm(t, hdv[0:1, 0:EMBED], hdv[0:1, EMBED:2 * EMBED])
        h = jnp.dot(h, hdw[:, 0:EMBED], preferred_element_type=f32) \
            + hdv[0:1, 2 * EMBED:3 * EMBED]
        h = jnp.tanh(h)
        y = jnp.dot(h, hdw[:, EMBED:EMBED + OUT_DIM], preferred_element_type=f32) \
            + hdv[0:1, 3 * EMBED:3 * EMBED + OUT_DIM]          # (RP, OUT_DIM)

        # ---- lane-dense output: pack (NP, OUT_DIM) into 128 lanes per batch
        # element with static lane-offset sub-stores; HBM writeback is a dense
        # 128-lane block instead of masked 8-lane stores. ----
        y3 = y.reshape(bblk, NP, OUT_DIM)
        for n in range(NP):
            out_ref[:, n * OUT_DIM:(n + 1) * OUT_DIM] = y3[:, n, :]

    return kernel


def _const_spec(a):
    zeros = (0,) * a.ndim
    return pl.BlockSpec(a.shape, lambda i, _z=zeros: _z)


def _pick_bblk(B):
    # Single grid step unless the batch is large enough that every step keeps
    # >=128 matmul rows (gate the v7x megacore split on per-step work size);
    # cap rows per step at ~512 so intermediates stay a few vregs deep.
    bblk = B
    for cand in range(B, 0, -1):
        if B % cand == 0 and cand * NPAD <= 512:
            bblk = cand
            break
    if bblk < B and bblk * NPAD < 128:
        bblk = B
    return bblk


def fused_forward_pallas(patches, packed, B):
    bblk = _pick_bblk(B)
    grid = (B // bblk,)

    # lane-dense patch input: pad tokens NP->NPAD and patch dim 48->128
    patches_pad = jnp.pad(
        patches, ((0, 0), (0, NPAD - NP), (0, PDIM_PAD - PATCH_DIM)))
    # per-token additive bias pre-tiled to the folded row count of one block
    tok_bias_r = jnp.tile(packed["tok_bias"], (bblk, 1))       # (bblk*NPAD, EMBED)

    consts = [packed["pe_w"], tok_bias_r, packed["w_a"], packed["w_fc2"],
              packed["vec"], packed["hd_w"], packed["hd_v"]]

    return pl.pallas_call(
        _build_fused_kernel(bblk),
        out_shape=jax.ShapeDtypeStruct((B, NP * OUT_DIM), jnp.float32),
        grid=grid,
        in_specs=[pl.BlockSpec((bblk, NPAD, PDIM_PAD), lambda i: (i, 0, 0))]
                 + [_const_spec(a) for a in consts],
        out_specs=pl.BlockSpec((bblk, NP * OUT_DIM), lambda i: (i, 0)),
        compiler_params=pltpu.CompilerParams(dimension_semantics=("parallel",)),
    )(patches_pad, *consts)


# ----------------------- host-side weight packing -----------------------
def pack_params(p):
    """Pack the many tiny params into a few lane-dense slabs (one DMA each)."""
    f32 = jnp.float32

    # patch-embed weight, contraction dim padded 48 -> 128
    pe_w = jnp.zeros((PDIM_PAD, EMBED), f32).at[:PATCH_DIM].set(p["pe_w"])

    # per-token additive bias: patch rows = conv bias + patch pos-embed,
    # row NP = cls_token + cls pos-embed, remaining pad rows = 0.
    tok_bias = jnp.zeros((NPAD, EMBED), f32)
    tok_bias = tok_bias.at[:NP].set(p["pe_b"].reshape(1, EMBED)
                                    + p["pos_embed"][0, 1:, :])
    tok_bias = tok_bias.at[NP].set(p["cls_token"][0, 0] + p["pos_embed"][0, 0])

    # per-layer matmul weights sharing the EMBED row dim: [qkv | proj | fc1]
    w_a = jnp.concatenate([p["w_qkv"], p["w_proj"], p["w_fc1"]], axis=-1)  # (D,32,256)
    w_fc2 = p["w_fc2"]                                                     # (D,128,32)

    # per-layer vector params packed into one (D, 8, 128) slab
    vec = jnp.zeros((DEPTH, 8, 128), f32)
    vec = vec.at[:, 0:1].set(jnp.concatenate(
        [p["ln1_w"], p["ln1_b"], p["ln2_w"], p["ln2_b"]], axis=-1))
    vec = vec.at[:, 1:2].set(jnp.concatenate([p["b_qkv"], p["b_proj"]], axis=-1))
    vec = vec.at[:, 2:3].set(p["b_fc1"])
    vec = vec.at[:, 3:4].set(jnp.pad(p["b_fc2"], ((0, 0), (0, 0), (0, 128 - EMBED))))

    # fc_norm + task head: one weight slab + one vector slab
    hd_w = jnp.zeros((EMBED, 128), f32)
    hd_w = hd_w.at[:, :EMBED].set(p["hd_w1"])
    hd_w = hd_w.at[:, EMBED:EMBED + OUT_DIM].set(p["hd_w2"])
    hd_v = jnp.zeros((8, 128), f32)
    hd_v = hd_v.at[0, 0:EMBED].set(p["hd_ln_w"].reshape(-1))
    hd_v = hd_v.at[0, EMBED:2 * EMBED].set(p["hd_ln_b"].reshape(-1))
    hd_v = hd_v.at[0, 2 * EMBED:3 * EMBED].set(p["hd_b1"].reshape(-1))
    hd_v = hd_v.at[0, 3 * EMBED:3 * EMBED + OUT_DIM].set(p["hd_b2"].reshape(-1))

    return dict(pe_w=pe_w, tok_bias=tok_bias, w_a=w_a, w_fc2=w_fc2,
                vec=vec, hd_w=hd_w, hd_v=hd_v)


# ----------------------- JAX glue (reshapes / param setup) -----------------------
def extract_patches(x):
    # (B, C, H, W) -> (B, NP, C*ps*ps); flatten order (C, kh, kw) and row-major
    # (HP, WP) patch order, matching Conv2d(kernel=ps, stride=ps) + flatten(2).
    B, C, H, W = x.shape
    x = x.reshape(B, C, HP, PATCH, HP, PATCH)
    x = x.transpose(0, 2, 4, 1, 3, 5)          # (B, HP, WP, C, ps, ps)
    return x.reshape(B, NP, C * PATCH * PATCH)


def init_params(key):
    ks = iter(jax.random.split(key, 32))

    def nrm(shape, std=0.02):
        return jax.random.normal(next(ks), shape, jnp.float32) * std

    def stack(fn):
        return jnp.stack([fn(i) for i in range(DEPTH)], axis=0)

    return dict(
        # Conv2d weight (E, C, ps, ps) flattened & transposed -> (C*ps*ps, E)
        pe_w=nrm((PATCH_DIM, EMBED)),
        pe_b=nrm((1, EMBED)),
        cls_token=nrm((1, 1, EMBED)),
        pos_embed=nrm((1, N_REAL, EMBED)),
        # per-block weights stacked along a leading layer axis
        ln1_w=jnp.ones((DEPTH, 1, EMBED), jnp.float32),
        ln1_b=jnp.zeros((DEPTH, 1, EMBED), jnp.float32),
        w_qkv=stack(lambda i: nrm((EMBED, 3 * EMBED))),
        b_qkv=jnp.zeros((DEPTH, 1, 3 * EMBED), jnp.float32),  # q_bias / 0 / v_bias all zero-init
        w_proj=stack(lambda i: nrm((EMBED, EMBED)) / (2.0 * (i + 1)) ** 0.5),
        b_proj=jnp.zeros((DEPTH, 1, EMBED), jnp.float32),
        ln2_w=jnp.ones((DEPTH, 1, EMBED), jnp.float32),
        ln2_b=jnp.zeros((DEPTH, 1, EMBED), jnp.float32),
        w_fc1=stack(lambda i: nrm((EMBED, HIDDEN))),
        b_fc1=jnp.zeros((DEPTH, 1, HIDDEN), jnp.float32),
        w_fc2=stack(lambda i: nrm((HIDDEN, EMBED)) / (2.0 * (i + 1)) ** 0.5),
        b_fc2=jnp.zeros((DEPTH, 1, EMBED), jnp.float32),
        # fc_norm + task head
        hd_ln_w=jnp.ones((1, EMBED), jnp.float32),
        hd_ln_b=jnp.zeros((1, EMBED), jnp.float32),
        hd_w1=nrm((EMBED, EMBED)),
        hd_b1=jnp.zeros((1, EMBED), jnp.float32),
        hd_w2=nrm((EMBED, OUT_DIM)),
        hd_b2=jnp.zeros((1, OUT_DIM), jnp.float32),
    )


def vqkd_encoder_forward(x, params, memo=None):
    """x: (B, in_chans, H, W) NCHW float32 -> (B, out_chans, H/ps, W/ps), memo."""
    B, _, H, W = x.shape
    assert H % PATCH == 0 and W % PATCH == 0 and H == IMG and W == IMG
    # TODO(synk): interpolate_pos_encoding (bicubic resize) path not implemented;
    # only the matching-resolution branch is supported.

    patches = extract_patches(x)                 # (B, NP, 48)
    packed = pack_params(params)                 # a handful of lane-dense slabs

    out_dense = fused_forward_pallas(patches, packed, B)      # (B, NP*OUT_DIM)

    # undo the lane-dense packing, then einops 'b (h w) c -> b c h w'
    out = out_dense.reshape(B, NP, OUT_DIM)
    out = out.transpose(0, 2, 1).reshape(B, OUT_DIM, HP, HP)
    return out, memo


if __name__ == "__main__":
    key = jax.random.PRNGKey(0)
    k_x, k_p = jax.random.split(key)
    x = jax.random.normal(k_x, (2, IN_CH, IMG, IMG), jnp.float32)
    params = init_params(k_p)

    out, memo = vqkd_encoder_forward(x, params, memo={})
    out = jax.block_until_ready(out)

    assert out.shape == (2, OUT_CH, HP, HP), out.shape
    assert out.dtype == jnp.float32
    assert bool(jnp.all(jnp.isfinite(out)))
    print("KERNEL_OK")
</pallas_src>

<mosaic_0001>
module attributes {stable_mosaic.version = 11 : i64} {
  func.func @kernel(%arg0: i32, %arg1: memref<2x24x128xf32, #tpu.memory_space<vmem>>, %arg2: memref<128x32xf32, #tpu.memory_space<vmem>>, %arg3: memref<48x32xf32, #tpu.memory_space<vmem>>, %arg4: memref<2x32x256xf32, #tpu.memory_space<vmem>>, %arg5: memref<2x128x32xf32, #tpu.memory_space<vmem>>, %arg6: memref<2x8x128xf32, #tpu.memory_space<vmem>>, %arg7: memref<32x128xf32, #tpu.memory_space<vmem>>, %arg8: memref<8x128xf32, #tpu.memory_space<vmem>>, %arg9: memref<2x128xf32, #tpu.memory_space<vmem>>) attributes {dimension_semantics = [#tpu.dimension_semantics<parallel>], iteration_bounds = array<i64: 1>, scalar_prefetch = 0 : i64, scratch_operands = 0 : i64, tpu.core_type = #tpu.core_type<tc>, window_params = [{transform_indices = @transform_0, window_bounds = array<i64: 2, 24, 128>}, {pipeline_mode = #tpu.pipeline_mode<synchronous>, transform_indices = @transform_1, window_bounds = array<i64: 128, 32>}, {pipeline_mode = #tpu.pipeline_mode<synchronous>, transform_indices = @transform_2, window_bounds = array<i64: 48, 32>}, {pipeline_mode = #tpu.pipeline_mode<synchronous>, transform_indices = @transform_3, window_bounds = array<i64: 2, 32, 256>}, {pipeline_mode = #tpu.pipeline_mode<synchronous>, transform_indices = @transform_4, window_bounds = array<i64: 2, 128, 32>}, {pipeline_mode = #tpu.pipeline_mode<synchronous>, transform_indices = @transform_5, window_bounds = array<i64: 2, 8, 128>}, {pipeline_mode = #tpu.pipeline_mode<synchronous>, transform_indices = @transform_6, window_bounds = array<i64: 32, 128>}, {pipeline_mode = #tpu.pipeline_mode<synchronous>, transform_indices = @transform_7, window_bounds = array<i64: 8, 128>}, {transform_indices = @transform_8, window_bounds = array<i64: 2, 128>}]} {
    %c0 = arith.constant 0 : index
    %c0_0 = arith.constant 0 : index
    %c0_1 = arith.constant 0 : index
    %0 = vector.load %arg1[%c0, %c0_0, %c0_1] : memref<2x24x128xf32, #tpu.memory_space<vmem>>, vector<2x24x128xf32>
    %1 = vector.shape_cast %0 : vector<2x24x128xf32> to vector<48x128xf32>
    %c0_2 = arith.constant 0 : index
    %c0_3 = arith.constant 0 : index
    %2 = vector.load %arg2[%c0_2, %c0_3] : memref<128x32xf32, #tpu.memory_space<vmem>>, vector<128x32xf32>
    %cst = arith.constant dense<0.000000e+00> : vector<48x32xf32>
    %3 = tpu.matmul %1, %2, %cst {dimension_numbers = #tpu.dot_dimension_numbers<[1], [0], [0], [1], [0, 0, 1, 1], [], []>} : vector<48x128xf32>, vector<128x32xf32>, vector<48x32xf32> -> vector<48x32xf32>
    %c0_4 = arith.constant 0 : index
    %c0_5 = arith.constant 0 : index
    %4 = vector.load %arg3[%c0_4, %c0_5] : memref<48x32xf32, #tpu.memory_space<vmem>>, vector<48x32xf32>
    %5 = arith.addf %3, %4 : vector<48x32xf32>
    %6 = tpu.iota {dimensions = array<i32: 1>} : vector<24x24xi32>
    %c17_i32 = arith.constant 17 : i32
    %7 = vector.broadcast %c17_i32 : i32 to vector<24x24xi32>
    %8 = arith.cmpi sge, %6, %7 : vector<24x24xi32>
    %cst_6 = arith.constant -1.000000e+30 : f32
    %cst_7 = arith.constant 0.000000e+00 : f32
    %9 = vector.broadcast %cst_6 : f32 to vector<24x24xf32>
    %10 = vector.broadcast %cst_7 : f32 to vector<24x24xf32>
    %11 = arith.select %8, %9, %10 : vector<24x24xi1>, vector<24x24xf32>
    %c0_8 = arith.constant 0 : index
    %c0_9 = arith.constant 0 : index
    %c0_10 = arith.constant 0 : index
    %12 = vector.load %arg4[%c0_8, %c0_9, %c0_10] : memref<2x32x256xf32, #tpu.memory_space<vmem>>, vector<1x32x256xf32>
    %13 = vector.shape_cast %12 : vector<1x32x256xf32> to vector<32x256xf32>
    %14 = vector.extract_strided_slice %13 {offsets = [0, 0], sizes = [32, 96], strides = [1, 1]} : vector<32x256xf32> to vector<32x96xf32>
    %15 = vector.extract_strided_slice %13 {offsets = [0, 96], sizes = [32, 32], strides = [1, 1]} : vector<32x256xf32> to vector<32x32xf32>
    %16 = vector.extract_strided_slice %13 {offsets = [0, 128], sizes = [32, 128], strides = [1, 1]} : vector<32x256xf32> to vector<32x128xf32>
    %c0_11 = arith.constant 0 : index
    %c0_12 = arith.constant 0 : index
    %c0_13 = arith.constant 0 : index
    %17 = vector.load %arg5[%c0_11, %c0_12, %c0_13] : memref<2x128x32xf32, #tpu.memory_space<vmem>>, vector<1x128x32xf32>
    %18 = vector.shape_cast %17 : vector<1x128x32xf32> to vector<128x32xf32>
    %c0_14 = arith.constant 0 : index
    %c0_15 = arith.constant 0 : index
    %c0_16 = arith.constant 0 : index
    %19 = vector.load %arg6[%c0_14, %c0_15, %c0_16] : memref<2x8x128xf32, #tpu.memory_space<vmem>>, vector<1x8x128xf32>
    %20 = vector.shape_cast %19 : vector<1x8x128xf32> to vector<8x128xf32>
    %21 = vector.extract_strided_slice %20 {offsets = [0, 0], sizes = [1, 32], strides = [1, 1]} : vector<8x128xf32> to vector<1x32xf32>
    %22 = vector.extract_strided_slice %20 {offsets = [0, 32], sizes = [1, 32], strides = [1, 1]} : vector<8x128xf32> to vector<1x32xf32>
    %23 = vector.extract_strided_slice %20 {offsets = [0, 64], sizes = [1, 32], strides = [1, 1]} : vector<8x128xf32> to vector<1x32xf32>
    %24 = vector.extract_strided_slice %20 {offsets = [0, 96], sizes = [1, 32], strides = [1, 1]} : vector<8x128xf32> to vector<1x32xf32>
    %25 = vector.extract_strided_slice %20 {offsets = [1, 0], sizes = [1, 96], strides = [1, 1]} : vector<8x128xf32> to vector<1x96xf32>
    %26 = vector.extract_strided_slice %20 {offsets = [1, 96], sizes = [1, 32], strides = [1, 1]} : vector<8x128xf32> to vector<1x32xf32>
    %27 = vector.extract_strided_slice %20 {offsets = [2, 0], sizes = [1, 128], strides = [1, 1]} : vector<8x128xf32> to vector<1x128xf32>
    %28 = vector.extract_strided_slice %20 {offsets = [3, 0], sizes = [1, 32], strides = [1, 1]} : vector<8x128xf32> to vector<1x32xf32>
    %cst_17 = arith.constant dense<0.000000e+00> : vector<48xf32>
    %29 = vector.multi_reduction <add>, %5, %cst_17 [1] : vector<48x32xf32> to vector<48xf32>
    %30 = vector.shape_cast %29 : vector<48xf32> to vector<48x1xf32>
    %cst_18 = arith.constant 3.200000e+01 : f32
    %31 = vector.broadcast %cst_18 : f32 to vector<48x1xf32>
    %32 = arith.divf %30, %31 : vector<48x1xf32>
    %33 = vector.broadcast %32 : vector<48x1xf32> to vector<48x32xf32>
    %34 = arith.subf %5, %33 : vector<48x32xf32>
    %35 = arith.mulf %34, %34 : vector<48x32xf32>
    %cst_19 = arith.constant dense<0.000000e+00> : vector<48xf32>
    %36 = vector.multi_reduction <add>, %35, %cst_19 [1] : vector<48x32xf32> to vector<48xf32>
    %37 = vector.shape_cast %36 : vector<48xf32> to vector<48x1xf32>
    %cst_20 = arith.constant 3.200000e+01 : f32
    %38 = vector.broadcast %cst_20 : f32 to vector<48x1xf32>
    %39 = arith.divf %37, %38 : vector<48x1xf32>
    %40 = vector.broadcast %32 : vector<48x1xf32> to vector<48x32xf32>
    %41 = arith.subf %5, %40 : vector<48x32xf32>
    %cst_21 = arith.constant 9.99999997E-7 : f32
    %42 = vector.broadcast %cst_21 : f32 to vector<48x1xf32>
    %43 = arith.addf %39, %42 : vector<48x1xf32>
    %44 = math.rsqrt %43 : vector<48x1xf32>
    %45 = vector.broadcast %44 : vector<48x1xf32> to vector<48x32xf32>
    %46 = arith.mulf %41, %45 : vector<48x32xf32>
    %47 = vector.broadcast %21 : vector<1x32xf32> to vector<48x32xf32>
    %48 = arith.mulf %46, %47 : vector<48x32xf32>
    %49 = vector.broadcast %22 : vector<1x32xf32> to vector<48x32xf32>
    %50 = arith.addf %48, %49 : vector<48x32xf32>
    %cst_22 = arith.constant dense<0.000000e+00> : vector<48x96xf32>
    %51 = tpu.matmul %50, %14, %cst_22 {dimension_numbers = #tpu.dot_dimension_numbers<[1], [0], [0], [1], [0, 0, 1, 1], [], []>} : vector<48x32xf32>, vector<32x96xf32>, vector<48x96xf32> -> vector<48x96xf32>
    %52 = vector.broadcast %25 : vector<1x96xf32> to vector<48x96xf32>
    %53 = arith.addf %51, %52 : vector<48x96xf32>
    %54 = vector.extract_strided_slice %53 {offsets = [0, 0], sizes = [48, 8], strides = [1, 1]} : vector<48x96xf32> to vector<48x8xf32>
    %55 = vector.shape_cast %54 : vector<48x8xf32> to vector<2x24x8xf32>
    %56 = vector.extract_strided_slice %53 {offsets = [0, 8], sizes = [48, 8], strides = [1, 1]} : vector<48x96xf32> to vector<48x8xf32>
    %57 = vector.shape_cast %56 : vector<48x8xf32> to vector<2x24x8xf32>
    %58 = vector.extract_strided_slice %53 {offsets = [0, 16], sizes = [48, 8], strides = [1, 1]} : vector<48x96xf32> to vector<48x8xf32>
    %59 = vector.shape_cast %58 : vector<48x8xf32> to vector<2x24x8xf32>
    %60 = vector.extract_strided_slice %53 {offsets = [0, 24], sizes = [48, 8], strides = [1, 1]} : vector<48x96xf32> to vector<48x8xf32>
    %61 = vector.shape_cast %60 : vector<48x8xf32> to vector<2x24x8xf32>
    %62 = tpu.concatenate %55, %57, %59, %61 in 0 : vector<2x24x8xf32>, vector<2x24x8xf32>, vector<2x24x8xf32>, vector<2x24x8xf32> -> vector<8x24x8xf32>
    %63 = vector.extract_strided_slice %53 {offsets = [0, 32], sizes = [48, 8], strides = [1, 1]} : vector<48x96xf32> to vector<48x8xf32>
    %64 = vector.shape_cast %63 : vector<48x8xf32> to vector<2x24x8xf32>
    %65 = vector.extract_strided_slice %53 {offsets = [0, 40], sizes = [48, 8], strides = [1, 1]} : vector<48x96xf32> to vector<48x8xf32>
    %66 = vector.shape_cast %65 : vector<48x8xf32> to vector<2x24x8xf32>
    %67 = vector.extract_strided_slice %53 {offsets = [0, 48], sizes = [48, 8], strides = [1, 1]} : vector<48x96xf32> to vector<48x8xf32>
    %68 = vector.shape_cast %67 : vector<48x8xf32> to vector<2x24x8xf32>
    %69 = vector.extract_strided_slice %53 {offsets = [0, 56], sizes = [48, 8], strides = [1, 1]} : vector<48x96xf32> to vector<48x8xf32>
    %70 = vector.shape_cast %69 : vector<48x8xf32> to vector<2x24x8xf32>
    %71 = tpu.concatenate %64, %66, %68, %70 in 0 : vector<2x24x8xf32>, vector<2x24x8xf32>, vector<2x24x8xf32>, vector<2x24x8xf32> -> vector<8x24x8xf32>
    %72 = vector.extract_strided_slice %53 {offsets = [0, 64], sizes = [48, 8], strides = [1, 1]} : vector<48x96xf32> to vector<48x8xf32>
    %73 = vector.shape_cast %72 : vector<48x8xf32> to vector<2x24x8xf32>
    %74 = vector.extract_strided_slice %53 {offsets = [0, 72], sizes = [48, 8], strides = [1, 1]} : vector<48x96xf32> to vector<48x8xf32>
    %75 = vector.shape_cast %74 : vector<48x8xf32> to vector<2x24x8xf32>
    %76 = vector.extract_strided_slice %53 {offsets = [0, 80], sizes = [48, 8], strides = [1, 1]} : vector<48x96xf32> to vector<48x8xf32>
    %77 = vector.shape_cast %76 : vector<48x8xf32> to vector<2x24x8xf32>
    %78 = vector.extract_strided_slice %53 {offsets = [0, 88], sizes = [48, 8], strides = [1, 1]} : vector<48x96xf32> to vector<48x8xf32>
    %79 = vector.shape_cast %78 : vector<48x8xf32> to vector<2x24x8xf32>
    %80 = tpu.concatenate %73, %75, %77, %79 in 0 : vector<2x24x8xf32>, vector<2x24x8xf32>, vector<2x24x8xf32>, vector<2x24x8xf32> -> vector<8x24x8xf32>
    "tpu.trace_start"() <{level = 10 : i32, message = "bqd,bkd->bqk"}> : () -> ()
    %cst_23 = arith.constant dense<0.000000e+00> : vector<8x24x24xf32>
    %81 = tpu.matmul %62, %71, %cst_23 {dimension_numbers = #tpu.dot_dimension_numbers<[2], [2], [1], [1], [0, 0, 0, 1, 1, 1], [0], [0]>} : vector<8x24x8xf32>, vector<8x24x8xf32>, vector<8x24x24xf32> -> vector<8x24x24xf32>
    "tpu.trace_stop"() : () -> ()
    %cst_24 = arith.constant 0.353553385 : f32
    %82 = vector.broadcast %cst_24 : f32 to vector<8x24x24xf32>
    %83 = arith.mulf %81, %82 : vector<8x24x24xf32>
    %84 = vector.shape_cast %11 : vector<24x24xf32> to vector<1x24x24xf32>
    %85 = vector.broadcast %84 : vector<1x24x24xf32> to vector<8x24x24xf32>
    %86 = arith.addf %83, %85 : vector<8x24x24xf32>
    %cst_25 = arith.constant dense<0xFF800000> : vector<8x24xf32>
    %87 = vector.multi_reduction <maximumf>, %86, %cst_25 [2] : vector<8x24x24xf32> to vector<8x24xf32>
    %88 = vector.shape_cast %87 : vector<8x24xf32> to vector<8x24x1xf32>
    %89 = vector.broadcast %88 : vector<8x24x1xf32> to vector<8x24x24xf32>
    %90 = arith.subf %86, %89 : vector<8x24x24xf32>
    %91 = math.exp %90 : vector<8x24x24xf32>
    %cst_26 = arith.constant dense<0.000000e+00> : vector<8x24xf32>
    %92 = vector.multi_reduction <add>, %91, %cst_26 [2] : vector<8x24x24xf32> to vector<8x24xf32>
    %93 = vector.shape_cast %92 : vector<8x24xf32> to vector<8x24x1xf32>
    %94 = tpu.reciprocal %93 {approx = true} : vector<8x24x1xf32> -> vector<8x24x1xf32>
    %95 = vector.broadcast %94 : vector<8x24x1xf32> to vector<8x24x24xf32>
    %96 = arith.mulf %91, %95 : vector<8x24x24xf32>
    "tpu.trace_start"() <{level = 10 : i32, message = "bqk,bkd->bqd"}> : () -> ()
    %cst_27 = arith.constant dense<0.000000e+00> : vector<8x24x8xf32>
    %97 = tpu.matmul %96, %80, %cst_27 {dimension_numbers = #tpu.dot_dimension_numbers<[2], [1], [1], [2], [0, 0, 0, 1, 1, 2], [0], [0]>} : vector<8x24x24xf32>, vector<8x24x8xf32>, vector<8x24x8xf32> -> vector<8x24x8xf32>
    "tpu.trace_stop"() : () -> ()
    %98 = vector.extract_strided_slice %97 {offsets = [0, 0, 0], sizes = [2, 24, 8], strides = [1, 1, 1]} : vector<8x24x8xf32> to vector<2x24x8xf32>
    %99 = vector.shape_cast %98 : vector<2x24x8xf32> to vector<48x8xf32>
    %100 = vector.extract_strided_slice %15 {offsets = [0, 0], sizes = [8, 32], strides = [1, 1]} : vector<32x32xf32> to vector<8x32xf32>
    %cst_28 = arith.constant dense<0.000000e+00> : vector<48x32xf32>
    %101 = tpu.matmul %99, %100, %cst_28 {dimension_numbers = #tpu.dot_dimension_numbers<[1], [0], [0], [1], [0, 0, 1, 1], [], []>} : vector<48x8xf32>, vector<8x32xf32>, vector<48x32xf32> -> vector<48x32xf32>
    %102 = vector.broadcast %26 : vector<1x32xf32> to vector<48x32xf32>
    %103 = arith.addf %102, %101 : vector<48x32xf32>
    %104 = vector.extract_strided_slice %97 {offsets = [2, 0, 0], sizes = [2, 24, 8], strides = [1, 1, 1]} : vector<8x24x8xf32> to vector<2x24x8xf32>
    %105 = vector.shape_cast %104 : vector<2x24x8xf32> to vector<48x8xf32>
    %106 = vector.extract_strided_slice %15 {offsets = [8, 0], sizes = [8, 32], strides = [1, 1]} : vector<32x32xf32> to vector<8x32xf32>
    %cst_29 = arith.constant dense<0.000000e+00> : vector<48x32xf32>
    %107 = tpu.matmul %105, %106, %cst_29 {dimension_numbers = #tpu.dot_dimension_numbers<[1], [0], [0], [1], [0, 0, 1, 1], [], []>} : vector<48x8xf32>, vector<8x32xf32>, vector<48x32xf32> -> vector<48x32xf32>
    %108 = arith.addf %103, %107 : vector<48x32xf32>
    %109 = vector.extract_strided_slice %97 {offsets = [4, 0, 0], sizes = [2, 24, 8], strides = [1, 1, 1]} : vector<8x24x8xf32> to vector<2x24x8xf32>
    %110 = vector.shape_cast %109 : vector<2x24x8xf32> to vector<48x8xf32>
    %111 = vector.extract_strided_slice %15 {offsets = [16, 0], sizes = [8, 32], strides = [1, 1]} : vector<32x32xf32> to vector<8x32xf32>
    %cst_30 = arith.constant dense<0.000000e+00> : vector<48x32xf32>
    %112 = tpu.matmul %110, %111, %cst_30 {dimension_numbers = #tpu.dot_dimension_numbers<[1], [0], [0], [1], [0, 0, 1, 1], [], []>} : vector<48x8xf32>, vector<8x32xf32>, vector<48x32xf32> -> vector<48x32xf32>
    %113 = arith.addf %108, %112 : vector<48x32xf32>
    %114 = vector.extract_strided_slice %97 {offsets = [6, 0, 0], sizes = [2, 24, 8], strides = [1, 1, 1]} : vector<8x24x8xf32> to vector<2x24x8xf32>
    %115 = vector.shape_cast %114 : vector<2x24x8xf32> to vector<48x8xf32>
    %116 = vector.extract_strided_slice %15 {offsets = [24, 0], sizes = [8, 32], strides = [1, 1]} : vector<32x32xf32> to vector<8x32xf32>
    %cst_31 = arith.constant dense<0.000000e+00> : vector<48x32xf32>
    %117 = tpu.matmul %115, %116, %cst_31 {dimension_numbers = #tpu.dot_dimension_numbers<[1], [0], [0], [1], [0, 0, 1, 1], [], []>} : vector<48x8xf32>, vector<8x32xf32>, vector<48x32xf32> -> vector<48x32xf32>
    %118 = arith.addf %113, %117 : vector<48x32xf32>
    %119 = arith.addf %5, %118 : vector<48x32xf32>
    %cst_32 = arith.constant dense<0.000000e+00> : vector<48xf32>
    %120 = vector.multi_reduction <add>, %119, %cst_32 [1] : vector<48x32xf32> to vector<48xf32>
    %121 = vector.shape_cast %120 : vector<48xf32> to vector<48x1xf32>
    %cst_33 = arith.constant 3.200000e+01 : f32
    %122 = vector.broadcast %cst_33 : f32 to vector<48x1xf32>
    %123 = arith.divf %121, %122 : vector<48x1xf32>
    %124 = vector.broadcast %123 : vector<48x1xf32> to vector<48x32xf32>
    %125 = arith.subf %119, %124 : vector<48x32xf32>
    %126 = arith.mulf %125, %125 : vector<48x32xf32>
    %cst_34 = arith.constant dense<0.000000e+00> : vector<48xf32>
    %127 = vector.multi_reduction <add>, %126, %cst_34 [1] : vector<48x32xf32> to vector<48xf32>
    %128 = vector.shape_cast %127 : vector<48xf32> to vector<48x1xf32>
    %cst_35 = arith.constant 3.200000e+01 : f32
    %129 = vector.broadcast %cst_35 : f32 to vector<48x1xf32>
    %130 = arith.divf %128, %129 : vector<48x1xf32>
    %131 = vector.broadcast %123 : vector<48x1xf32> to vector<48x32xf32>
    %132 = arith.subf %119, %131 : vector<48x32xf32>
    %cst_36 = arith.constant 9.99999997E-7 : f32
    %133 = vector.broadcast %cst_36 : f32 to vector<48x1xf32>
    %134 = arith.addf %130, %133 : vector<48x1xf32>
    %135 = math.rsqrt %134 : vector<48x1xf32>
    %136 = vector.broadcast %135 : vector<48x1xf32> to vector<48x32xf32>
    %137 = arith.mulf %132, %136 : vector<48x32xf32>
    %138 = vector.broadcast %23 : vector<1x32xf32> to vector<48x32xf32>
    %139 = arith.mulf %137, %138 : vector<48x32xf32>
    %140 = vector.broadcast %24 : vector<1x32xf32> to vector<48x32xf32>
    %141 = arith.addf %139, %140 : vector<48x32xf32>
    %cst_37 = arith.constant dense<0.000000e+00> : vector<48x128xf32>
    %142 = tpu.matmul %141, %16, %cst_37 {dimension_numbers = #tpu.dot_dimension_numbers<[1], [0], [0], [1], [0, 0, 1, 1], [], []>} : vector<48x32xf32>, vector<32x128xf32>, vector<48x128xf32> -> vector<48x128xf32>
    %143 = vector.broadcast %27 : vector<1x128xf32> to vector<48x128xf32>
    %144 = arith.addf %142, %143 : vector<48x128xf32>
    %cst_38 = arith.constant 5.000000e-01 : f32
    %145 = vector.broadcast %cst_38 : f32 to vector<48x128xf32>
    %146 = arith.mulf %145, %144 : vector<48x128xf32>
    %cst_39 = arith.constant 0.707106769 : f32
    %147 = vector.broadcast %cst_39 : f32 to vector<48x128xf32>
    %148 = arith.mulf %144, %147 : vector<48x128xf32>
    %149 = math.erf %148 : vector<48x128xf32>
    %cst_40 = arith.constant 1.000000e+00 : f32
    %150 = vector.broadcast %cst_40 : f32 to vector<48x128xf32>
    %151 = arith.addf %150, %149 : vector<48x128xf32>
    %152 = arith.mulf %146, %151 : vector<48x128xf32>
    %cst_41 = arith.constant dense<0.000000e+00> : vector<48x32xf32>
    %153 = tpu.matmul %152, %18, %cst_41 {dimension_numbers = #tpu.dot_dimension_numbers<[1], [0], [0], [1], [0, 0, 1, 1], [], []>} : vector<48x128xf32>, vector<128x32xf32>, vector<48x32xf32> -> vector<48x32xf32>
    %154 = vector.broadcast %28 : vector<1x32xf32> to vector<48x32xf32>
    %155 = arith.addf %153, %154 : vector<48x32xf32>
    %156 = arith.addf %119, %155 : vector<48x32xf32>
    %c1 = arith.constant 1 : index
    %c0_42 = arith.constant 0 : index
    %c0_43 = arith.constant 0 : index
    %157 = vector.load %arg4[%c1, %c0_42, %c0_43] : memref<2x32x256xf32, #tpu.memory_space<vmem>>, vector<1x32x256xf32>
    %158 = vector.shape_cast %157 : vector<1x32x256xf32> to vector<32x256xf32>
    %159 = vector.extract_strided_slice %158 {offsets = [0, 0], sizes = [32, 96], strides = [1, 1]} : vector<32x256xf32> to vector<32x96xf32>
    %160 = vector.extract_strided_slice %158 {offsets = [0, 96], sizes = [32, 32], strides = [1, 1]} : vector<32x256xf32> to vector<32x32xf32>
    %161 = vector.extract_strided_slice %158 {offsets = [0, 128], sizes = [32, 128], strides = [1, 1]} : vector<32x256xf32> to vector<32x128xf32>
    %c1_44 = arith.constant 1 : index
    %c0_45 = arith.constant 0 : index
    %c0_46 = arith.constant 0 : index
    %162 = vector.load %arg5[%c1_44, %c0_45, %c0_46] : memref<2x128x32xf32, #tpu.memory_space<vmem>>, vector<1x128x32xf32>
    %163 = vector.shape_cast %162 : vector<1x128x32xf32> to vector<128x32xf32>
    %c1_47 = arith.constant 1 : index
    %c0_48 = arith.constant 0 : index
    %c0_49 = arith.constant 0 : index
    %164 = vector.load %arg6[%c1_47, %c0_48, %c0_49] : memref<2x8x128xf32, #tpu.memory_space<vmem>>, vector<1x8x128xf32>
    %165 = vector.shape_cast %164 : vector<1x8x128xf32> to vector<8x128xf32>
    %166 = vector.extract_strided_slice %165 {offsets = [0, 0], sizes = [1, 32], strides = [1, 1]} : vector<8x128xf32> to vector<1x32xf32>
    %167 = vector.extract_strided_slice %165 {offsets = [0, 32], sizes = [1, 32], strides = [1, 1]} : vector<8x128xf32> to vector<1x32xf32>
    %168 = vector.extract_strided_slice %165 {offsets = [0, 64], sizes = [1, 32], strides = [1, 1]} : vector<8x128xf32> to vector<1x32xf32>
    %169 = vector.extract_strided_slice %165 {offsets = [0, 96], sizes = [1, 32], strides = [1, 1]} : vector<8x128xf32> to vector<1x32xf32>
    %170 = vector.extract_strided_slice %165 {offsets = [1, 0], sizes = [1, 96], strides = [1, 1]} : vector<8x128xf32> to vector<1x96xf32>
    %171 = vector.extract_strided_slice %165 {offsets = [1, 96], sizes = [1, 32], strides = [1, 1]} : vector<8x128xf32> to vector<1x32xf32>
    %172 = vector.extract_strided_slice %165 {offsets = [2, 0], sizes = [1, 128], strides = [1, 1]} : vector<8x128xf32> to vector<1x128xf32>
    %173 = vector.extract_strided_slice %165 {offsets = [3, 0], sizes = [1, 32], strides = [1, 1]} : vector<8x128xf32> to vector<1x32xf32>
    %cst_50 = arith.constant dense<0.000000e+00> : vector<48xf32>
    %174 = vector.multi_reduction <add>, %156, %cst_50 [1] : vector<48x32xf32> to vector<48xf32>
    %175 = vector.shape_cast %174 : vector<48xf32> to vector<48x1xf32>
    %cst_51 = arith.constant 3.200000e+01 : f32
    %176 = vector.broadcast %cst_51 : f32 to vector<48x1xf32>
    %177 = arith.divf %175, %176 : vector<48x1xf32>
    %178 = vector.broadcast %177 : vector<48x1xf32> to vector<48x32xf32>
    %179 = arith.subf %156, %178 : vector<48x32xf32>
    %180 = arith.mulf %179, %179 : vector<48x32xf32>
    %cst_52 = arith.constant dense<0.000000e+00> : vector<48xf32>
    %181 = vector.multi_reduction <add>, %180, %cst_52 [1] : vector<48x32xf32> to vector<48xf32>
    %182 = vector.shape_cast %181 : vector<48xf32> to vector<48x1xf32>
    %cst_53 = arith.constant 3.200000e+01 : f32
    %183 = vector.broadcast %cst_53 : f32 to vector<48x1xf32>
    %184 = arith.divf %182, %183 : vector<48x1xf32>
    %185 = vector.broadcast %177 : vector<48x1xf32> to vector<48x32xf32>
    %186 = arith.subf %156, %185 : vector<48x32xf32>
    %cst_54 = arith.constant 9.99999997E-7 : f32
    %187 = vector.broadcast %cst_54 : f32 to vector<48x1xf32>
    %188 = arith.addf %184, %187 : vector<48x1xf32>
    %189 = math.rsqrt %188 : vector<48x1xf32>
    %190 = vector.broadcast %189 : vector<48x1xf32> to vector<48x32xf32>
    %191 = arith.mulf %186, %190 : vector<48x32xf32>
    %192 = vector.broadcast %166 : vector<1x32xf32> to vector<48x32xf32>
    %193 = arith.mulf %191, %192 : vector<48x32xf32>
    %194 = vector.broadcast %167 : vector<1x32xf32> to vector<48x32xf32>
    %195 = arith.addf %193, %194 : vector<48x32xf32>
    %cst_55 = arith.constant dense<0.000000e+00> : vector<48x96xf32>
    %196 = tpu.matmul %195, %159, %cst_55 {dimension_numbers = #tpu.dot_dimension_numbers<[1], [0], [0], [1], [0, 0, 1, 1], [], []>} : vector<48x32xf32>, vector<32x96xf32>, vector<48x96xf32> -> vector<48x96xf32>
    %197 = vector.broadcast %170 : vector<1x96xf32> to vector<48x96xf32>
    %198 = arith.addf %196, %197 : vector<48x96xf32>
    %199 = vector.extract_strided_slice %198 {offsets = [0, 0], sizes = [48, 8], strides = [1, 1]} : vector<48x96xf32> to vector<48x8xf32>
    %200 = vector.shape_cast %199 : vector<48x8xf32> to vector<2x24x8xf32>
    %201 = vector.extract_strided_slice %198 {offsets = [0, 8], sizes = [48, 8], strides = [1, 1]} : vector<48x96xf32> to vector<48x8xf32>
    %202 = vector.shape_cast %201 : vector<48x8xf32> to vector<2x24x8xf32>
    %203 = vector.extract_strided_slice %198 {offsets = [0, 16], sizes = [48, 8], strides = [1, 1]} : vector<48x96xf32> to vector<48x8xf32>
    %204 = vector.shape_cast %203 : vector<48x8xf32> to vector<2x24x8xf32>
    %205 = vector.extract_strided_slice %198 {offsets = [0, 24], sizes = [48, 8], strides = [1, 1]} : vector<48x96xf32> to vector<48x8xf32>
    %206 = vector.shape_cast %205 : vector<48x8xf32> to vector<2x24x8xf32>
    %207 = tpu.concatenate %200, %202, %204, %206 in 0 : vector<2x24x8xf32>, vector<2x24x8xf32>, vector<2x24x8xf32>, vector<2x24x8xf32> -> vector<8x24x8xf32>
    %208 = vector.extract_strided_slice %198 {offsets = [0, 32], sizes = [48, 8], strides = [1, 1]} : vector<48x96xf32> to vector<48x8xf32>
    %209 = vector.shape_cast %208 : vector<48x8xf32> to vector<2x24x8xf32>
    %210 = vector.extract_strided_slice %198 {offsets = [0, 40], sizes = [48, 8], strides = [1, 1]} : vector<48x96xf32> to vector<48x8xf32>
    %211 = vector.shape_cast %210 : vector<48x8xf32> to vector<2x24x8xf32>
    %212 = vector.extract_strided_slice %198 {offsets = [0, 48], sizes = [48, 8], strides = [1, 1]} : vector<48x96xf32> to vector<48x8xf32>
    %213 = vector.shape_cast %212 : vector<48x8xf32> to vector<2x24x8xf32>
    %214 = vector.extract_strided_slice %198 {offsets = [0, 56], sizes = [48, 8], strides = [1, 1]} : vector<48x96xf32> to vector<48x8xf32>
    %215 = vector.shape_cast %214 : vector<48x8xf32> to vector<2x24x8xf32>
    %216 = tpu.concatenate %209, %211, %213, %215 in 0 : vector<2x24x8xf32>, vector<2x24x8xf32>, vector<2x24x8xf32>, vector<2x24x8xf32> -> vector<8x24x8xf32>
    %217 = vector.extract_strided_slice %198 {offsets = [0, 64], sizes = [48, 8], strides = [1, 1]} : vector<48x96xf32> to vector<48x8xf32>
    %218 = vector.shape_cast %217 : vector<48x8xf32> to vector<2x24x8xf32>
    %219 = vector.extract_strided_slice %198 {offsets = [0, 72], sizes = [48, 8], strides = [1, 1]} : vector<48x96xf32> to vector<48x8xf32>
    %220 = vector.shape_cast %219 : vector<48x8xf32> to vector<2x24x8xf32>
    %221 = vector.extract_strided_slice %198 {offsets = [0, 80], sizes = [48, 8], strides = [1, 1]} : vector<48x96xf32> to vector<48x8xf32>
    %222 = vector.shape_cast %221 : vector<48x8xf32> to vector<2x24x8xf32>
    %223 = vector.extract_strided_slice %198 {offsets = [0, 88], sizes = [48, 8], strides = [1, 1]} : vector<48x96xf32> to vector<48x8xf32>
    %224 = vector.shape_cast %223 : vector<48x8xf32> to vector<2x24x8xf32>
    %225 = tpu.concatenate %218, %220, %222, %224 in 0 : vector<2x24x8xf32>, vector<2x24x8xf32>, vector<2x24x8xf32>, vector<2x24x8xf32> -> vector<8x24x8xf32>
    "tpu.trace_start"() <{level = 10 : i32, message = "bqd,bkd->bqk"}> : () -> ()
    %cst_56 = arith.constant dense<0.000000e+00> : vector<8x24x24xf32>
    %226 = tpu.matmul %207, %216, %cst_56 {dimension_numbers = #tpu.dot_dimension_numbers<[2], [2], [1], [1], [0, 0, 0, 1, 1, 1], [0], [0]>} : vector<8x24x8xf32>, vector<8x24x8xf32>, vector<8x24x24xf32> -> vector<8x24x24xf32>
    "tpu.trace_stop"() : () -> ()
    %cst_57 = arith.constant 0.353553385 : f32
    %227 = vector.broadcast %cst_57 : f32 to vector<8x24x24xf32>
    %228 = arith.mulf %226, %227 : vector<8x24x24xf32>
    %229 = vector.shape_cast %11 : vector<24x24xf32> to vector<1x24x24xf32>
    %230 = vector.broadcast %229 : vector<1x24x24xf32> to vector<8x24x24xf32>
    %231 = arith.addf %228, %230 : vector<8x24x24xf32>
    %cst_58 = arith.constant dense<0xFF800000> : vector<8x24xf32>
    %232 = vector.multi_reduction <maximumf>, %231, %cst_58 [2] : vector<8x24x24xf32> to vector<8x24xf32>
    %233 = vector.shape_cast %232 : vector<8x24xf32> to vector<8x24x1xf32>
    %234 = vector.broadcast %233 : vector<8x24x1xf32> to vector<8x24x24xf32>
    %235 = arith.subf %231, %234 : vector<8x24x24xf32>
    %236 = math.exp %235 : vector<8x24x24xf32>
    %cst_59 = arith.constant dense<0.000000e+00> : vector<8x24xf32>
    %237 = vector.multi_reduction <add>, %236, %cst_59 [2] : vector<8x24x24xf32> to vector<8x24xf32>
    %238 = vector.shape_cast %237 : vector<8x24xf32> to vector<8x24x1xf32>
    %239 = tpu.reciprocal %238 {approx = true} : vector<8x24x1xf32> -> vector<8x24x1xf32>
    %240 = vector.broadcast %239 : vector<8x24x1xf32> to vector<8x24x24xf32>
    %241 = arith.mulf %236, %240 : vector<8x24x24xf32>
    "tpu.trace_start"() <{level = 10 : i32, message = "bqk,bkd->bqd"}> : () -> ()
    %cst_60 = arith.constant dense<0.000000e+00> : vector<8x24x8xf32>
    %242 = tpu.matmul %241, %225, %cst_60 {dimension_numbers = #tpu.dot_dimension_numbers<[2], [1], [1], [2], [0, 0, 0, 1, 1, 2], [0], [0]>} : vector<8x24x24xf32>, vector<8x24x8xf32>, vector<8x24x8xf32> -> vector<8x24x8xf32>
    "tpu.trace_stop"() : () -> ()
    %243 = vector.extract_strided_slice %242 {offsets = [0, 0, 0], sizes = [2, 24, 8], strides = [1, 1, 1]} : vector<8x24x8xf32> to vector<2x24x8xf32>
    %244 = vector.shape_cast %243 : vector<2x24x8xf32> to vector<48x8xf32>
    %245 = vector.extract_strided_slice %160 {offsets = [0, 0], sizes = [8, 32], strides = [1, 1]} : vector<32x32xf32> to vector<8x32xf32>
    %cst_61 = arith.constant dense<0.000000e+00> : vector<48x32xf32>
    %246 = tpu.matmul %244, %245, %cst_61 {dimension_numbers = #tpu.dot_dimension_numbers<[1], [0], [0], [1], [0, 0, 1, 1], [], []>} : vector<48x8xf32>, vector<8x32xf32>, vector<48x32xf32> -> vector<48x32xf32>
    %247 = vector.broadcast %171 : vector<1x32xf32> to vector<48x32xf32>
    %248 = arith.addf %247, %246 : vector<48x32xf32>
    %249 = vector.extract_strided_slice %242 {offsets = [2, 0, 0], sizes = [2, 24, 8], strides = [1, 1, 1]} : vector<8x24x8xf32> to vector<2x24x8xf32>
    %250 = vector.shape_cast %249 : vector<2x24x8xf32> to vector<48x8xf32>
    %251 = vector.extract_strided_slice %160 {offsets = [8, 0], sizes = [8, 32], strides = [1, 1]} : vector<32x32xf32> to vector<8x32xf32>
    %cst_62 = arith.constant dense<0.000000e+00> : vector<48x32xf32>
    %252 = tpu.matmul %250, %251, %cst_62 {dimension_numbers = #tpu.dot_dimension_numbers<[1], [0], [0], [1], [0, 0, 1, 1], [], []>} : vector<48x8xf32>, vector<8x32xf32>, vector<48x32xf32> -> vector<48x32xf32>
    %253 = arith.addf %248, %252 : vector<48x32xf32>
    %254 = vector.extract_strided_slice %242 {offsets = [4, 0, 0], sizes = [2, 24, 8], strides = [1, 1, 1]} : vector<8x24x8xf32> to vector<2x24x8xf32>
    %255 = vector.shape_cast %254 : vector<2x24x8xf32> to vector<48x8xf32>
    %256 = vector.extract_strided_slice %160 {offsets = [16, 0], sizes = [8, 32], strides = [1, 1]} : vector<32x32xf32> to vector<8x32xf32>
    %cst_63 = arith.constant dense<0.000000e+00> : vector<48x32xf32>
    %257 = tpu.matmul %255, %256, %cst_63 {dimension_numbers = #tpu.dot_dimension_numbers<[1], [0], [0], [1], [0, 0, 1, 1], [], []>} : vector<48x8xf32>, vector<8x32xf32>, vector<48x32xf32> -> vector<48x32xf32>
    %258 = arith.addf %253, %257 : vector<48x32xf32>
    %259 = vector.extract_strided_slice %242 {offsets = [6, 0, 0], sizes = [2, 24, 8], strides = [1, 1, 1]} : vector<8x24x8xf32> to vector<2x24x8xf32>
    %260 = vector.shape_cast %259 : vector<2x24x8xf32> to vector<48x8xf32>
    %261 = vector.extract_strided_slice %160 {offsets = [24, 0], sizes = [8, 32], strides = [1, 1]} : vector<32x32xf32> to vector<8x32xf32>
    %cst_64 = arith.constant dense<0.000000e+00> : vector<48x32xf32>
    %262 = tpu.matmul %260, %261, %cst_64 {dimension_numbers = #tpu.dot_dimension_numbers<[1], [0], [0], [1], [0, 0, 1, 1], [], []>} : vector<48x8xf32>, vector<8x32xf32>, vector<48x32xf32> -> vector<48x32xf32>
    %263 = arith.addf %258, %262 : vector<48x32xf32>
    %264 = arith.addf %156, %263 : vector<48x32xf32>
    %cst_65 = arith.constant dense<0.000000e+00> : vector<48xf32>
    %265 = vector.multi_reduction <add>, %264, %cst_65 [1] : vector<48x32xf32> to vector<48xf32>
    %266 = vector.shape_cast %265 : vector<48xf32> to vector<48x1xf32>
    %cst_66 = arith.constant 3.200000e+01 : f32
    %267 = vector.broadcast %cst_66 : f32 to vector<48x1xf32>
    %268 = arith.divf %266, %267 : vector<48x1xf32>
    %269 = vector.broadcast %268 : vector<48x1xf32> to vector<48x32xf32>
    %270 = arith.subf %264, %269 : vector<48x32xf32>
    %271 = arith.mulf %270, %270 : vector<48x32xf32>
    %cst_67 = arith.constant dense<0.000000e+00> : vector<48xf32>
    %272 = vector.multi_reduction <add>, %271, %cst_67 [1] : vector<48x32xf32> to vector<48xf32>
    %273 = vector.shape_cast %272 : vector<48xf32> to vector<48x1xf32>
    %cst_68 = arith.constant 3.200000e+01 : f32
    %274 = vector.broadcast %cst_68 : f32 to vector<48x1xf32>
    %275 = arith.divf %273, %274 : vector<48x1xf32>
    %276 = vector.broadcast %268 : vector<48x1xf32> to vector<48x32xf32>
    %277 = arith.subf %264, %276 : vector<48x32xf32>
    %cst_69 = arith.constant 9.99999997E-7 : f32
    %278 = vector.broadcast %cst_69 : f32 to vector<48x1xf32>
    %279 = arith.addf %275, %278 : vector<48x1xf32>
    %280 = math.rsqrt %279 : vector<48x1xf32>
    %281 = vector.broadcast %280 : vector<48x1xf32> to vector<48x32xf32>
    %282 = arith.mulf %277, %281 : vector<48x32xf32>
    %283 = vector.broadcast %168 : vector<1x32xf32> to vector<48x32xf32>
    %284 = arith.mulf %282, %283 : vector<48x32xf32>
    %285 = vector.broadcast %169 : vector<1x32xf32> to vector<48x32xf32>
    %286 = arith.addf %284, %285 : vector<48x32xf32>
    %cst_70 = arith.constant dense<0.000000e+00> : vector<48x128xf32>
    %287 = tpu.matmul %286, %161, %cst_70 {dimension_numbers = #tpu.dot_dimension_numbers<[1], [0], [0], [1], [0, 0, 1, 1], [], []>} : vector<48x32xf32>, vector<32x128xf32>, vector<48x128xf32> -> vector<48x128xf32>
    %288 = vector.broadcast %172 : vector<1x128xf32> to vector<48x128xf32>
    %289 = arith.addf %287, %288 : vector<48x128xf32>
    %cst_71 = arith.constant 5.000000e-01 : f32
    %290 = vector.broadcast %cst_71 : f32 to vector<48x128xf32>
    %291 = arith.mulf %290, %289 : vector<48x128xf32>
    %cst_72 = arith.constant 0.707106769 : f32
    %292 = vector.broadcast %cst_72 : f32 to vector<48x128xf32>
    %293 = arith.mulf %289, %292 : vector<48x128xf32>
    %294 = math.erf %293 : vector<48x128xf32>
    %cst_73 = arith.constant 1.000000e+00 : f32
    %295 = vector.broadcast %cst_73 : f32 to vector<48x128xf32>
    %296 = arith.addf %295, %294 : vector<48x128xf32>
    %297 = arith.mulf %291, %296 : vector<48x128xf32>
    %cst_74 = arith.constant dense<0.000000e+00> : vector<48x32xf32>
    %298 = tpu.matmul %297, %163, %cst_74 {dimension_numbers = #tpu.dot_dimension_numbers<[1], [0], [0], [1], [0, 0, 1, 1], [], []>} : vector<48x128xf32>, vector<128x32xf32>, vector<48x32xf32> -> vector<48x32xf32>
    %299 = vector.broadcast %173 : vector<1x32xf32> to vector<48x32xf32>
    %300 = arith.addf %298, %299 : vector<48x32xf32>
    %301 = arith.addf %264, %300 : vector<48x32xf32>
    %302 = vector.shape_cast %301 : vector<48x32xf32> to vector<2x24x32xf32>
    %303 = vector.extract_strided_slice %302 {offsets = [0, 0, 0], sizes = [2, 16, 32], strides = [1, 1, 1]} : vector<2x24x32xf32> to vector<2x16x32xf32>
    %304 = vector.shape_cast %303 : vector<2x16x32xf32> to vector<32x32xf32>
    %c0_75 = arith.constant 0 : index
    %c0_76 = arith.constant 0 : index
    %305 = vector.load %arg7[%c0_75, %c0_76] : memref<32x128xf32, #tpu.memory_space<vmem>>, vector<32x128xf32>
    %c0_77 = arith.constant 0 : index
    %c0_78 = arith.constant 0 : index
    %306 = vector.load %arg8[%c0_77, %c0_78] : memref<8x128xf32, #tpu.memory_space<vmem>>, vector<8x128xf32>
    %307 = vector.extract_strided_slice %306 {offsets = [0, 0], sizes = [1, 32], strides = [1, 1]} : vector<8x128xf32> to vector<1x32xf32>
    %308 = vector.extract_strided_slice %306 {offsets = [0, 32], sizes = [1, 32], strides = [1, 1]} : vector<8x128xf32> to vector<1x32xf32>
    %cst_79 = arith.constant dense<0.000000e+00> : vector<32xf32>
    %309 = vector.multi_reduction <add>, %304, %cst_79 [1] : vector<32x32xf32> to vector<32xf32>
    %310 = vector.shape_cast %309 : vector<32xf32> to vector<32x1xf32>
    %cst_80 = arith.constant 3.200000e+01 : f32
    %311 = vector.broadcast %cst_80 : f32 to vector<32x1xf32>
    %312 = arith.divf %310, %311 : vector<32x1xf32>
    %313 = vector.broadcast %312 : vector<32x1xf32> to vector<32x32xf32>
    %314 = arith.subf %304, %313 : vector<32x32xf32>
    %315 = arith.mulf %314, %314 : vector<32x32xf32>
    %cst_81 = arith.constant dense<0.000000e+00> : vector<32xf32>
    %316 = vector.multi_reduction <add>, %315, %cst_81 [1] : vector<32x32xf32> to vector<32xf32>
    %317 = vector.shape_cast %316 : vector<32xf32> to vector<32x1xf32>
    %cst_82 = arith.constant 3.200000e+01 : f32
    %318 = vector.broadcast %cst_82 : f32 to vector<32x1xf32>
    %319 = arith.divf %317, %318 : vector<32x1xf32>
    %320 = vector.broadcast %312 : vector<32x1xf32> to vector<32x32xf32>
    %321 = arith.subf %304, %320 : vector<32x32xf32>
    %cst_83 = arith.constant 9.99999997E-7 : f32
    %322 = vector.broadcast %cst_83 : f32 to vector<32x1xf32>
    %323 = arith.addf %319, %322 : vector<32x1xf32>
    %324 = math.rsqrt %323 : vector<32x1xf32>
    %325 = vector.broadcast %324 : vector<32x1xf32> to vector<32x32xf32>
    %326 = arith.mulf %321, %325 : vector<32x32xf32>
    %327 = vector.broadcast %307 : vector<1x32xf32> to vector<32x32xf32>
    %328 = arith.mulf %326, %327 : vector<32x32xf32>
    %329 = vector.broadcast %308 : vector<1x32xf32> to vector<32x32xf32>
    %330 = arith.addf %328, %329 : vector<32x32xf32>
    %331 = vector.extract_strided_slice %305 {offsets = [0, 0], sizes = [32, 32], strides = [1, 1]} : vector<32x128xf32> to vector<32x32xf32>
    %cst_84 = arith.constant dense<0.000000e+00> : vector<32x32xf32>
    %332 = tpu.matmul %330, %331, %cst_84 {dimension_numbers = #tpu.dot_dimension_numbers<[1], [0], [0], [1], [0, 0, 1, 1], [], []>} : vector<32x32xf32>, vector<32x32xf32>, vector<32x32xf32> -> vector<32x32xf32>
    %333 = vector.extract_strided_slice %306 {offsets = [0, 64], sizes = [1, 32], strides = [1, 1]} : vector<8x128xf32> to vector<1x32xf32>
    %334 = vector.broadcast %333 : vector<1x32xf32> to vector<32x32xf32>
    %335 = arith.addf %332, %334 : vector<32x32xf32>
    %336 = math.tanh %335 : vector<32x32xf32>
    %337 = vector.extract_strided_slice %305 {offsets = [0, 32], sizes = [32, 8], strides = [1, 1]} : vector<32x128xf32> to vector<32x8xf32>
    %cst_85 = arith.constant dense<0.000000e+00> : vector<32x8xf32>
    %338 = tpu.matmul %336, %337, %cst_85 {dimension_numbers = #tpu.dot_dimension_numbers<[1], [0], [0], [1], [0, 0, 1, 1], [], []>} : vector<32x32xf32>, vector<32x8xf32>, vector<32x8xf32> -> vector<32x8xf32>
    %339 = vector.extract_strided_slice %306 {offsets = [0, 96], sizes = [1, 8], strides = [1, 1]} : vector<8x128xf32> to vector<1x8xf32>
    %340 = vector.broadcast %339 : vector<1x8xf32> to vector<32x8xf32>
    %341 = arith.addf %338, %340 : vector<32x8xf32>
    %342 = vector.shape_cast %341 : vector<32x8xf32> to vector<2x16x8xf32>
    %343 = vector.extract_strided_slice %342 {offsets = [0, 0, 0], sizes = [2, 1, 8], strides = [1, 1, 1]} : vector<2x16x8xf32> to vector<2x1x8xf32>
    %344 = vector.shape_cast %343 : vector<2x1x8xf32> to vector<2x8xf32>
    %c0_86 = arith.constant 0 : index
    %c0_87 = arith.constant 0 : index
    %345 = vector.load %arg9[%c0_86, %c0_87] : memref<2x128xf32, #tpu.memory_space<vmem>>, vector<2x8xf32>
    tpu.vector_store %arg9[%c0_86, %c0_87], %344 {strides = array<i32>} : memref<2x128xf32, #tpu.memory_space<vmem>>, vector<2x8xf32>,
    %346 = vector.extract_strided_slice %342 {offsets = [0, 1, 0], sizes = [2, 1, 8], strides = [1, 1, 1]} : vector<2x16x8xf32> to vector<2x1x8xf32>
    %347 = vector.shape_cast %346 : vector<2x1x8xf32> to vector<2x8xf32>
    %c0_88 = arith.constant 0 : index
    %c8 = arith.constant 8 : index
    %348 = vector.load %arg9[%c0_88, %c8] : memref<2x128xf32, #tpu.memory_space<vmem>>, vector<2x8xf32>
    tpu.vector_store %arg9[%c0_88, %c8], %347 {strides = array<i32>} : memref<2x128xf32, #tpu.memory_space<vmem>>, vector<2x8xf32>,
    %349 = vector.extract_strided_slice %342 {offsets = [0, 2, 0], sizes = [2, 1, 8], strides = [1, 1, 1]} : vector<2x16x8xf32> to vector<2x1x8xf32>
    %350 = vector.shape_cast %349 : vector<2x1x8xf32> to vector<2x8xf32>
    %c0_89 = arith.constant 0 : index
    %c16 = arith.constant 16 : index
    %351 = vector.load %arg9[%c0_89, %c16] : memref<2x128xf32, #tpu.memory_space<vmem>>, vector<2x8xf32>
    tpu.vector_store %arg9[%c0_89, %c16], %350 {strides = array<i32>} : memref<2x128xf32, #tpu.memory_space<vmem>>, vector<2x8xf32>,
    %352 = vector.extract_strided_slice %342 {offsets = [0, 3, 0], sizes = [2, 1, 8], strides = [1, 1, 1]} : vector<2x16x8xf32> to vector<2x1x8xf32>
    %353 = vector.shape_cast %352 : vector<2x1x8xf32> to vector<2x8xf32>
    %c0_90 = arith.constant 0 : index
    %c24 = arith.constant 24 : index
    %354 = vector.load %arg9[%c0_90, %c24] : memref<2x128xf32, #tpu.memory_space<vmem>>, vector<2x8xf32>
    tpu.vector_store %arg9[%c0_90, %c24], %353 {strides = array<i32>} : memref<2x128xf32, #tpu.memory_space<vmem>>, vector<2x8xf32>,
    %355 = vector.extract_strided_slice %342 {offsets = [0, 4, 0], sizes = [2, 1, 8], strides = [1, 1, 1]} : vector<2x16x8xf32> to vector<2x1x8xf32>
    %356 = vector.shape_cast %355 : vector<2x1x8xf32> to vector<2x8xf32>
    %c0_91 = arith.constant 0 : index
    %c32 = arith.constant 32 : index
    %357 = vector.load %arg9[%c0_91, %c32] : memref<2x128xf32, #tpu.memory_space<vmem>>, vector<2x8xf32>
    tpu.vector_store %arg9[%c0_91, %c32], %356 {strides = array<i32>} : memref<2x128xf32, #tpu.memory_space<vmem>>, vector<2x8xf32>,
    %358 = vector.extract_strided_slice %342 {offsets = [0, 5, 0], sizes = [2, 1, 8], strides = [1, 1, 1]} : vector<2x16x8xf32> to vector<2x1x8xf32>
    %359 = vector.shape_cast %358 : vector<2x1x8xf32> to vector<2x8xf32>
    %c0_92 = arith.constant 0 : index
    %c40 = arith.constant 40 : index
    %360 = vector.load %arg9[%c0_92, %c40] : memref<2x128xf32, #tpu.memory_space<vmem>>, vector<2x8xf32>
    tpu.vector_store %arg9[%c0_92, %c40], %359 {strides = array<i32>} : memref<2x128xf32, #tpu.memory_space<vmem>>, vector<2x8xf32>,
    %361 = vector.extract_strided_slice %342 {offsets = [0, 6, 0], sizes = [2, 1, 8], strides = [1, 1, 1]} : vector<2x16x8xf32> to vector<2x1x8xf32>
    %362 = vector.shape_cast %361 : vector<2x1x8xf32> to vector<2x8xf32>
    %c0_93 = arith.constant 0 : index
    %c48 = arith.constant 48 : index
    %363 = vector.load %arg9[%c0_93, %c48] : memref<2x128xf32, #tpu.memory_space<vmem>>, vector<2x8xf32>
    tpu.vector_store %arg9[%c0_93, %c48], %362 {strides = array<i32>} : memref<2x128xf32, #tpu.memory_space<vmem>>, vector<2x8xf32>,
    %364 = vector.extract_strided_slice %342 {offsets = [0, 7, 0], sizes = [2, 1, 8], strides = [1, 1, 1]} : vector<2x16x8xf32> to vector<2x1x8xf32>
    %365 = vector.shape_cast %364 : vector<2x1x8xf32> to vector<2x8xf32>
    %c0_94 = arith.constant 0 : index
    %c56 = arith.constant 56 : index
    %366 = vector.load %arg9[%c0_94, %c56] : memref<2x128xf32, #tpu.memory_space<vmem>>, vector<2x8xf32>
    tpu.vector_store %arg9[%c0_94, %c56], %365 {strides = array<i32>} : memref<2x128xf32, #tpu.memory_space<vmem>>, vector<2x8xf32>,
    %367 = vector.extract_strided_slice %342 {offsets = [0, 8, 0], sizes = [2, 1, 8], strides = [1, 1, 1]} : vector<2x16x8xf32> to vector<2x1x8xf32>
    %368 = vector.shape_cast %367 : vector<2x1x8xf32> to vector<2x8xf32>
    %c0_95 = arith.constant 0 : index
    %c64 = arith.constant 64 : index
    %369 = vector.load %arg9[%c0_95, %c64] : memref<2x128xf32, #tpu.memory_space<vmem>>, vector<2x8xf32>
    tpu.vector_store %arg9[%c0_95, %c64], %368 {strides = array<i32>} : memref<2x128xf32, #tpu.memory_space<vmem>>, vector<2x8xf32>,
    %370 = vector.extract_strided_slice %342 {offsets = [0, 9, 0], sizes = [2, 1, 8], strides = [1, 1, 1]} : vector<2x16x8xf32> to vector<2x1x8xf32>
    %371 = vector.shape_cast %370 : vector<2x1x8xf32> to vector<2x8xf32>
    %c0_96 = arith.constant 0 : index
    %c72 = arith.constant 72 : index
    %372 = vector.load %arg9[%c0_96, %c72] : memref<2x128xf32, #tpu.memory_space<vmem>>, vector<2x8xf32>
    tpu.vector_store %arg9[%c0_96, %c72], %371 {strides = array<i32>} : memref<2x128xf32, #tpu.memory_space<vmem>>, vector<2x8xf32>,
    %373 = vector.extract_strided_slice %342 {offsets = [0, 10, 0], sizes = [2, 1, 8], strides = [1, 1, 1]} : vector<2x16x8xf32> to vector<2x1x8xf32>
    %374 = vector.shape_cast %373 : vector<2x1x8xf32> to vector<2x8xf32>
    %c0_97 = arith.constant 0 : index
    %c80 = arith.constant 80 : index
    %375 = vector.load %arg9[%c0_97, %c80] : memref<2x128xf32, #tpu.memory_space<vmem>>, vector<2x8xf32>
    tpu.vector_store %arg9[%c0_97, %c80], %374 {strides = array<i32>} : memref<2x128xf32, #tpu.memory_space<vmem>>, vector<2x8xf32>,
    %376 = vector.extract_strided_slice %342 {offsets = [0, 11, 0], sizes = [2, 1, 8], strides = [1, 1, 1]} : vector<2x16x8xf32> to vector<2x1x8xf32>
    %377 = vector.shape_cast %376 : vector<2x1x8xf32> to vector<2x8xf32>
    %c0_98 = arith.constant 0 : index
    %c88 = arith.constant 88 : index
    %378 = vector.load %arg9[%c0_98, %c88] : memref<2x128xf32, #tpu.memory_space<vmem>>, vector<2x8xf32>
    tpu.vector_store %arg9[%c0_98, %c88], %377 {strides = array<i32>} : memref<2x128xf32, #tpu.memory_space<vmem>>, vector<2x8xf32>,
    %379 = vector.extract_strided_slice %342 {offsets = [0, 12, 0], sizes = [2, 1, 8], strides = [1, 1, 1]} : vector<2x16x8xf32> to vector<2x1x8xf32>
    %380 = vector.shape_cast %379 : vector<2x1x8xf32> to vector<2x8xf32>
    %c0_99 = arith.constant 0 : index
    %c96 = arith.constant 96 : index
    %381 = vector.load %arg9[%c0_99, %c96] : memref<2x128xf32, #tpu.memory_space<vmem>>, vector<2x8xf32>
    tpu.vector_store %arg9[%c0_99, %c96], %380 {strides = array<i32>} : memref<2x128xf32, #tpu.memory_space<vmem>>, vector<2x8xf32>,
    %382 = vector.extract_strided_slice %342 {offsets = [0, 13, 0], sizes = [2, 1, 8], strides = [1, 1, 1]} : vector<2x16x8xf32> to vector<2x1x8xf32>
    %383 = vector.shape_cast %382 : vector<2x1x8xf32> to vector<2x8xf32>
    %c0_100 = arith.constant 0 : index
    %c104 = arith.constant 104 : index
    %384 = vector.load %arg9[%c0_100, %c104] : memref<2x128xf32, #tpu.memory_space<vmem>>, vector<2x8xf32>
    tpu.vector_store %arg9[%c0_100, %c104], %383 {strides = array<i32>} : memref<2x128xf32, #tpu.memory_space<vmem>>, vector<2x8xf32>,
    %385 = vector.extract_strided_slice %342 {offsets = [0, 14, 0], sizes = [2, 1, 8], strides = [1, 1, 1]} : vector<2x16x8xf32> to vector<2x1x8xf32>
    %386 = vector.shape_cast %385 : vector<2x1x8xf32> to vector<2x8xf32>
    %c0_101 = arith.constant 0 : index
    %c112 = arith.constant 112 : index
    %387 = vector.load %arg9[%c0_101, %c112] : memref<2x128xf32, #tpu.memory_space<vmem>>, vector<2x8xf32>
    tpu.vector_store %arg9[%c0_101, %c112], %386 {strides = array<i32>} : memref<2x128xf32, #tpu.memory_space<vmem>>, vector<2x8xf32>,
    %388 = vector.extract_strided_slice %342 {offsets = [0, 15, 0], sizes = [2, 1, 8], strides = [1, 1, 1]} : vector<2x16x8xf32> to vector<2x1x8xf32>
    %389 = vector.shape_cast %388 : vector<2x1x8xf32> to vector<2x8xf32>
    %c0_102 = arith.constant 0 : index
    %c120 = arith.constant 120 : index
    %390 = vector.load %arg9[%c0_102, %c120] : memref<2x128xf32, #tpu.memory_space<vmem>>, vector<2x8xf32>
    tpu.vector_store %arg9[%c0_102, %c120], %389 {strides = array<i32>} : memref<2x128xf32, #tpu.memory_space<vmem>>, vector<2x8xf32>,
    return
  }
  func.func @transform_0(%arg0: i32) -> (i32, i32, i32) {
    %c0_i32 = arith.constant 0 : i32
    %c0_i32_0 = arith.constant 0 : i32
    %c0_i32_1 = arith.constant 0 : i32
    return %arg0, %c0_i32, %c0_i32_0 : i32, i32, i32
  }
  func.func @transform_1(%arg0: i32) -> (i32, i32) {
    %c0_i32 = arith.constant 0 : i32
    %c0_i32_0 = arith.constant 0 : i32
    %c0_i32_1 = arith.constant 0 : i32
    return %c0_i32, %c0_i32_0 : i32, i32
  }
  func.func @transform_2(%arg0: i32) -> (i32, i32) {
    %c0_i32 = arith.constant 0 : i32
    %c0_i32_0 = arith.constant 0 : i32
    %c0_i32_1 = arith.constant 0 : i32
    return %c0_i32, %c0_i32_0 : i32, i32
  }
  func.func @transform_3(%arg0: i32) -> (i32, i32, i32) {
    %c0_i32 = arith.constant 0 : i32
    %c0_i32_0 = arith.constant 0 : i32
    %c0_i32_1 = arith.constant 0 : i32
    %c0_i32_2 = arith.constant 0 : i32
    return %c0_i32, %c0_i32_0, %c0_i32_1 : i32, i32, i32
  }
  func.func @transform_4(%arg0: i32) -> (i32, i32, i32) {
    %c0_i32 = arith.constant 0 : i32
    %c0_i32_0 = arith.constant 0 : i32
    %c0_i32_1 = arith.constant 0 : i32
    %c0_i32_2 = arith.constant 0 : i32
    return %c0_i32, %c0_i32_0, %c0_i32_1 : i32, i32, i32
  }
  func.func @transform_5(%arg0: i32) -> (i32, i32, i32) {
    %c0_i32 = arith.constant 0 : i32
    %c0_i32_0 = arith.constant 0 : i32
    %c0_i32_1 = arith.constant 0 : i32
    %c0_i32_2 = arith.constant 0 : i32
    return %c0_i32, %c0_i32_0, %c0_i32_1 : i32, i32, i32
  }
  func.func @transform_6(%arg0: i32) -> (i32, i32) {
    %c0_i32 = arith.constant 0 : i32
    %c0_i32_0 = arith.constant 0 : i32
    %c0_i32_1 = arith.constant 0 : i32
    return %c0_i32, %c0_i32_0 : i32, i32
  }
  func.func @transform_7(%arg0: i32) -> (i32, i32) {
    %c0_i32 = arith.constant 0 : i32
    %c0_i32_0 = arith.constant 0 : i32
    %c0_i32_1 = arith.constant 0 : i32
    return %c0_i32, %c0_i32_0 : i32, i32
  }
  func.func @transform_8(%arg0: i32) -> (i32, i32) {
    %c0_i32 = arith.constant 0 : i32
    %c0_i32_0 = arith.constant 0 : i32
    return %arg0, %c0_i32 : i32, i32
  }
}

</mosaic_0001>

<bundles_post_ra>
// kernel: tpu_custom_call.1
= control target key start
LH: loop header
LB: loop body
LE: loop exit
PB: predicated region body
PF: predicated region fallthrough
CT: control target
= control target key end

     0   :  { %s11275_s0 = inlined_call_operand.vmem [shape: f32[2,24,128], index: 0, kind: input, shape index: {}]   ;;  %s11276_s1 = inlined_call_operand.vmem [shape: f32[128,32], index: 1, kind: input, shape index: {}]   ;;  %s11277_s2 = inlined_call_operand.vmem [shape: f32[48,32], index: 2, kind: input, shape index: {}]   ;;  %s11278_s3 = inlined_call_operand.vmem [shape: f32[2,32,256], index: 3, kind: input, shape index: {}]   ;;  %s11279_s4 = inlined_call_operand.vmem [shape: f32[2,128,32], index: 4, kind: input, shape index: {}]   ;;  %s11280_s5 = inlined_call_operand.vmem [shape: f32[2,8,128], index: 5, kind: input, shape index: {}]   ;;  %s11281_s6 = inlined_call_operand.vmem [shape: f32[32,128], index: 6, kind: input, shape index: {}]   ;;  %s11282_s7 = inlined_call_operand.vmem [shape: f32[8,128], index: 7, kind: input, shape index: {}]   ;;  %s11283_s8 = inlined_call_operand.hbm [shape: f32[2,128], index: 8, kind: output, shape index: {}]  }
   0x1   :  { %v36_v0 = vld [vmem:[%s11276_s1] sm:$0xff]  ;;  %v37_v1 = vld [vmem:[%s11276_s1 + $0x8] sm:$0xff]  ;;  %v38_v2 = vld [vmem:[%s11276_s1 + $0x10] sm:$0xff] }
   0x2   :  { %v8244_v3 = vpack.c.bf16 %v37_v1, %v36_v0  ;;  %v39_v4 = vld [vmem:[%s11276_s1 + $0x18] sm:$0xff]  ;;  %v40_v6 = vld [vmem:[%s11276_s1 + $0x20] sm:$0xff]  ;;  %v41_v7 = vld [vmem:[%s11276_s1 + $0x28] sm:$0xff] }
   0x3   :  { %v8248_v5 = vpack.c.bf16 %v39_v4, %v38_v2  ;;  %v8252_v8 = vpack.c.bf16 %v41_v7, %v40_v6  ;;  %v30_v9 = vld [vmem:[%s11275_s0] sm:$0xff]  ;;  %v42_v10 = vld [vmem:[%s11276_s1 + $0x30] sm:$0xff]  ;;  %v43_v11 = vld [vmem:[%s11276_s1 + $0x38] sm:$0xff] }
   0x4   :  { %8245 = vmatprep.subr.bf16.mxu0 %v8244_v3  ;;  %7489 = vmatprep.mubr.f32.mxu0 %v30_v9 }
   0x5   :  { %8247 = vmatpush3.bf16.msra.mxu0 %v8244_v3 }
   0x6   :  { %8249 = vmatprep.subr.bf16.mxu0 %v8248_v5 }
   0x7   :  { %13 = vsyncpa [#allocation3], 0  ;;  %v8256_v12 = vpack.c.bf16 %v43_v11, %v42_v10  ;;  %v44_v13 = vld [vmem:[%s11276_s1 + $0x40] sm:$0xff]  ;;  %v45_v14 = vld [vmem:[%s11276_s1 + $0x48] sm:$0xff]  ;;  %vm182_vm0 = vcmask 261120   ;;  %s9007_s20 = smov 96  }
   0x8   :  { %v8260_v15 = vpack.c.bf16 %v45_v14, %v44_v13  ;;  %v46_v16 = vld [vmem:[%s11276_s1 + $0x50] sm:$0xff]  ;;  %v47_v17 = vld [vmem:[%s11276_s1 + $0x58] sm:$0xff]  ;;  %v48_v19 = vld [vmem:[%s11276_s1 + $0x60] sm:$0xff]  ;;  %s9008_s24 = smov 120   ;;  %s9009_s25 = smov 112   ;;  %vm9012_vm1 = vmmov 0  }
   0x9   :  { %8251 = vmatpush3.bf16.msra.mxu0 %v8248_v5  ;;  %v8264_v18 = vpack.c.bf16 %v47_v17, %v46_v16  ;;  %v49_v20 = vld [vmem:[%s11276_s1 + $0x68] sm:$0xff]  ;;  %v50_v22 = vld [vmem:[%s11276_s1 + $0x70] sm:$0xff]  ;;  %v51_v23 = vld [vmem:[%s11276_s1 + $0x78] sm:$0xff]  ;;  %s9010_s26 = smov 104   ;;  %vm447_vm2 = vcmask 64512   ;;  %s9014_s27 = smov 64  }
   0xa   :  { %8253 = vmatprep.subr.bf16.mxu0 %v8252_v8  ;;  %v8268_v21 = vpack.c.bf16 %v49_v20, %v48_v19  ;;  %v8272_v24 = vpack.c.bf16 %v51_v23, %v50_v22  ;;  %v31_v25 = vld [vmem:[%s11275_s0 + $0x8] sm:$0xff]  ;;  %v32_v26 = vld [vmem:[%s11275_s0 + $0x10] sm:$0xff]  ;;  %v33_v27 = vld [vmem:[%s11275_s0 + $0x18] sm:$0xff]  ;;  %v153_v20 = vlaneseq  ;;  %vm1274_vm5 = vcmask 195584   ;;  %s9015_s30 = smov 32   ;;  %s9018_s29 = smov 80  }
   0xb   :  { %v34_v28 = vld [vmem:[%s11275_s0 + $0x20] sm:$0xff]  ;;  %v35_v29 = vld [vmem:[%s11275_s0 + $0x28] sm:$0xff]  ;;  %v55_v35 = vld [vmem:[%s11277_s2 + $0x18] sm:$0xff]  ;;  %vm6712_vm6 = vcmask 1041409   ;;  %vm6717_vm7 = vcmask 1042434   ;;  %vm6724_vm8 = vcmask 1043459  }
   0xc   :  { %v52_v30 = vld [vmem:[%s11277_s2] sm:$0xff]  ;;  %v53_v32 = vld [vmem:[%s11277_s2 + $0x8] sm:$0xff]  ;;  %v54_v36 = vld [vmem:[%s11277_s2 + $0x10] sm:$0xff]  ;;  %vm6731_vm9 = vcmask 1044484   ;;  %vm6738_vm10 = vcmask 1045509   ;;  %vm6752_vm11 = vcmask 1047559  }
   0xd   :  { %8255 = vmatpush3.bf16.msra.mxu0 %v8252_v8  ;;  %v57_v43 = vld [vmem:[%s11277_s2 + $0x28] sm:$0xff]  ;;  %v56_v44 = vld [vmem:[%s11277_s2 + $0x20] sm:$0xff]  ;;  %vm9418_vm3 = vmpackc.low %vm447_vm2, %vm447_vm2  ;;  %vm6745_vm12 = vcmask 1046534   ;;  %vm6715_vm13 = vcmask 58368   ;;  %s9019_s9 = smov 16   ;;  %s9020_s10 = smov 8  }
   0xe   :  { %8257 = vmatprep.subr.bf16.mxu0 %v8256_v12  ;;  %v9224_v23 = vld [vmem:[%s11280_s5] sm:$0xff]  ;;  %s9021_s0 = smov 24   ;;  %s9022_s11 = smov 48   ;;  %vm6722_vm14 = vcmask 124993   ;;  %vm6729_vm15 = vcmask 191618  }
   0xf   :  { %s9024_s12 = smov 88  }
  0x11   :  { %8259 = vmatpush3.bf16.msra.mxu0 %v8256_v12 }
  0x12   :  { %8261 = vmatprep.subr.bf16.mxu0 %v8260_v15 }
  0x15   :  { %8263 = vmatpush3.bf16.msra.mxu0 %v8260_v15 }
  0x16   :  { %8265 = vmatprep.subr.bf16.mxu0 %v8264_v18 }
  0x19   :  { %8267 = vmatpush3.bf16.msra.mxu0 %v8264_v18 }
  0x1a   :  { %8269 = vmatprep.subr.bf16.mxu0 %v8268_v21 }
  0x1d   :  { %8271 = vmatpush3.bf16.msra.mxu0 %v8268_v21  ;;  %v9216_v21 = vshrl.u32 %v153_v20, 7 }
  0x1e   :  { %8273 = vmatprep.subr.bf16.mxu0 %v8272_v24 }
  0x1f   :  { %v9219_v22 = vsub.s32 0, %v9216_v21 }
  0x21   :  { %8275 = vmatpush3.bf16.msra.mxu0 %v8272_v24  ;;  %v9228_v24 = vrot.slane %v9224_v23, %v9219_v22 }
  0x24   :  { %7490 = vmatmul.mubr.f32.vlgmr.msra.gmra.mrb[0].mxu0 %v31_v25  ;;  %v157_v25 = vld [vmem:[%s11278_s3] sm:$0xff] }
  0x25   :  { %7492 = vmatprep.mubr.f32.mxu0 %v32_v26  ;;  %v159_v26 = vld [vmem:[%s11278_s3 + $0x10] sm:$0xff] }
  0x28   :  { %7493 = vmatmul.mubr.f32.gmra.mrb[2].mxu0 %v33_v27  ;;  %v8276_v27 = vpack.c.bf16 %v159_v26, %v157_v25 }
  0x29   :  { %7495 = vmatprep.mubr.f32.mxu0 %v34_v28  ;;  %v161_v28 = vld [vmem:[%s11278_s3 + $0x20] sm:$0xff] }
  0x2a   :  { %8277 = vmatprep.subr.bf16.mxu1 %v8276_v27 }
  0x2b   :  { %8279 = vmatpush3.bf16.msra.mxu1 %v8276_v27 }
  0x2c   :  { %7496 = vmatmul.mubr.f32.gmra.mrb[4].mxu0 %v35_v29  ;;  %v163_v29 = vld [vmem:[%s11278_s3 + $0x30] sm:$0xff] }
  0xf7   :  { %v7491_v31 = vpop.f32.mrb[0].mxu0 }
  0xf8   :  { %v124_v33 = vpop.f32.mrb[1].mxu0  ;;  %v9151_v37 = vadd.f32 %v7491_v31, %v53_v32 }
  0xf9   :  { %v9143_v34 = vadd.f32 %v124_v33, %v52_v30  ;;  %v8280_v30 = vpack.c.bf16 %v163_v29, %v161_v28 }
  0xfa   :  { %v186_v47 = vsel %vm182_vm0, %v9151_v37, 0.0 }
  0xfb   :  { %v7494_v38 = vpop.f32.mrb[2].mxu0  ;;  %v183_v39 = vsel %vm182_vm0, %v9143_v34, 0.0  ;;  %8281 = vmatprep.subr.bf16.mxu1 %v8280_v30 }
  0xfc   :  { %v134_v40 = vpop.f32.mrb[3].mxu0  ;;  %184 = vadd.xlane.f32.xlu0 %v183_v39  ;;  %v9155_v41 = vadd.f32 %v7494_v38, %v55_v35  ;;  %8283 = vmatpush3.bf16.msra.mxu1 %v8280_v30 }
  0xfd   :  { %v9157_v42 = vadd.f32 %v134_v40, %v54_v36 }
  0xfe   :  { %v192_v51 = vsel %vm182_vm0, %v9155_v41, 0.0 }
  0xff   :  { %v7497_v45 = vpop.f32.mrb[4].mxu0  ;;  %v189_v46 = vsel %vm182_vm0, %v9157_v42, 0.0 }
 0x100   :  { %v144_v48 = vpop.f32.mrb[5].mxu0  ;;  %190 = vadd.xlane.f32.xlu1 %v189_v46  ;;  %187 = vadd.xlane.f32.xlu0 %v186_v47  ;;  %v9169_v49 = vadd.f32 %v7497_v45, %v57_v43 }
 0x101   :  { %v9171_v50 = vadd.f32 %v144_v48, %v56_v44 }
 0x102   :  { %v198_v53 = vsel %vm182_vm0, %v9169_v49, 0.0 }
 0x103   :  { %v195_v52 = vsel %vm182_vm0, %v9171_v50, 0.0 }
 0x104   :  { %193 = vadd.xlane.f32.xlu1 %v192_v51  ;;  %196 = vadd.xlane.f32.xlu0 %v195_v52 }
 0x108   :  { %199 = vadd.xlane.f32.xlu1 %v198_v53 }
 0x189   :  { %v185_v54 = vpop.xlane.xlu0 %184 }
 0x18a   :  { %v202_v55 = vmul.f32 0.03125, %v185_v54 }
 0x18c   :  { %v9180_v56 = vsub.f32 %v9143_v34, %v202_v55 }
 0x18d   :  { %v191_v57 = vpop.xlane.xlu1 %190  ;;  %v188_v58 = vpop.xlane.xlu0 %187 }
 0x18e   :  { %v204_v59 = vmul.f32 0.03125, %v191_v57  ;;  %v203_v60 = vmul.f32 0.03125, %v188_v58  ;;  %v214_v61 = vmul.f32 %v9180_v56, %v9180_v56 }
 0x190   :  { %v9185_v62 = vsub.f32 %v9157_v42, %v204_v59  ;;  %v9188_v63 = vsub.f32 %v9151_v37, %v203_v60  ;;  %v220_v0 = vsel %vm182_vm0, %v214_v61, 0.0 }
 0x191   :  { %v194_v1 = vpop.xlane.xlu1 %193  ;;  %221 = vadd.xlane.f32.xlu0 %v220_v0  ;;  %v197_v2 = vpop.xlane.xlu0 %196 }
 0x192   :  { %v205_v3 = vmul.f32 0.03125, %v194_v1  ;;  %v206_v4 = vmul.f32 0.03125, %v197_v2  ;;  %v216_v5 = vmul.f32 %v9185_v62, %v9185_v62  ;;  %v215_v6 = vmul.f32 %v9188_v63, %v9188_v63 }
 0x194   :  { %v9196_v7 = vsub.f32 %v9155_v41, %v205_v3  ;;  %v9199_v8 = vsub.f32 %v9171_v50, %v206_v4  ;;  %v226_v9 = vsel %vm182_vm0, %v216_v5, 0.0  ;;  %v223_v10 = vsel %vm182_vm0, %v215_v6, 0.0 }
 0x195   :  { %v200_v11 = vpop.xlane.xlu1 %199  ;;  %227 = vadd.xlane.f32.xlu0 %v226_v9  ;;  %224 = vadd.xlane.f32.xlu1 %v223_v10 }
 0x196   :  { %v207_v12 = vmul.f32 0.03125, %v200_v11  ;;  %v217_v13 = vmul.f32 %v9196_v7, %v9196_v7  ;;  %v218_v14 = vmul.f32 %v9199_v8, %v9199_v8 }
 0x198   :  { %v9208_v15 = vsub.f32 %v9169_v49, %v207_v12  ;;  %v229_v16 = vsel %vm182_vm0, %v217_v13, 0.0  ;;  %v232_v17 = vsel %vm182_vm0, %v218_v14, 0.0 }
 0x199   :  { %230 = vadd.xlane.f32.xlu1 %v229_v16  ;;  %233 = vadd.xlane.f32.xlu0 %v232_v17  ;;  %v284_v17 = vsub.s32 1, %v9216_v21 }
 0x19a   :  { %v219_v18 = vmul.f32 %v9208_v15, %v9208_v15 }
 0x19c   :  { %v235_v19 = vsel %vm182_vm0, %v219_v18, 0.0  ;;  %v9266_v18 = vrot.slane %v9224_v23, %v284_v17 }
 0x19d   :  { %236 = vadd.xlane.f32.xlu1 %v235_v19 }
 0x1af   :  { %273 = vrot.lane.b32.xlu0 %v9228_v24, %s9007_s20 }
 0x21e   :  { %v222_v31 = vpop.xlane.xlu0 %221 }
 0x21f   :  { %v238_v32 = vmul.f32 0.03125, %v222_v31 }
 0x221   :  { %v244_v33 = vadd.f32 1e-06, %v238_v32 }
 0x222   :  { %v225_v35 = vpop.xlane.xlu1 %224  ;;  %v228_v36 = vpop.xlane.xlu0 %227 }
 0x223   :  { %8693 = vrsqrt.f32 %v244_v33  ;;  %v239_v38 = vmul.f32 0.03125, %v225_v35  ;;  %v240_v39 = vmul.f32 0.03125, %v228_v36  ;;  %v9011_v35 = vmov 0.0|0.0  }
 0x224   :  { %8284 = vmatprep.subr.bf16.mxu1 %v9011_v35  ;;  %8292 = vmatprep.subr.bf16.mxu0 %v9011_v35 }
 0x225   :  { %v245_v40 = vadd.f32 1e-06, %v239_v38  ;;  %v246_v43 = vadd.f32 1e-06, %v240_v39  ;;  %v9013_v38 = vmov 0.0  }
 0x226   :  { %v231_v44 = vpop.xlane.xlu1 %230  ;;  %v234_v45 = vpop.xlane.xlu0 %233  ;;  %7551 = vmatprep.mubr.msk.f32.mxu0 %vm9012_vm1, %v9013_v38 }
 0x227   :  { %8695 = vrsqrt.f32 %v245_v40  ;;  %v241_v46 = vmul.f32 0.03125, %v231_v44  ;;  %v242_v47 = vmul.f32 0.03125, %v234_v45 }
 0x228   :  { %8697 = vrsqrt.f32 %v246_v43 }
 0x229   :  { %v247_v48 = vadd.f32 1e-06, %v241_v46  ;;  %v248_v51 = vadd.f32 1e-06, %v242_v47 }
 0x22a   :  { %v237_v52 = vpop.xlane.xlu1 %236  ;;  %v274_v58 = vpop.permute.xlu0 %273 }
 0x22b   :  { %8699 = vrsqrt.f32 %v247_v48  ;;  %v243_v53 = vmul.f32 0.03125, %v237_v52 }
 0x22c   :  { %8701 = vrsqrt.f32 %v248_v51 }
 0x22d   :  { %v8694_v54 = vpop.eup %8693  ;;  %v249_v55 = vadd.f32 1e-06, %v243_v53 }
 0x22e   :  { %v256_v57 = vmul.f32 %v8694_v54, %v9180_v56 }
 0x22f   :  { %8703 = vrsqrt.f32 %v249_v55 }
 0x230   :  { %v266_v59 = vmul.f32 %v9228_v24, %v256_v57 }
 0x231   :  { %v8696_v60 = vpop.eup %8695 }
 0x232   :  { %v8698_v61 = vpop.eup %8697  ;;  %v276_v0 = vadd.f32 %v274_v58, %v266_v59  ;;  %v257_v1 = vmul.f32 %v8696_v60, %v9188_v63 }
 0x233   :  { %v258_v2 = vmul.f32 %v8698_v61, %v9185_v62 }
 0x234   :  { %7506 = vmatprep.mubr.msk.f32.mxu1 %vm182_vm0, %v276_v0  ;;  %v267_v3 = vmul.f32 %v9228_v24, %v257_v1 }
 0x235   :  { %v8700_v4 = vpop.eup %8699  ;;  %v268_v5 = vmul.f32 %v9228_v24, %v258_v2 }
 0x236   :  { %v8702_v6 = vpop.eup %8701  ;;  %v277_v56 = vadd.f32 %v274_v58, %v267_v3  ;;  %v259_v9 = vmul.f32 %v8700_v4, %v9196_v7 }
 0x237   :  { %v278_v10 = vadd.f32 %v274_v58, %v268_v5  ;;  %v260_v11 = vmul.f32 %v8702_v6, %v9199_v8 }
 0x238   :  { %7507 = vmatmul.mubr.msk.f32.vlgmr.msra.gmra.mrb[0].mxu1 %vm182_vm0, %v277_v56  ;;  %v269_v63 = vmul.f32 %v9228_v24, %v259_v9 }
 0x239   :  { %v8704_v12 = vpop.eup %8703  ;;  %7509 = vmatprep.mubr.msk.f32.mxu1 %vm182_vm0, %v278_v10  ;;  %v270_v62 = vmul.f32 %v9228_v24, %v260_v11 }
 0x23a   :  { %v279_v13 = vadd.f32 %v274_v58, %v269_v63  ;;  %v261_v14 = vmul.f32 %v8704_v12, %v9208_v15 }
 0x23b   :  { %v280_v16 = vadd.f32 %v274_v58, %v270_v62 }
 0x23c   :  { %7510 = vmatmul.mubr.msk.f32.gmra.mrb[2].mxu1 %vm182_vm0, %v279_v13  ;;  %v271_v7 = vmul.f32 %v9228_v24, %v261_v14 }
 0x23d   :  { %7512 = vmatprep.mubr.msk.f32.mxu1 %vm182_vm0, %v280_v16 }
 0x23e   :  { %v281_v8 = vadd.f32 %v274_v58, %v271_v7 }
 0x240   :  { %7513 = vmatmul.mubr.msk.f32.gmra.mrb[4].mxu1 %vm182_vm0, %v281_v8 }
 0x241   :  { %7521 = vmatprep.mubr.msk.f32.mxu1 %vm9012_vm1, %v9013_v38 }
 0x30b   :  { %v7508_v19 = vpop.f32.mrb[0].mxu1 }
 0x30c   :  { %v9269_v15 = vadd.f32 %v7508_v19, %v9266_v18  ;;  %v370_v25 = vpop.f32.mrb[1].mxu1 }
 0x30d   :  { %v9272_v26 = vadd.f32 %v370_v25, %v9266_v18 }
 0x30e   :  { %407 = vrot.lane.b32.xlu1 %v9269_v15, %s9008_s24 }
 0x30f   :  { %v7511_v27 = vpop.f32.mrb[2].mxu1  ;;  %417 = vrot.lane.b32.xlu0 %v9272_v26, %s9009_s25  ;;  %v8523_v36 = vpack.i.bf16 %v9269_v15, %v9272_v26 }
 0x310   :  { %v9279_v23 = vadd.f32 %v7511_v27, %v9266_v18  ;;  %v380_v28 = vpop.f32.mrb[3].mxu1 }
 0x311   :  { %v9293_v32 = vadd.f32 %v380_v28, %v9266_v18 }
 0x312   :  { %405 = vrot.lane.b32.xlu1 %v9272_v26, %s9008_s24 }
 0x313   :  { %v7514_v29 = vpop.f32.mrb[4].mxu1  ;;  %411 = vrot.lane.b32.xlu0 %v9279_v23, %s9008_s24 }
 0x314   :  { %v9286_v30 = vadd.f32 %v7514_v29, %v9266_v18  ;;  %v390_v31 = vpop.f32.mrb[5].mxu1 }
 0x315   :  { %v9300_v33 = vadd.f32 %v390_v31, %v9266_v18 }
 0x316   :  { %419 = vrot.lane.b32.xlu1 %v9269_v15, %s9009_s25 }
 0x317   :  { %415 = vrot.lane.b32.xlu0 %v9286_v30, %s9008_s24  ;;  %v8528_v39 = vpack.i.bf16 %v9300_v33, %v9279_v23 }
 0x31a   :  { %409 = vrot.lane.b32.xlu1 %v9293_v32, %s9008_s24 }
 0x31b   :  { %423 = vrot.lane.b32.xlu0 %v9279_v23, %s9009_s25 }
 0x31e   :  { %413 = vrot.lane.b32.xlu1 %v9300_v33, %s9008_s24 }
 0x31f   :  { %429 = vrot.lane.b32.xlu0 %v9272_v26, %s9010_s26 }
 0x322   :  { %421 = vrot.lane.b32.xlu1 %v9293_v32, %s9009_s25 }
 0x323   :  { %427 = vrot.lane.b32.xlu0 %v9286_v30, %s9009_s25 }
 0x326   :  { %425 = vrot.lane.b32.xlu1 %v9300_v33, %s9009_s25 }
 0x327   :  { %435 = vrot.lane.b32.xlu0 %v9279_v23, %s9010_s26 }
 0x32a   :  { %431 = vrot.lane.b32.xlu1 %v9269_v15, %s9010_s26 }
 0x32b   :  { %439 = vrot.lane.b32.xlu0 %v9286_v30, %s9010_s26 }
 0x32e   :  { %433 = vrot.lane.b32.xlu1 %v9293_v32, %s9010_s26 }
 0x32f   :  { %445 = vrot.lane.b32.xlu0 %v9293_v32, %s9007_s20 }
 0x332   :  { %437 = vrot.lane.b32.xlu1 %v9300_v33, %s9010_s26 }
 0x336   :  { %8524 = vrot.lane.b32.xlu1 %v8523_v36, %s9007_s20 }
 0x33a   :  { %8529 = vrot.lane.b32.xlu1 %v8528_v39, %s9007_s20 }
 0x33e   :  { %544 = vrot.lane.b32.xlu1 %v9286_v30, %s9007_s20 }
 0x380   :  { %v9338_v40 = vpop.permute.xlu1 %407 }
 0x381   :  { %v9340_v43 = vpop.permute.xlu0 %417 }
 0x384   :  { %v9342_v44 = vpop.permute.xlu1 %405 }
 0x385   :  { %v9344_v45 = vpop.permute.xlu0 %411  ;;  %v8533_v46 = vpack.i.bf16 %v9338_v40, %v9342_v44 }
 0x387   :  { %8534 = vrot.lane.b32.xlu0 %v8533_v46, %s9007_s20 }
 0x388   :  { %v9349_v47 = vpop.permute.xlu1 %419 }
 0x389   :  { %v9351_v48 = vpop.permute.xlu0 %415  ;;  %v9361_v53 = vpack.i.bf16 %v9349_v47, %v9340_v43 }
 0x38c   :  { %v9353_v51 = vpop.permute.xlu1 %409 }
 0x38d   :  { %642 = vrot.lane.b32.xlu0 %v9353_v51, %s9007_s20  ;;  %v9357_v52 = vpop.permute.xlu0 %423 }
 0x390   :  { %v9363_v54 = vpop.permute.xlu1 %413 }
 0x391   :  { %8544 = vrot.lane.b32.xlu0 %v9361_v53, %s9007_s20  ;;  %v8538_v55 = vpack.i.bf16 %v9363_v54, %v9344_v45  ;;  %v9370_v57 = vpop.permute.xlu0 %429 }
 0x393   :  { %8539 = vrot.lane.b32.xlu1 %v8538_v55, %s9007_s20 }
 0x394   :  { %v9372_v58 = vpop.permute.xlu1 %421 }
 0x395   :  { %838 = vrot.lane.b32.xlu0 %v9372_v58, %s9007_s20  ;;  %v9384_v61 = vpop.permute.xlu0 %427 }
 0x397   :  { %740 = vrot.lane.b32.xlu1 %v9351_v48, %s9007_s20 }
 0x398   :  { %v9378_v59 = vpop.permute.xlu1 %425 }
 0x399   :  { %v9382_v60 = vpack.i.bf16 %v9378_v59, %v9357_v52  ;;  %v9398_v2 = vpop.permute.xlu0 %435 }
 0x39b   :  { %8549 = vrot.lane.b32.xlu1 %v9382_v60, %s9007_s20 }
 0x39c   :  { %v9388_v0 = vpop.permute.xlu1 %431 }
 0x39d   :  { %v9392_v1 = vpack.i.bf16 %v9388_v0, %v9370_v57  ;;  %v9410_v6 = vpop.permute.xlu0 %439 }
 0x39f   :  { %936 = vrot.lane.b32.xlu1 %v9384_v61, %s9007_s20  ;;  %8554 = vrot.lane.b32.xlu0 %v9392_v1, %s9007_s20 }
 0x3a0   :  { %v9400_v3 = vpop.permute.xlu1 %433 }
 0x3a1   :  { %v446_v14 = vpop.permute.xlu0 %445 }
 0x3a3   :  { %1034 = vrot.lane.b32.xlu0 %v9400_v3, %s9007_s20 }
 0x3a4   :  { %v9404_v4 = vpop.permute.xlu1 %437 }
 0x3a5   :  { %v9408_v5 = vpack.i.bf16 %v9404_v4, %v9398_v2 }
 0x3a7   :  { %1132 = vrot.lane.b32.xlu0 %v9410_v6, %s9007_s20  ;;  %8559 = vrot.lane.b32.xlu1 %v9408_v5, %s9007_s20 }
 0x3a8   :  { %v8525_v56 = vpop.permute.xlu1 %8524 }
 0x3a9   :  { %v8527_v9 = vunpack.i.h.bf16 %v8525_v56  ;;  %v8526_v10 = vunpack.i.l.bf16 %v8525_v56 }
 0x3ab   :  { %v8285_v63 = vpack.c.bf16 %v8527_v9, %v8526_v10  ;;  %8569 = vrot.lane.b32.xlu0 %v8528_v39, %s9014_s27  ;;  %8564 = vrot.lane.b32.xlu1 %v8523_v36, %s9014_s27 }
 0x3ac   :  { %v8530_v12 = vpop.permute.xlu1 %8529 }
 0x3ad   :  { %8287 = vmatpush3.bf16.xpose.msk.msra.mxu1 %vm9418_vm3, %v8285_v63  ;;  %v8532_v62 = vunpack.i.h.bf16 %v8530_v12  ;;  %v8531_v13 = vunpack.i.l.bf16 %v8530_v12 }
 0x3ae   :  { %7519 = vmatprep.subr.mxu1 %v9013_v38 }
 0x3af   :  { %8574 = vrot.lane.b32.xlu0 %v8533_v46, %s9014_s27  ;;  %1543 = vrot.lane.b32.xlu1 %v9293_v32, %s9014_s27  ;;  %v8289_v16 = vpack.c.bf16 %v8532_v62, %v8531_v13 }
 0x3b0   :  { %v545_v7 = vpop.permute.xlu1 %544 }
 0x3b3   :  { %1739 = vrot.lane.b32.xlu0 %v9353_v51, %s9014_s27  ;;  %1641 = vrot.lane.b32.xlu1 %v9286_v30, %s9014_s27 }
 0x3b5   :  { %7520 = vmatpush3.xpose.msk.msra.mxu1 %vm447_vm2, %v446_v14 }
 0x3b6   :  { %8288 = vmatprep.subr.bf16.mxu1 %v9011_v35 }
 0x3b7   :  { %1837 = vrot.lane.b32.xlu1 %v9351_v48, %s9014_s27 }
 0x3b8   :  { %7522 = vmatmul.mubr.msk.f32.vlgmr.msra.gmra.mrb[6].mxu1 %vm447_vm2, %v9272_v26 }
 0x3b9   :  { %8291 = vmatpush3.bf16.xpose.msk.msra.mxu1 %vm9418_vm3, %v8289_v16  ;;  %7524 = vmatprep.mubr.msk.f32.mxu1 %vm9012_vm1, %v9013_v38 }
 0x3ba   :  { %7534 = vmatprep.subr.mxu1 %v9013_v38 }
 0x3bb   :  { %8579 = vrot.lane.b32.xlu1 %v8538_v55, %s9014_s27 }
 0x3bc   :  { %7525 = vmatmul.mubr.msk.f32.gmra.mrb[8].mxu1 %vm447_vm2, %v9269_v15 }
 0x3bd   :  { %7527 = vmatprep.mubr.msk.f32.mxu1 %vm9012_vm1, %v9013_v38 }
 0x3c0   :  { %7528 = vmatmul.mubr.msk.f32.gmra.mrb[10].mxu1 %vm447_vm2, %v9293_v32 }
 0x3c1   :  { %7535 = vmatpush3.xpose.msk.msra.mxu1 %vm447_vm2, %v545_v7  ;;  %7536 = vmatprep.mubr.msk.f32.mxu1 %vm9012_vm1, %v9013_v38 }
 0x3c2   :  { %8296 = vmatprep.subr.bf16.mxu1 %v9011_v35 }
 0x3c4   :  { %7537 = vmatmul.mubr.msk.f32.vlgmr.msra.gmra.mrb[12].mxu1 %vm447_vm2, %v9279_v23 }
 0x3c5   :  { %7539 = vmatprep.mubr.msk.f32.mxu1 %vm9012_vm1, %v9013_v38 }
 0x3c8   :  { %7540 = vmatmul.mubr.msk.f32.gmra.mrb[14].mxu1 %vm447_vm2, %v9300_v33 }
 0x3c9   :  { %7542 = vmatprep.mubr.msk.f32.mxu1 %vm9012_vm1, %v9013_v38 }
 0x3cc   :  { %7543 = vmatmul.mubr.msk.f32.gmra.mrb[16].mxu1 %vm447_vm2, %v9286_v30 }
 0x3cd   :  { %7566 = vmatprep.mubr.msk.f32.mxu1 %vm9012_vm1, %v9013_v38 }
 0x3f9   :  { %v8535_v8 = vpop.permute.xlu0 %8534 }
 0x3fa   :  { %v8537_v19 = vunpack.i.h.bf16 %v8535_v8  ;;  %v8536_v15 = vunpack.i.l.bf16 %v8535_v8 }
 0x3fc   :  { %v8293_v25 = vpack.c.bf16 %v8537_v19, %v8536_v15 }
 0x3fe   :  { %8295 = vmatpush3.bf16.xpose.msk.msra.mxu0 %vm9418_vm3, %v8293_v25 }
 0x3ff   :  { %v643_v26 = vpop.permute.xlu0 %642  ;;  %7549 = vmatprep.subr.mxu0 %v9013_v38 }
 0x403   :  { %v8545_v27 = vpop.permute.xlu0 %8544 }
 0x404   :  { %v8547_v23 = vunpack.i.h.bf16 %v8545_v27  ;;  %v8546_v28 = vunpack.i.l.bf16 %v8545_v27 }
 0x405   :  { %v8540_v29 = vpop.permute.xlu1 %8539 }
 0x406   :  { %v8542_v31 = vunpack.i.h.bf16 %v8540_v29  ;;  %v8541_v32 = vunpack.i.l.bf16 %v8540_v29  ;;  %7550 = vmatpush3.xpose.msk.msra.mxu0 %vm447_vm2, %v643_v26  ;;  %v8301_v30 = vpack.c.bf16 %v8547_v23, %v8546_v28 }
 0x407   :  { %8300 = vmatprep.subr.bf16.mxu0 %v9011_v35  ;;  %v839_v39 = vpop.permute.xlu0 %838 }
 0x408   :  { %v8297_v33 = vpack.c.bf16 %v8542_v31, %v8541_v32 }
 0x409   :  { %7552 = vmatmul.mubr.msk.f32.vlgmr.msra.gmra.mrb[6].mxu0 %vm447_vm2, %v9342_v44  ;;  %v741_v36 = vpop.permute.xlu1 %740 }
 0x40a   :  { %8299 = vmatpush3.bf16.xpose.msk.msra.mxu1 %vm9418_vm3, %v8297_v33  ;;  %8303 = vmatpush3.bf16.xpose.msk.msra.mxu0 %vm9418_vm3, %v8301_v30 }
 0x40b   :  { %7554 = vmatprep.mubr.msk.f32.mxu0 %vm9012_vm1, %v9013_v38  ;;  %7579 = vmatprep.subr.mxu0 %v9013_v38 }
 0x40c   :  { %7564 = vmatprep.subr.mxu1 %v9013_v38 }
 0x40d   :  { %7555 = vmatmul.mubr.msk.f32.gmra.mrb[8].mxu0 %vm447_vm2, %v9338_v40  ;;  %v8550_v46 = vpop.permute.xlu1 %8549 }
 0x40e   :  { %7557 = vmatprep.mubr.msk.f32.mxu0 %vm9012_vm1, %v9013_v38  ;;  %v8552_v44 = vunpack.i.h.bf16 %v8550_v46  ;;  %v8551_v55 = vunpack.i.l.bf16 %v8550_v46 }
 0x410   :  { %v8305_v40 = vpack.c.bf16 %v8552_v44, %v8551_v55 }
 0x411   :  { %7558 = vmatmul.mubr.msk.f32.gmra.mrb[10].mxu0 %vm447_vm2, %v9353_v51  ;;  %v8555_v56 = vpop.permute.xlu0 %8554  ;;  %v937_v12 = vpop.permute.xlu1 %936 }
 0x412   :  { %v8557_v9 = vunpack.i.h.bf16 %v8555_v56  ;;  %v8556_v10 = vunpack.i.l.bf16 %v8555_v56  ;;  %7565 = vmatpush3.xpose.msk.msra.mxu1 %vm447_vm2, %v741_v36  ;;  %7580 = vmatpush3.xpose.msk.msra.mxu0 %vm447_vm2, %v839_v39 }
 0x413   :  { %7581 = vmatprep.mubr.msk.f32.mxu0 %vm9012_vm1, %v9013_v38  ;;  %8308 = vmatprep.subr.bf16.mxu0 %v9011_v35 }
 0x414   :  { %v8309_v63 = vpack.c.bf16 %v8557_v9, %v8556_v10  ;;  %8304 = vmatprep.subr.bf16.mxu1 %v9011_v35 }
 0x415   :  { %7582 = vmatmul.mubr.msk.f32.vlgmr.msra.gmra.mrb[12].mxu0 %vm447_vm2, %v9340_v43  ;;  %7567 = vmatmul.mubr.msk.f32.vlgmr.msra.gmra.mrb[18].mxu1 %vm447_vm2, %v9344_v45  ;;  %v1035_v43 = vpop.permute.xlu0 %1034 }
 0x416   :  { %8307 = vmatpush3.bf16.xpose.msk.msra.mxu1 %vm9418_vm3, %v8305_v40  ;;  %8311 = vmatpush3.bf16.xpose.msk.msra.mxu0 %vm9418_vm3, %v8309_v63 }
 0x417   :  { %7569 = vmatprep.mubr.msk.f32.mxu1 %vm9012_vm1, %v9013_v38  ;;  %7584 = vmatprep.mubr.msk.f32.mxu0 %vm9012_vm1, %v9013_v38 }
 0x418   :  { %7609 = vmatprep.subr.mxu0 %v9013_v38  ;;  %7594 = vmatprep.subr.mxu1 %v9013_v38 }
 0x419   :  { %7585 = vmatmul.mubr.msk.f32.gmra.mrb[14].mxu0 %vm447_vm2, %v9349_v47  ;;  %v8560_v45 = vpop.permute.xlu1 %8559  ;;  %7570 = vmatmul.mubr.msk.f32.gmra.mrb[20].mxu1 %vm447_vm2, %v9363_v54  ;;  %v1133_v47 = vpop.permute.xlu0 %1132 }
 0x41a   :  { %7572 = vmatprep.mubr.msk.f32.mxu1 %vm9012_vm1, %v9013_v38  ;;  %7587 = vmatprep.mubr.msk.f32.mxu0 %vm9012_vm1, %v9013_v38  ;;  %v8562_v51 = vunpack.i.h.bf16 %v8560_v45  ;;  %v8561_v62 = vunpack.i.l.bf16 %v8560_v45 }
 0x41c   :  { %v8313_v54 = vpack.c.bf16 %v8562_v51, %v8561_v62 }
 0x41d   :  { %7588 = vmatmul.mubr.msk.f32.gmra.mrb[16].mxu0 %vm447_vm2, %v9372_v58  ;;  %7573 = vmatmul.mubr.msk.f32.gmra.mrb[22].mxu1 %vm447_vm2, %v9351_v48  ;;  %v8570_v48 = vpop.permute.xlu0 %8569 }
 0x41e   :  { %7595 = vmatpush3.xpose.msk.msra.mxu1 %vm447_vm2, %v937_v12  ;;  %7610 = vmatpush3.xpose.msk.msra.mxu0 %vm447_vm2, %v1035_v43  ;;  %v8571_v13 = vunpack.i.l.bf16 %v8570_v48 }
 0x41f   :  { %7596 = vmatprep.mubr.msk.f32.mxu1 %vm9012_vm1, %v9013_v38  ;;  %7611 = vmatprep.mubr.msk.f32.mxu0 %vm9012_vm1, %v9013_v38 }
 0x420   :  { %8312 = vmatprep.subr.bf16.mxu0 %v9011_v35  ;;  %8500 = vmatprep.subr.bf16.mxu1 %v9011_v35 }
 0x421   :  { %7612 = vmatmul.mubr.msk.f32.vlgmr.msra.gmra.mrb[18].mxu0 %vm447_vm2, %v9370_v57  ;;  %7597 = vmatmul.mubr.msk.f32.vlgmr.msra.gmra.mrb[24].mxu1 %vm447_vm2, %v9357_v52  ;;  %v8565_v57 = vpop.permute.xlu1 %8564  ;;  %v8572_v52 = vunpack.i.h.bf16 %v8570_v48 }
 0x422   :  { %8315 = vmatpush3.bf16.xpose.msk.msra.mxu0 %vm9418_vm3, %v8313_v54  ;;  %8502 = vmatpush3.bf16.xpose.msk.msra.mxu1 %vm9418_vm3, %v8313_v54  ;;  %v8567_v14 = vunpack.i.h.bf16 %v8565_v57  ;;  %v8566_v16 = vunpack.i.l.bf16 %v8565_v57 }
 0x423   :  { %7599 = vmatprep.mubr.msk.f32.mxu1 %vm9012_vm1, %v9013_v38  ;;  %7614 = vmatprep.mubr.msk.f32.mxu0 %vm9012_vm1, %v9013_v38 }
 0x424   :  { %7624 = vmatprep.subr.mxu0 %v9013_v38  ;;  %8501 = vmatprep.subr.mxu1 %v9013_v38  ;;  %v8317_v7 = vpack.c.bf16 %v8567_v14, %v8566_v16 }
 0x425   :  { %7615 = vmatmul.mubr.msk.f32.gmra.mrb[20].mxu0 %vm447_vm2, %v9388_v0  ;;  %7600 = vmatmul.mubr.msk.f32.gmra.mrb[26].mxu1 %vm447_vm2, %v9378_v59  ;;  %v1544_v59 = vpop.permute.xlu1 %1543  ;;  %v8320_v0 = vpack.c.bf16 %v8572_v52, %v8571_v13 }
 0x426   :  { %7602 = vmatprep.mubr.msk.f32.mxu1 %vm9012_vm1, %v9013_v38  ;;  %7617 = vmatprep.mubr.msk.f32.mxu0 %vm9012_vm1, %v9013_v38 }
 0x429   :  { %7618 = vmatmul.mubr.msk.f32.gmra.mrb[22].mxu0 %vm447_vm2, %v9400_v3  ;;  %7603 = vmatmul.mubr.msk.f32.gmra.mrb[28].mxu1 %vm447_vm2, %v9384_v61  ;;  %v1642_v8 = vpop.permute.xlu1 %1641 }
 0x42a   :  { %7625 = vmatpush3.xpose.msk.msra.mxu0 %vm447_vm2, %v1133_v47  ;;  %8503 = vmatpush3.xpose.msk.msra.mxu1 %vm447_vm2, %v1133_v47 }
 0x42b   :  { %7626 = vmatprep.mubr.msk.f32.mxu0 %vm9012_vm1, %v9013_v38  ;;  %7629 = vmatprep.mubr.msk.f32.mxu1 %vm9012_vm1, %v9013_v38 }
 0x42c   :  { %8316 = vmatprep.subr.bf16.mxu0 %v9011_v35  ;;  %8319 = vmatprep.subr.bf16.mxu1 %v9011_v35 }
 0x42d   :  { %7627 = vmatmul.mubr.msk.f32.vlgmr.msra.gmra.mrb[24].mxu0 %vm447_vm2, %v9398_v2  ;;  %7630 = vmatmul.mubr.msk.f32.vlgmr.msra.gmra.mrb[30].mxu1 %vm447_vm2, %v9404_v4  ;;  %v154_v2 = vand.u32 127, %v153_v20 }
 0x42e   :  { %8318 = vmatpush3.bf16.msra.mxu0 %v8317_v7  ;;  %8321 = vmatpush3.bf16.msra.mxu1 %v8320_v0 }
 0x42f   :  { %7632 = vmatprep.mubr.msk.f32.mxu1 %vm9012_vm1, %v9013_v38  ;;  %7639 = vmatprep.subr.mxu0 %v9013_v38  ;;  %vm155_vm4 = vcmp.ge.s32.totalorder %v154_v2, 17 }
 0x430   :  { %7654 = vmatprep.subr.mxu1 %v9013_v38  ;;  %7641 = vmatprep.mubr.msk.f32.mxu0 %vm9012_vm1, %v9013_v38  ;;  %v9581_v4 = vsel %vm155_vm4, -1e+30, %v9013_v38  ;;  %vm6765_vm4 = vcmask 523719  }
 0x431   :  { %7633 = vmatmul.mubr.msk.f32.gmra.mrb[32].mxu1 %vm447_vm2, %v9410_v6 }
 0x432   :  { %7640 = vmatpush3.msra.mxu0 %v1544_v59  ;;  %7655 = vmatpush3.msra.mxu1 %v1642_v8 }
 0x433   :  { %8322 = vmatprep.subr.bf16.mxu0 %v9011_v35  ;;  %7656 = vmatprep.mubr.msk.f32.mxu1 %vm9012_vm1, %v9013_v38 }
 0x434   :  { %8325 = vmatprep.subr.bf16.mxu1 %v9011_v35 }
 0x48b   :  { %v526_v19 = vpop.f32.mrb[6].mxu1 }
 0x48c   :  { %v1226_v15 = vmul.f32 0.35355338, %v526_v19  ;;  %v7523_v25 = vpop.f32.mrb[7].mxu1 }
 0x48e   :  { %v9584_v26 = vadd.f32 %v1226_v15, %v9581_v4 }
 0x48f   :  { %v531_v27 = vpop.f32.mrb[8].mxu1 }
 0x490   :  { %v1227_v23 = vmul.f32 0.35355338, %v531_v27  ;;  %v7526_v28 = vpop.f32.mrb[9].mxu1  ;;  %v1275_v29 = vsel %vm1274_vm5, %v9584_v26, -inf }
 0x491   :  { %1276 = vmax.xlane.f32.xlu1 %v1275_v29 }
 0x492   :  { %v9589_v20 = vadd.f32 %v1227_v23, %v9581_v4 }
 0x493   :  { %v536_v31 = vpop.f32.mrb[10].mxu1 }
 0x494   :  { %v1228_v32 = vmul.f32 0.35355338, %v536_v31  ;;  %v7529_v30 = vpop.f32.mrb[11].mxu1  ;;  %v1278_v33 = vsel %vm1274_vm5, %v9589_v20, -inf }
 0x495   :  { %1279 = vmax.xlane.f32.xlu0 %v1278_v33 }
 0x496   :  { %v9594_v36 = vadd.f32 %v1228_v32, %v9581_v4 }
 0x497   :  { %v624_v39 = vpop.f32.mrb[12].mxu1 }
 0x498   :  { %v1229_v46 = vmul.f32 0.35355338, %v624_v39  ;;  %v7538_v44 = vpop.f32.mrb[13].mxu1  ;;  %v1281_v55 = vsel %vm1274_vm5, %v9594_v36, -inf }
 0x499   :  { %1282 = vmax.xlane.f32.xlu0 %v1281_v55 }
 0x49a   :  { %v9599_v56 = vadd.f32 %v1229_v46, %v9581_v4 }
 0x49b   :  { %v629_v9 = vpop.f32.mrb[14].mxu1 }
 0x49c   :  { %v1230_v10 = vmul.f32 0.35355338, %v629_v9  ;;  %v7541_v40 = vpop.f32.mrb[15].mxu1  ;;  %v1284_v63 = vsel %vm1274_vm5, %v9599_v56, -inf }
 0x49d   :  { %1285 = vmax.xlane.f32.xlu0 %v1284_v63 }
 0x49e   :  { %v9604_v12 = vadd.f32 %v1230_v10, %v9581_v4 }
 0x49f   :  { %v634_v43 = vpop.f32.mrb[16].mxu1 }
 0x4a0   :  { %v1231_v45 = vmul.f32 0.35355338, %v634_v43  ;;  %v7544_v51 = vpop.f32.mrb[17].mxu1  ;;  %v1287_v62 = vsel %vm1274_vm5, %v9604_v12, -inf }
 0x4a1   :  { %1288 = vmax.xlane.f32.xlu1 %v1287_v62 }
 0x4a2   :  { %v9609_v47 = vadd.f32 %v1231_v45, %v9581_v4 }
 0x4a4   :  { %v1290_v54 = vsel %vm1274_vm5, %v9609_v47, -inf }
 0x4a5   :  { %1291 = vmax.xlane.f32.xlu1 %v1290_v54 }
 0x4dc   :  { %v722_v48 = vpop.f32.mrb[6].mxu0 }
 0x4dd   :  { %v1232_v57 = vmul.f32 0.35355338, %v722_v48  ;;  %v7553_v52 = vpop.f32.mrb[7].mxu0 }
 0x4df   :  { %v9614_v13 = vadd.f32 %v1232_v57, %v9581_v4 }
 0x4e0   :  { %v727_v14 = vpop.f32.mrb[8].mxu0 }
 0x4e1   :  { %v1233_v16 = vmul.f32 0.35355338, %v727_v14  ;;  %v7556_v59 = vpop.f32.mrb[9].mxu0  ;;  %v1293_v0 = vsel %vm1274_vm5, %v9614_v13, -inf }
 0x4e2   :  { %1294 = vmax.xlane.f32.xlu0 %v1293_v0 }
 0x4e3   :  { %v9619_v7 = vadd.f32 %v1233_v16, %v9581_v4 }
 0x4e4   :  { %v732_v8 = vpop.f32.mrb[10].mxu0 }
 0x4e5   :  { %v1234_v2 = vmul.f32 0.35355338, %v732_v8  ;;  %v7559_v19 = vpop.f32.mrb[11].mxu0  ;;  %v1296_v15 = vsel %vm1274_vm5, %v9619_v7, -inf }
 0x4e6   :  { %1297 = vmax.xlane.f32.xlu0 %v1296_v15 }
 0x4e7   :  { %v9624_v25 = vadd.f32 %v1234_v2, %v9581_v4 }
 0x4e8   :  { %v820_v27 = vpop.f32.mrb[18].mxu1  ;;  %v918_v23 = vpop.f32.mrb[12].mxu0 }
 0x4e9   :  { %v1235_v28 = vmul.f32 0.35355338, %v820_v27  ;;  %v1238_v29 = vmul.f32 0.35355338, %v918_v23  ;;  %v7568_v31 = vpop.f32.mrb[19].mxu1  ;;  %v7583_v32 = vpop.f32.mrb[13].mxu0 }
 0x4ea   :  { %v1299_v30 = vsel %vm1274_vm5, %v9624_v25, -inf }
 0x4eb   :  { %1300 = vmax.xlane.f32.xlu0 %v1299_v30  ;;  %v9629_v33 = vadd.f32 %v1238_v29, %v9581_v4  ;;  %v9632_v39 = vadd.f32 %v1235_v28, %v9581_v4 }
 0x4ec   :  { %v825_v46 = vpop.f32.mrb[20].mxu1  ;;  %v923_v44 = vpop.f32.mrb[14].mxu0 }
 0x4ed   :  { %v1236_v55 = vmul.f32 0.35355338, %v825_v46  ;;  %v1239_v9 = vmul.f32 0.35355338, %v923_v44  ;;  %v7571_v10 = vpop.f32.mrb[21].mxu1  ;;  %v7586_v40 = vpop.f32.mrb[15].mxu0 }
 0x4ee   :  { %v1311_v63 = vsel %vm1274_vm5, %v9629_v33, -inf  ;;  %v1302_v43 = vsel %vm1274_vm5, %v9632_v39, -inf }
 0x4ef   :  { %1312 = vmax.xlane.f32.xlu0 %v1311_v63  ;;  %1303 = vmax.xlane.f32.xlu1 %v1302_v43  ;;  %v9639_v45 = vadd.f32 %v1239_v9, %v9581_v4  ;;  %v9642_v51 = vadd.f32 %v1236_v55, %v9581_v4 }
 0x4f0   :  { %v830_v62 = vpop.f32.mrb[22].mxu1  ;;  %v928_v54 = vpop.f32.mrb[16].mxu0 }
 0x4f1   :  { %v1237_v48 = vmul.f32 0.35355338, %v830_v62  ;;  %v1240_v57 = vmul.f32 0.35355338, %v928_v54  ;;  %v7574_v52 = vpop.f32.mrb[23].mxu1  ;;  %v7589_v14 = vpop.f32.mrb[17].mxu0 }
 0x4f2   :  { %v1314_v16 = vsel %vm1274_vm5, %v9639_v45, -inf  ;;  %v1305_v59 = vsel %vm1274_vm5, %v9642_v51, -inf }
 0x4f3   :  { %1315 = vmax.xlane.f32.xlu0 %v1314_v16  ;;  %1306 = vmax.xlane.f32.xlu1 %v1305_v59  ;;  %v9649_v0 = vadd.f32 %v1240_v57, %v9581_v4  ;;  %v9652_v8 = vadd.f32 %v1237_v48, %v9581_v4 }
 0x4f4   :  { %v1016_v2 = vpop.f32.mrb[24].mxu1  ;;  %v1114_v19 = vpop.f32.mrb[18].mxu0 }
 0x4f5   :  { %v1241_v15 = vmul.f32 0.35355338, %v1016_v2  ;;  %v1244_v27 = vmul.f32 0.35355338, %v1114_v19  ;;  %v7598_v23 = vpop.f32.mrb[25].mxu1  ;;  %v7613_v28 = vpop.f32.mrb[19].mxu0 }
 0x4f6   :  { %v1317_v29 = vsel %vm1274_vm5, %v9649_v0, -inf  ;;  %v1308_v31 = vsel %vm1274_vm5, %v9652_v8, -inf }
 0x4f7   :  { %1318 = vmax.xlane.f32.xlu0 %v1317_v29  ;;  %1309 = vmax.xlane.f32.xlu1 %v1308_v31  ;;  %v9659_v32 = vadd.f32 %v1244_v27, %v9581_v4  ;;  %v9662_v30 = vadd.f32 %v1241_v15, %v9581_v4 }
 0x4f8   :  { %v1021_v46 = vpop.f32.mrb[26].mxu1  ;;  %v1119_v44 = vpop.f32.mrb[20].mxu0 }
 0x4f9   :  { %v1242_v55 = vmul.f32 0.35355338, %v1021_v46  ;;  %v1245_v9 = vmul.f32 0.35355338, %v1119_v44  ;;  %v7601_v10 = vpop.f32.mrb[27].mxu1  ;;  %v7616_v40 = vpop.f32.mrb[21].mxu0 }
 0x4fa   :  { %v1329_v63 = vsel %vm1274_vm5, %v9659_v32, -inf  ;;  %v1320_v43 = vsel %vm1274_vm5, %v9662_v30, -inf }
 0x4fb   :  { %1330 = vmax.xlane.f32.xlu0 %v1329_v63  ;;  %1321 = vmax.xlane.f32.xlu1 %v1320_v43  ;;  %v9669_v62 = vadd.f32 %v1245_v9, %v9581_v4  ;;  %v9672_v54 = vadd.f32 %v1242_v55, %v9581_v4 }
 0x4fc   :  { %v1026_v48 = vpop.f32.mrb[28].mxu1  ;;  %v1124_v57 = vpop.f32.mrb[22].mxu0 }
 0x4fd   :  { %v1243_v52 = vmul.f32 0.35355338, %v1026_v48  ;;  %v1246_v14 = vmul.f32 0.35355338, %v1124_v57  ;;  %v7604_v16 = vpop.f32.mrb[29].mxu1  ;;  %v7619_v59 = vpop.f32.mrb[23].mxu0 }
 0x4fe   :  { %v1332_v2 = vsel %vm1274_vm5, %v9669_v62, -inf  ;;  %v1323_v19 = vsel %vm1274_vm5, %v9672_v54, -inf  ;;  %v9703_v59 = vpop.permute.xlu0 %8574 }
 0x4ff   :  { %1333 = vmax.xlane.f32.xlu0 %v1332_v2  ;;  %1324 = vmax.xlane.f32.xlu1 %v1323_v19  ;;  %v9679_v15 = vadd.f32 %v1246_v14, %v9581_v4  ;;  %v9682_v27 = vadd.f32 %v1243_v52, %v9581_v4  ;;  %v9707_v2 = vpop.permute.xlu1 %1837 }
 0x500   :  { %v1212_v23 = vpop.f32.mrb[24].mxu0  ;;  %v1217_v28 = vpop.f32.mrb[30].mxu1 }
 0x501   :  { %v1248_v29 = vmul.f32 0.35355338, %v1217_v28  ;;  %v7628_v31 = vpop.f32.mrb[25].mxu0  ;;  %v7631_v46 = vpop.f32.mrb[31].mxu1  ;;  %v1247_v44 = vmul.f32 0.35355338, %v1212_v23 }
 0x502   :  { %v1335_v55 = vsel %vm1274_vm5, %v9679_v15, -inf  ;;  %v1326_v9 = vsel %vm1274_vm5, %v9682_v27, -inf  ;;  %v9709_v19 = vpop.permute.xlu0 %1739 }
 0x503   :  { %1336 = vmax.xlane.f32.xlu0 %v1335_v55  ;;  %1327 = vmax.xlane.f32.xlu1 %v1326_v9  ;;  %v9689_v10 = vadd.f32 %v1248_v29, %v9581_v4  ;;  %v9694_v57 = vadd.f32 %v1247_v44, %v9581_v4  ;;  %v9713_v28 = vpop.permute.xlu1 %8579 }
 0x504   :  { %v1222_v40 = vpop.f32.mrb[32].mxu1 }
 0x505   :  { %v1249_v63 = vmul.f32 0.35355338, %v1222_v40  ;;  %v7634_v43 = vpop.f32.mrb[33].mxu1  ;;  %v1341_v48 = vsel %vm1274_vm5, %v9689_v10, -inf  ;;  %v1338_v16 = vsel %vm1274_vm5, %v9694_v57, -inf }
 0x507   :  { %1342 = vmax.xlane.f32.xlu1 %v1341_v48  ;;  %v9697_v52 = vadd.f32 %v1249_v63, %v9581_v4 }
 0x509   :  { %v1344_v14 = vsel %vm1274_vm5, %v9697_v52, -inf }
 0x50a   :  { %1345 = vmax.xlane.f32.xlu0 %v1344_v14 }
 0x50b   :  { %1339 = vmax.xlane.f32.xlu1 %v1338_v16 }
 0x51c   :  { %8589 = vrot.lane.b32.xlu1 %v9382_v60, %s9014_s27 }
 0x51e   :  { %v1277_v31 = vpop.xlane.xlu1 %1276 }
 0x51f   :  { %v1347_v44 = vsub.f32 %v9584_v26, %v1277_v31 }
 0x520   :  { %8584 = vrot.lane.b32.xlu0 %v9361_v53, %s9014_s27 }
 0x521   :  { %v1371_v40 = vmul.f32 1.442695, %v1347_v44 }
 0x522   :  { %v1280_v23 = vpop.xlane.xlu0 %1279 }
 0x523   :  { %v1348_v46 = vsub.f32 %v9589_v20, %v1280_v23 }
 0x525   :  { %v1373_v9 = vmul.f32 1.442695, %v1348_v46 }
 0x526   :  { %v1283_v29 = vpop.xlane.xlu0 %1282 }
 0x527   :  { %v1349_v60 = vsub.f32 %v9594_v36, %v1283_v29  ;;  %8705 = vpow2.f32 %v1373_v9 }
 0x528   :  { %8707 = vpow2.f32 %v1371_v40 }
 0x529   :  { %v1375_v48 = vmul.f32 1.442695, %v1349_v60 }
 0x52a   :  { %v1286_v55 = vpop.xlane.xlu0 %1285 }
 0x52b   :  { %v1350_v63 = vsub.f32 %v9599_v56, %v1286_v55  ;;  %8709 = vpow2.f32 %v1375_v48 }
 0x52d   :  { %v1377_v53 = vmul.f32 1.442695, %v1350_v63 }
 0x52e   :  { %v1289_v43 = vpop.xlane.xlu1 %1288 }
 0x52f   :  { %v1351_v14 = vsub.f32 %v9604_v12, %v1289_v43  ;;  %8711 = vpow2.f32 %v1377_v53 }
 0x531   :  { %v1379_v20 = vmul.f32 1.442695, %v1351_v14  ;;  %v9721_v31 = vpop.eup %8705 }
 0x532   :  { %v1292_v16 = vpop.xlane.xlu1 %1291  ;;  %v9723_v36 = vpop.eup %8707  ;;  %v1422_v56 = vsel %vm1274_vm5, %v9721_v31, 0.0 }
 0x533   :  { %v1352_v26 = vsub.f32 %v9609_v47, %v1292_v16  ;;  %8713 = vpow2.f32 %v1379_v20  ;;  %v1419_v12 = vsel %vm1274_vm5, %v9723_v36, 0.0 }
 0x535   :  { %v1381_v23 = vmul.f32 1.442695, %v1352_v26  ;;  %v9727_v29 = vpop.eup %8709 }
 0x536   :  { %v1425_v47 = vsel %vm1274_vm5, %v9727_v29, 0.0 }
 0x537   :  { %8715 = vpow2.f32 %v1381_v23 }
 0x539   :  { %v9731_v46 = vpop.eup %8711 }
 0x53a   :  { %v1428_v44 = vsel %vm1274_vm5, %v9731_v46, 0.0 }
 0x53d   :  { %v9737_v55 = vpop.eup %8713 }
 0x53e   :  { %v1431_v9 = vsel %vm1274_vm5, %v9737_v55, 0.0 }
 0x53f   :  { %1423 = vadd.xlane.f32.xlu0 %v1422_v56 }
 0x540   :  { %1420 = vadd.xlane.f32.xlu1 %v1419_v12 }
 0x541   :  { %v9741_v60 = vpop.eup %8715 }
 0x542   :  { %v1434_v40 = vsel %vm1274_vm5, %v9741_v60, 0.0 }
 0x543   :  { %1426 = vadd.xlane.f32.xlu0 %v1425_v47 }
 0x544   :  { %1429 = vadd.xlane.f32.xlu1 %v1428_v44 }
 0x548   :  { %1432 = vadd.xlane.f32.xlu1 %v1431_v9 }
 0x54c   :  { %1435 = vadd.xlane.f32.xlu1 %v1434_v40 }
 0x56f   :  { %v1295_v63 = vpop.xlane.xlu0 %1294 }
 0x570   :  { %v1353_v43 = vsub.f32 %v9614_v13, %v1295_v63 }
 0x572   :  { %v1383_v48 = vmul.f32 1.442695, %v1353_v43 }
 0x573   :  { %v1298_v53 = vpop.xlane.xlu0 %1297 }
 0x574   :  { %8717 = vpow2.f32 %v1383_v48  ;;  %v1354_v14 = vsub.f32 %v9619_v7, %v1298_v53 }
 0x576   :  { %v1385_v16 = vmul.f32 1.442695, %v1354_v14 }
 0x578   :  { %8719 = vpow2.f32 %v1385_v16  ;;  %v1301_v20 = vpop.xlane.xlu0 %1300 }
 0x579   :  { %v1355_v26 = vsub.f32 %v9624_v25, %v1301_v20 }
 0x57b   :  { %v1387_v23 = vmul.f32 1.442695, %v1355_v26 }
 0x57c   :  { %v1313_v56 = vpop.xlane.xlu0 %1312  ;;  %v1304_v12 = vpop.xlane.xlu1 %1303 }
 0x57d   :  { %8721 = vpow2.f32 %v1387_v23  ;;  %v1356_v47 = vsub.f32 %v9632_v39, %v1304_v12  ;;  %v1359_v40 = vsub.f32 %v9629_v33, %v1313_v56 }
 0x57e   :  { %v9749_v44 = vpop.eup %8717 }
 0x57f   :  { %v1389_v9 = vmul.f32 1.442695, %v1356_v47  ;;  %v1437_v13 = vsel %vm1274_vm5, %v9749_v44, 0.0  ;;  %v1395_v16 = vmul.f32 1.442695, %v1359_v40 }
 0x580   :  { %v1316_v7 = vpop.xlane.xlu0 %1315  ;;  %v1307_v63 = vpop.xlane.xlu1 %1306  ;;  %1438 = vadd.xlane.f32.xlu0 %v1437_v13 }
 0x581   :  { %v1360_v43 = vsub.f32 %v9639_v45, %v1316_v7  ;;  %v1357_v25 = vsub.f32 %v9642_v51, %v1307_v63  ;;  %8723 = vpow2.f32 %v1389_v9 }
 0x582   :  { %v9756_v48 = vpop.eup %8719 }
 0x583   :  { %v1397_v53 = vmul.f32 1.442695, %v1360_v43  ;;  %v1391_v39 = vmul.f32 1.442695, %v1357_v25  ;;  %v1440_v14 = vsel %vm1274_vm5, %v9756_v48, 0.0 }
 0x584   :  { %v1319_v20 = vpop.xlane.xlu0 %1318  ;;  %v1310_v26 = vpop.xlane.xlu1 %1309  ;;  %1441 = vadd.xlane.f32.xlu0 %v1440_v14 }
 0x585   :  { %8725 = vpow2.f32 %v1397_v53  ;;  %v1358_v33 = vsub.f32 %v9652_v8, %v1310_v26  ;;  %v1361_v13 = vsub.f32 %v9649_v0, %v1319_v20 }
 0x586   :  { %8727 = vpow2.f32 %v1391_v39 }
 0x587   :  { %v9761_v23 = vpop.eup %8721  ;;  %8729 = vpow2.f32 %v1395_v16  ;;  %v1393_v45 = vmul.f32 1.442695, %v1358_v33  ;;  %v1399_v14 = vmul.f32 1.442695, %v1361_v13 }
 0x588   :  { %v1331_v51 = vpop.xlane.xlu0 %1330  ;;  %v1322_v56 = vpop.xlane.xlu1 %1321  ;;  %v1443_v12 = vsel %vm1274_vm5, %v9761_v23, 0.0 }
 0x589   :  { %v1362_v47 = vsub.f32 %v9662_v30, %v1322_v56  ;;  %1444 = vadd.xlane.f32.xlu0 %v1443_v12  ;;  %8731 = vpow2.f32 %v1393_v45  ;;  %v1365_v53 = vsub.f32 %v9659_v32, %v1331_v51 }
 0x58b   :  { %v9766_v9 = vpop.eup %8723  ;;  %v1401_v40 = vmul.f32 1.442695, %v1362_v47  ;;  %v1407_v32 = vmul.f32 1.442695, %v1365_v53 }
 0x58c   :  { %v1334_v8 = vpop.xlane.xlu0 %1333  ;;  %v1325_v7 = vpop.xlane.xlu1 %1324  ;;  %v1446_v43 = vsel %vm1274_vm5, %v9766_v9, 0.0 }
 0x58d   :  { %v1363_v63 = vsub.f32 %v9672_v54, %v1325_v7  ;;  %1447 = vadd.xlane.f32.xlu1 %v1446_v43  ;;  %8733 = vpow2.f32 %v1401_v40  ;;  %v1366_v0 = vsub.f32 %v9669_v62, %v1334_v8 }
 0x58f   :  { %v9772_v25 = vpop.eup %8725  ;;  %v1403_v30 = vmul.f32 1.442695, %v1363_v63  ;;  %v1409_v62 = vmul.f32 1.442695, %v1366_v0 }
 0x590   :  { %v9775_v39 = vpop.eup %8727  ;;  %v1337_v16 = vpop.xlane.xlu0 %1336  ;;  %v1458_v54 = vsel %vm1274_vm5, %v9772_v25, 0.0 }
 0x591   :  { %v1328_v20 = vpop.xlane.xlu1 %1327  ;;  %v1449_v33 = vsel %vm1274_vm5, %v9775_v39, 0.0  ;;  %v9783_v45 = vpop.eup %8729  ;;  %8735 = vpow2.f32 %v1403_v30  ;;  %1459 = vadd.xlane.f32.xlu1 %v1458_v54  ;;  %v1367_v51 = vsub.f32 %v9679_v15, %v1337_v16 }
 0x592   :  { %v1364_v26 = vsub.f32 %v9682_v27, %v1328_v20  ;;  %1450 = vadd.xlane.f32.xlu0 %v1449_v33  ;;  %8737 = vpow2.f32 %v1399_v14  ;;  %v1455_v27 = vsel %vm1274_vm5, %v9783_v45, 0.0 }
 0x593   :  { %v9789_v13 = vpop.eup %8731  ;;  %v1411_v40 = vmul.f32 1.442695, %v1367_v51 }
 0x594   :  { %v1405_v56 = vmul.f32 1.442695, %v1364_v26  ;;  %v1452_v43 = vsel %vm1274_vm5, %v9789_v13, 0.0 }
 0x595   :  { %v1343_v12 = vpop.xlane.xlu1 %1342 }
 0x596   :  { %v1369_v47 = vsub.f32 %v9689_v10, %v1343_v12  ;;  %8739 = vpow2.f32 %v1405_v56  ;;  %1456 = vadd.xlane.f32.xlu0 %v1455_v27 }
 0x597   :  { %8741 = vpow2.f32 %v1407_v32  ;;  %v1346_v63 = vpop.xlane.xlu0 %1345  ;;  %v9794_v53 = vpop.eup %8733 }
 0x598   :  { %8743 = vpow2.f32 %v1409_v62  ;;  %v1415_v8 = vmul.f32 1.442695, %v1369_v47  ;;  %v1370_v14 = vsub.f32 %v9697_v52, %v1346_v63 }
 0x599   :  { %v1340_v7 = vpop.xlane.xlu1 %1339  ;;  %8745 = vpow2.f32 %v1411_v40 }
 0x59a   :  { %v1368_v15 = vsub.f32 %v9694_v57, %v1340_v7  ;;  %1453 = vadd.xlane.f32.xlu0 %v1452_v43  ;;  %8747 = vpow2.f32 %v1415_v8  ;;  %v1464_v57 = vsel %vm1274_vm5, %v9794_v53, 0.0  ;;  %v1417_v54 = vmul.f32 1.442695, %v1370_v14  ;;  %v8976_v14 = vld [vmem:[%s11278_s3 + $0x20] sm:$0xff] }
 0x59b   :  { %v9796_v10 = vpop.eup %8735  ;;  %v9843_v63 = vpop.permute.xlu0 %8584 }
 0x59c   :  { %v1413_v30 = vmul.f32 1.442695, %v1368_v15  ;;  %v1467_v0 = vsel %vm1274_vm5, %v9796_v10, 0.0  ;;  %v9803_v16 = vpop.eup %8737 }
 0x59d   :  { %1468 = vadd.xlane.f32.xlu1 %v1467_v0  ;;  %v1461_v52 = vsel %vm1274_vm5, %v9803_v16, 0.0  ;;  %v9847_v43 = vpop.permute.xlu1 %8589 }
 0x59e   :  { %1465 = vadd.xlane.f32.xlu0 %v1464_v57  ;;  %8749 = vpow2.f32 %v1413_v30  ;;  %v8577_v57 = vunpack.i.h.bf16 %v9703_v59 }
 0x59f   :  { %8751 = vpow2.f32 %v1417_v54  ;;  %v8576_v54 = vunpack.i.l.bf16 %v9703_v59 }
 0x5a0   :  { %v9805_v20 = vpop.eup %8739 }
 0x5a1   :  { %v9807_v26 = vpop.eup %8741  ;;  %v1470_v33 = vsel %vm1274_vm5, %v9805_v20, 0.0 }
 0x5a2   :  { %v9813_v32 = vpop.eup %8743  ;;  %1471 = vadd.xlane.f32.xlu1 %v1470_v33  ;;  %1462 = vadd.xlane.f32.xlu0 %v1461_v52  ;;  %v1473_v62 = vsel %vm1274_vm5, %v9807_v26, 0.0 }
 0x5a3   :  { %v9815_v51 = vpop.eup %8745  ;;  %v1476_v56 = vsel %vm1274_vm5, %v9813_v32, 0.0 }
 0x5a4   :  { %v9821_v12 = vpop.eup %8747  ;;  %v1479_v27 = vsel %vm1274_vm5, %v9815_v51, 0.0 }
 0x5a5   :  { %v1485_v47 = vsel %vm1274_vm5, %v9821_v12, 0.0 }
 0x5a6   :  { %1477 = vadd.xlane.f32.xlu1 %v1476_v56  ;;  %1474 = vadd.xlane.f32.xlu0 %v1473_v62 }
 0x5a8   :  { %v9827_v40 = vpop.eup %8749 }
 0x5a9   :  { %v1482_v8 = vsel %vm1274_vm5, %v9827_v40, 0.0  ;;  %v9831_v7 = vpop.eup %8751 }
 0x5aa   :  { %1486 = vadd.xlane.f32.xlu1 %v1485_v47  ;;  %1480 = vadd.xlane.f32.xlu0 %v1479_v27  ;;  %v1488_v15 = vsel %vm1274_vm5, %v9831_v7, 0.0  ;;  %v8323_v47 = vpack.c.bf16 %v8577_v57, %v8576_v54  ;;  %v8582_v27 = vunpack.i.h.bf16 %v9713_v28 }
 0x5ae   :  { %1483 = vadd.xlane.f32.xlu0 %v1482_v8  ;;  %v8581_v8 = vunpack.i.l.bf16 %v9713_v28 }
 0x5b2   :  { %1489 = vadd.xlane.f32.xlu0 %v1488_v15 }
 0x5bb   :  { %2033 = vrot.lane.b32.xlu1 %v9384_v61, %s9014_s27 }
 0x5bf   :  { %8594 = vrot.lane.b32.xlu1 %v9392_v1, %s9014_s27  ;;  %v8973_v1 = vld [vmem:[%s11278_s3 + $0x10] sm:$0xff] }
 0x5c3   :  { %8599 = vrot.lane.b32.xlu1 %v9408_v5, %s9014_s27 }
 0x5c7   :  { %2131 = vrot.lane.b32.xlu1 %v9400_v3, %s9014_s27  ;;  %v8974_v3 = vld [vmem:[%s11278_s3] sm:$0xff] }
 0x5c8   :  { %1935 = vrot.lane.b32.xlu0 %v9372_v58, %s9014_s27  ;;  %v8975_v58 = vld [vmem:[%s11278_s3 + $0x30] sm:$0xff] }
 0x5cb   :  { %2229 = vrot.lane.b32.xlu1 %v9410_v6, %s9014_s27 }
 0x5cc   :  { %v1424_v61 = vpop.xlane.xlu0 %1423  ;;  %2471 = vrot.lane.b32.xlu0 %v8973_v1, %s9015_s30  ;;  %v8326_v1 = vpack.c.bf16 %v8582_v27, %v8581_v8 }
 0x5cd   :  { %v1421_v5 = vpop.xlane.xlu1 %1420 }
 0x5ce   :  { %8753 = vrcp.f32 %v1421_v5 }
 0x5cf   :  { %2324 = vrot.lane.b32.xlu1 %v8974_v3, %s9015_s30  ;;  %8755 = vrcp.f32 %v1424_v61  ;;  %v8586_v3 = vunpack.i.l.bf16 %v9843_v63 }
 0x5d0   :  { %2765 = vrot.lane.b32.xlu0 %v8975_v58, %s9015_s30  ;;  %v1427_v30 = vpop.xlane.xlu0 %1426 }
 0x5d1   :  { %v1430_v6 = vpop.xlane.xlu1 %1429 }
 0x5d2   :  { %8757 = vrcp.f32 %v1430_v6 }
 0x5d3   :  { %2618 = vrot.lane.b32.xlu1 %v8976_v14, %s9015_s30  ;;  %8759 = vrcp.f32 %v1427_v30 }
 0x5d5   :  { %v1433_v0 = vpop.xlane.xlu1 %1432 }
 0x5d6   :  { %8761 = vrcp.f32 %v1433_v0 }
 0x5d8   :  { %v8754_v33 = vpop.eup %8753 }
 0x5d9   :  { %v1436_v52 = vpop.xlane.xlu1 %1435  ;;  %v1515_v56 = vmul.f32 %v8754_v33, %v9723_v36  ;;  %v8756_v62 = vpop.eup %8755 }
 0x5da   :  { %8763 = vrcp.f32 %v1436_v52  ;;  %v1516_v36 = vmul.f32 %v8756_v62, %v9721_v31  ;;  %v8592_v52 = vunpack.i.h.bf16 %v9847_v43 }
 0x5db   :  { %7642 = vmatmul.mubr.msk.f32.vlgmr.msra.gmra.mrb[26].mxu0 %vm1274_vm5, %v1515_v56  ;;  %v8591_v56 = vunpack.i.l.bf16 %v9847_v43 }
 0x5dc   :  { %v8758_v15 = vpop.eup %8757  ;;  %8324 = vmatpush3.bf16.msra.mxu0 %v8323_v47  ;;  %7644 = vmatprep.mubr.msk.f32.mxu0 %vm9012_vm1, %v9013_v38 }
 0x5dd   :  { %v1518_v59 = vmul.f32 %v8758_v15, %v9731_v46  ;;  %7669 = vmatprep.subr.mxu0 %v9013_v38  ;;  %v8760_v61 = vpop.eup %8759  ;;  %v8332_v8 = vpack.c.bf16 %v8592_v52, %v8591_v56 }
 0x5de   :  { %v1517_v46 = vmul.f32 %v8760_v61, %v9727_v29 }
 0x5df   :  { %7645 = vmatmul.mubr.msk.f32.gmra.mrb[28].mxu0 %vm1274_vm5, %v1516_v36  ;;  %7657 = vmatmul.mubr.msk.f32.vlgmr.msra.gmra.mrb[34].mxu1 %vm1274_vm5, %v1518_v59 }
 0x5e0   :  { %v8762_v28 = vpop.eup %8761  ;;  %7670 = vmatpush3.msra.mxu0 %v9709_v19  ;;  %8327 = vmatpush3.bf16.msra.mxu1 %v8326_v1 }
 0x5e1   :  { %7647 = vmatprep.mubr.msk.f32.mxu0 %vm9012_vm1, %v9013_v38  ;;  %7659 = vmatprep.mubr.msk.f32.mxu1 %vm9012_vm1, %v9013_v38  ;;  %v1519_v31 = vmul.f32 %v8762_v28, %v9737_v55 }
 0x5e2   :  { %7684 = vmatprep.subr.mxu1 %v9013_v38  ;;  %8328 = vmatprep.subr.bf16.mxu0 %v9011_v35 }
 0x5e3   :  { %7648 = vmatmul.mubr.msk.f32.gmra.mrb[30].mxu0 %vm1274_vm5, %v1517_v46  ;;  %7660 = vmatmul.mubr.msk.f32.gmra.mrb[36].mxu1 %vm1274_vm5, %v1519_v31 }
 0x5e4   :  { %v8764_v19 = vpop.eup %8763  ;;  %7685 = vmatpush3.msra.mxu1 %v9707_v2  ;;  %7662 = vmatprep.mubr.msk.f32.mxu1 %vm9012_vm1, %v9013_v38  ;;  %v8587_v2 = vunpack.i.h.bf16 %v9843_v63 }
 0x5e5   :  { %v1520_v5 = vmul.f32 %v8764_v19, %v9741_v60  ;;  %7671 = vmatprep.mubr.msk.f32.mxu0 %vm9012_vm1, %v9013_v38  ;;  %8331 = vmatprep.subr.bf16.mxu1 %v9011_v35 }
 0x5e6   :  { %v8329_v30 = vpack.c.bf16 %v8587_v2, %v8586_v3 }
 0x5e7   :  { %7663 = vmatmul.mubr.msk.f32.gmra.mrb[38].mxu1 %vm1274_vm5, %v1520_v5 }
 0x5e8   :  { %7686 = vmatprep.mubr.msk.f32.mxu1 %vm9012_vm1, %v9013_v38 }
 0x60d   :  { %v1439_v29 = vpop.xlane.xlu0 %1438 }
 0x60e   :  { %8765 = vrcp.f32 %v1439_v29 }
 0x611   :  { %v1442_v55 = vpop.xlane.xlu0 %1441 }
 0x612   :  { %8767 = vrcp.f32 %v1442_v55 }
 0x616   :  { %v1445_v58 = vpop.xlane.xlu0 %1444 }
 0x617   :  { %8769 = vrcp.f32 %v1445_v58 }
 0x618   :  { %v8766_v60 = vpop.eup %8765 }
 0x619   :  { %v1521_v6 = vmul.f32 %v8766_v60, %v9749_v44 }
 0x61a   :  { %v1448_v14 = vpop.xlane.xlu1 %1447 }
 0x61b   :  { %7672 = vmatmul.mubr.msk.f32.vlgmr.msra.gmra.mrb[32].mxu0 %vm1274_vm5, %v1521_v6  ;;  %8771 = vrcp.f32 %v1448_v14 }
 0x61c   :  { %v8768_v0 = vpop.eup %8767  ;;  %8330 = vmatpush3.bf16.msra.mxu0 %v8329_v30  ;;  %7674 = vmatprep.mubr.msk.f32.mxu0 %vm9012_vm1, %v9013_v38 }
 0x61d   :  { %v1522_v57 = vmul.f32 %v8768_v0, %v9756_v48  ;;  %7699 = vmatprep.subr.mxu0 %v9013_v38 }
 0x61e   :  { %v1460_v47 = vpop.xlane.xlu1 %1459 }
 0x61f   :  { %v1451_v63 = vpop.xlane.xlu0 %1450  ;;  %7675 = vmatmul.mubr.msk.f32.gmra.mrb[34].mxu0 %vm1274_vm5, %v1522_v57 }
 0x620   :  { %7677 = vmatprep.mubr.msk.f32.mxu0 %vm9012_vm1, %v9013_v38  ;;  %8773 = vrcp.f32 %v1451_v63 }
 0x621   :  { %v8770_v44 = vpop.eup %8769 }
 0x622   :  { %v1523_v54 = vmul.f32 %v8770_v44, %v9761_v23 }
 0x623   :  { %v1457_v33 = vpop.xlane.xlu0 %1456 }
 0x624   :  { %7678 = vmatmul.mubr.msk.f32.gmra.mrb[36].mxu0 %vm1274_vm5, %v1523_v54 }
 0x625   :  { %7701 = vmatprep.mubr.msk.f32.mxu0 %vm9012_vm1, %v9013_v38  ;;  %v8772_v48 = vpop.eup %8771 }
 0x626   :  { %v1524_v62 = vmul.f32 %v8772_v48, %v9766_v9 }
 0x627   :  { %v1454_v27 = vpop.xlane.xlu0 %1453 }
 0x628   :  { %8775 = vrcp.f32 %v1454_v27  ;;  %7687 = vmatmul.mubr.msk.f32.vlgmr.msra.gmra.mrb[40].mxu1 %vm1274_vm5, %v1524_v62 }
 0x629   :  { %8333 = vmatpush3.bf16.msra.mxu1 %v8332_v8  ;;  %7689 = vmatprep.mubr.msk.f32.mxu1 %vm9012_vm1, %v9013_v38 }
 0x62a   :  { %v8774_v23 = vpop.eup %8773  ;;  %v1469_v43 = vpop.xlane.xlu1 %1468  ;;  %7714 = vmatprep.subr.mxu1 %v9013_v38 }
 0x62b   :  { %v1466_v15 = vpop.xlane.xlu0 %1465  ;;  %v1525_v59 = vmul.f32 %v8774_v23, %v9775_v39 }
 0x62c   :  { %8777 = vrcp.f32 %v1466_v15 }
 0x62d   :  { %7690 = vmatmul.mubr.msk.f32.gmra.mrb[42].mxu1 %vm1274_vm5, %v1525_v59  ;;  %8779 = vrcp.f32 %v1469_v43 }
 0x62e   :  { %7692 = vmatprep.mubr.msk.f32.mxu1 %vm9012_vm1, %v9013_v38  ;;  %8781 = vrcp.f32 %v1457_v33 }
 0x62f   :  { %v1472_v9 = vpop.xlane.xlu1 %1471  ;;  %v1463_v36 = vpop.xlane.xlu0 %1462 }
 0x630   :  { %8783 = vrcp.f32 %v1472_v9 }
 0x631   :  { %8785 = vrcp.f32 %v1460_v47 }
 0x632   :  { %v8776_v61 = vpop.eup %8775  ;;  %8787 = vrcp.f32 %v1463_v36 }
 0x633   :  { %v1478_v1 = vpop.xlane.xlu1 %1477  ;;  %v1475_v28 = vpop.xlane.xlu0 %1474  ;;  %v1526_v46 = vmul.f32 %v8776_v61, %v9789_v13 }
 0x635   :  { %7693 = vmatmul.mubr.msk.f32.gmra.mrb[44].mxu1 %vm1274_vm5, %v1526_v46 }
 0x636   :  { %7716 = vmatprep.mubr.msk.f32.mxu1 %vm9012_vm1, %v9013_v38  ;;  %v8778_v19 = vpop.eup %8777 }
 0x637   :  { %v1487_v39 = vpop.xlane.xlu1 %1486  ;;  %v1481_v31 = vpop.xlane.xlu0 %1480  ;;  %v1530_v5 = vmul.f32 %v8778_v19, %v9794_v53 }
 0x638   :  { %v8780_v2 = vpop.eup %8779 }
 0x639   :  { %v8782_v13 = vpop.eup %8781  ;;  %v1531_v60 = vmul.f32 %v8780_v2, %v9796_v10 }
 0x63a   :  { %v8784_v6 = vpop.eup %8783  ;;  %v1527_v14 = vmul.f32 %v8782_v13, %v9783_v45 }
 0x63b   :  { %v2034_v29 = vpop.permute.xlu1 %2033  ;;  %v1484_v55 = vpop.xlane.xlu0 %1483  ;;  %v1532_v63 = vmul.f32 %v8784_v6, %v9805_v20 }
 0x63c   :  { %7715 = vmatpush3.msra.mxu1 %v2034_v29  ;;  %8789 = vrcp.f32 %v1484_v55  ;;  %v8786_v44 = vpop.eup %8785 }
 0x63d   :  { %7717 = vmatmul.mubr.msk.f32.vlgmr.msra.gmra.mrb[46].mxu1 %vm1274_vm5, %v1530_v5  ;;  %8337 = vmatprep.subr.bf16.mxu1 %v9011_v35  ;;  %8791 = vrcp.f32 %v1475_v28  ;;  %v8788_v45 = vpop.eup %8787  ;;  %v1528_v56 = vmul.f32 %v8786_v44, %v9772_v25 }
 0x63e   :  { %7719 = vmatprep.mubr.msk.f32.mxu1 %vm9012_vm1, %v9013_v38  ;;  %8793 = vrcp.f32 %v1487_v39  ;;  %v1529_v27 = vmul.f32 %v8788_v45, %v9803_v16 }
 0x63f   :  { %v8595_v3 = vpop.permute.xlu1 %8594  ;;  %v1490_v58 = vpop.xlane.xlu0 %1489  ;;  %8795 = vrcp.f32 %v1478_v1 }
 0x640   :  { %v8597_v53 = vunpack.i.h.bf16 %v8595_v3  ;;  %v8596_v30 = vunpack.i.l.bf16 %v8595_v3  ;;  %8797 = vrcp.f32 %v1490_v58 }
 0x641   :  { %7720 = vmatmul.mubr.msk.f32.gmra.mrb[48].mxu1 %vm1274_vm5, %v1531_v60  ;;  %8799 = vrcp.f32 %v1481_v31 }
 0x642   :  { %7722 = vmatprep.mubr.msk.f32.mxu1 %vm9012_vm1, %v9013_v38  ;;  %v8335_v10 = vpack.c.bf16 %v8597_v53, %v8596_v30 }
 0x643   :  { %v8600_v0 = vpop.permute.xlu1 %8599  ;;  %v1936_v57 = vpop.permute.xlu0 %1935 }
 0x644   :  { %v8602_v54 = vunpack.i.h.bf16 %v8600_v0  ;;  %v8601_v33 = vunpack.i.l.bf16 %v8600_v0  ;;  %7700 = vmatpush3.msra.mxu0 %v1936_v57 }
 0x645   :  { %7702 = vmatmul.mubr.msk.f32.vlgmr.msra.gmra.mrb[38].mxu0 %vm1274_vm5, %v1527_v14  ;;  %7723 = vmatmul.mubr.msk.f32.gmra.mrb[50].mxu1 %vm1274_vm5, %v1532_v63 }
 0x646   :  { %v8338_v52 = vpack.c.bf16 %v8602_v54, %v8601_v33  ;;  %8334 = vmatprep.subr.bf16.mxu0 %v9011_v35  ;;  %7704 = vmatprep.mubr.msk.f32.mxu0 %vm9012_vm1, %v9013_v38  ;;  %v8790_v48 = vpop.eup %8789 }
 0x647   :  { %8336 = vmatpush3.bf16.msra.mxu0 %v8335_v10  ;;  %v2132_v20 = vpop.permute.xlu1 %2131  ;;  %7746 = vmatprep.mubr.msk.f32.mxu1 %vm9012_vm1, %v9013_v38  ;;  %v8792_v62 = vpop.eup %8791  ;;  %v1536_v47 = vmul.f32 %v8790_v48, %v9827_v40 }
 0x648   :  { %8339 = vmatpush3.bf16.msra.mxu1 %v8338_v52  ;;  %7729 = vmatprep.subr.mxu0 %v9013_v38  ;;  %v8794_v8 = vpop.eup %8793  ;;  %v1533_v43 = vmul.f32 %v8792_v62, %v9807_v26  ;;  %v2472_v36 = vpop.permute.xlu0 %2471 }
 0x649   :  { %7705 = vmatmul.mubr.msk.f32.gmra.mrb[40].mxu0 %vm1274_vm5, %v1528_v56  ;;  %7744 = vmatprep.subr.mxu1 %v9013_v38  ;;  %v8796_v23 = vpop.eup %8795  ;;  %v1537_v40 = vmul.f32 %v8794_v8, %v9821_v12 }
 0x64a   :  { %7707 = vmatprep.mubr.msk.f32.mxu0 %vm9012_vm1, %v9013_v38  ;;  %v8798_v59 = vpop.eup %8797  ;;  %v1534_v16 = vmul.f32 %v8796_v23, %v9813_v32 }
 0x64b   :  { %7730 = vmatpush3.msra.mxu0 %v2132_v20  ;;  %v2230_v25 = vpop.permute.xlu1 %2229  ;;  %v1538_v9 = vmul.f32 %v8798_v59, %v9831_v7  ;;  %v8800_v26 = vpop.eup %8799 }
 0x64c   :  { %7745 = vmatpush3.msra.mxu1 %v2230_v25  ;;  %v1535_v12 = vmul.f32 %v8800_v26, %v9815_v51  ;;  %v2766_v32 = vpop.permute.xlu0 %2765 }
 0x64d   :  { %7708 = vmatmul.mubr.msk.f32.gmra.mrb[42].mxu0 %vm1274_vm5, %v1529_v27  ;;  %7747 = vmatmul.mubr.msk.f32.vlgmr.msra.gmra.mrb[52].mxu1 %vm1274_vm5, %v1536_v47 }
 0x64e   :  { %7731 = vmatprep.mubr.msk.f32.mxu0 %vm9012_vm1, %v9013_v38  ;;  %7749 = vmatprep.mubr.msk.f32.mxu1 %vm9012_vm1, %v9013_v38 }
 0x64f   :  { %v2325_v15 = vpop.permute.xlu1 %2324  ;;  %7766 = vmatprep.subr.mxu1 %v2472_v36 }
 0x650   :  { %7755 = vmatprep.subr.mxu0 %v2325_v15  ;;  %7767 = vmatpush3.msra.mxu1 %v2472_v36 }
 0x651   :  { %7732 = vmatmul.mubr.msk.f32.vlgmr.msra.gmra.mrb[44].mxu0 %vm1274_vm5, %v1533_v43  ;;  %7750 = vmatmul.mubr.msk.f32.gmra.mrb[54].mxu1 %vm1274_vm5, %v1537_v40 }
 0x652   :  { %7734 = vmatprep.mubr.msk.f32.mxu0 %vm9012_vm1, %v9013_v38  ;;  %7752 = vmatprep.mubr.msk.f32.mxu1 %vm9012_vm1, %v9013_v38 }
 0x653   :  { %7756 = vmatpush3.msra.mxu0 %v2325_v15  ;;  %v2619_v61 = vpop.permute.xlu1 %2618  ;;  %7788 = vmatprep.subr.mxu1 %v2766_v32 }
 0x654   :  { %7777 = vmatprep.subr.mxu0 %v2619_v61 }
 0x655   :  { %7735 = vmatmul.mubr.msk.f32.gmra.mrb[46].mxu0 %vm1274_vm5, %v1534_v16  ;;  %7753 = vmatmul.mubr.msk.f32.gmra.mrb[56].mxu1 %vm1274_vm5, %v1538_v9 }
 0x656   :  { %7737 = vmatprep.mubr.msk.f32.mxu0 %vm9012_vm1, %v9013_v38 }
 0x659   :  { %7738 = vmatmul.mubr.msk.f32.gmra.mrb[48].mxu0 %vm1274_vm5, %v1535_v12 }
 0x6ae   :  { %v1623_v7 = vpop.f32.mrb[26].mxu0 }
 0x6af   :  { %v7643_v1 = vpop.f32.mrb[27].mxu0  ;;  %7757 = vmatprep.mubr.msk.f32.mxu0 %vm447_vm2, %v1623_v7 }
 0x6b2   :  { %v1628_v28 = vpop.f32.mrb[28].mxu0  ;;  %v1721_v46 = vpop.f32.mrb[34].mxu1 }
 0x6b3   :  { %v7646_v39 = vpop.f32.mrb[29].mxu0  ;;  %v7658_v31 = vpop.f32.mrb[35].mxu1  ;;  %7758 = vmatmul.mubr.msk.f32.vlgmr.msra.gmra.mrb[50].mxu0 %vm447_vm2, %v1628_v28 }
 0x6b4   :  { %7778 = vmatpush3.msra.mxu0 %v2619_v61 }
 0x6b6   :  { %v1633_v51 = vpop.f32.mrb[30].mxu0  ;;  %v1726_v19 = vpop.f32.mrb[36].mxu1 }
 0x6b7   :  { %v7649_v5 = vpop.f32.mrb[31].mxu0  ;;  %v7661_v29 = vpop.f32.mrb[37].mxu1  ;;  %7760 = vmatprep.mubr.msk.f32.mxu0 %vm447_vm2, %v1633_v51 }
 0x6b8   :  { %7761 = vmatmul.mubr.msk.f32.gmra.mrb[52].mxu0 %vm447_vm2, %v1721_v46 }
 0x6b9   :  { %7763 = vmatprep.mubr.msk.f32.mxu0 %vm447_vm2, %v1726_v19 }
 0x6ba   :  { %v1731_v55 = vpop.f32.mrb[38].mxu1 }
 0x6bb   :  { %v7664_v2 = vpop.f32.mrb[39].mxu1 }
 0x6bc   :  { %7764 = vmatmul.mubr.msk.f32.gmra.mrb[54].mxu0 %vm447_vm2, %v1731_v55 }
 0x6ee   :  { %v1819_v13 = vpop.f32.mrb[32].mxu0 }
 0x6ef   :  { %v7673_v3 = vpop.f32.mrb[33].mxu0  ;;  %7768 = vmatprep.mubr.msk.f32.mxu1 %vm447_vm2, %v1819_v13 }
 0x6f2   :  { %v1824_v58 = vpop.f32.mrb[34].mxu0 }
 0x6f3   :  { %v7676_v60 = vpop.f32.mrb[35].mxu0  ;;  %7769 = vmatmul.mubr.msk.f32.vlgmr.msra.gmra.mrb[58].mxu1 %vm447_vm2, %v1824_v58 }
 0x6f4   :  { %7789 = vmatpush3.msra.mxu1 %v2766_v32 }
 0x6f7   :  { %v1829_v6 = vpop.f32.mrb[36].mxu0 }
 0x6f8   :  { %v7679_v53 = vpop.f32.mrb[37].mxu0  ;;  %7771 = vmatprep.mubr.msk.f32.mxu1 %vm447_vm2, %v1829_v6 }
 0x6fb   :  { %v1917_v30 = vpop.f32.mrb[40].mxu1 }
 0x6fc   :  { %v7688_v14 = vpop.f32.mrb[41].mxu1  ;;  %7772 = vmatmul.mubr.msk.f32.gmra.mrb[60].mxu1 %vm447_vm2, %v1917_v30 }
 0x700   :  { %v1922_v0 = vpop.f32.mrb[42].mxu1 }
 0x701   :  { %v7691_v57 = vpop.f32.mrb[43].mxu1  ;;  %7774 = vmatprep.mubr.msk.f32.mxu1 %vm447_vm2, %v1922_v0 }
 0x708   :  { %v1927_v63 = vpop.f32.mrb[44].mxu1 }
 0x709   :  { %v7694_v44 = vpop.f32.mrb[45].mxu1  ;;  %7775 = vmatmul.mubr.msk.f32.gmra.mrb[62].mxu1 %vm447_vm2, %v1927_v63 }
 0x710   :  { %v2113_v54 = vpop.f32.mrb[46].mxu1 }
 0x711   :  { %v7718_v33 = vpop.f32.mrb[47].mxu1 }
 0x714   :  { %v2118_v10 = vpop.f32.mrb[48].mxu1 }
 0x715   :  { %v7721_v52 = vpop.f32.mrb[49].mxu1 }
 0x718   :  { %v2015_v45 = vpop.f32.mrb[38].mxu0  ;;  %v2123_v20 = vpop.f32.mrb[50].mxu1 }
 0x719   :  { %v7703_v56 = vpop.f32.mrb[39].mxu0  ;;  %v7724_v48 = vpop.f32.mrb[51].mxu1  ;;  %7779 = vmatprep.mubr.msk.f32.mxu0 %vm447_vm2, %v2015_v45 }
 0x71c   :  { %v2020_v62 = vpop.f32.mrb[40].mxu0 }
 0x71d   :  { %v7706_v47 = vpop.f32.mrb[41].mxu0  ;;  %7780 = vmatmul.mubr.msk.f32.vlgmr.msra.gmra.mrb[56].mxu0 %vm447_vm2, %v2020_v62 }
 0x720   :  { %v2025_v25 = vpop.f32.mrb[42].mxu0  ;;  %v2309_v27 = vpop.f32.mrb[52].mxu1 }
 0x721   :  { %v7709_v8 = vpop.f32.mrb[43].mxu0  ;;  %v7748_v23 = vpop.f32.mrb[53].mxu1  ;;  %7782 = vmatprep.mubr.msk.f32.mxu0 %vm447_vm2, %v2025_v25 }
 0x722   :  { %7783 = vmatmul.mubr.msk.f32.gmra.mrb[58].mxu0 %vm447_vm2, %v2113_v54 }
 0x723   :  { %7785 = vmatprep.mubr.msk.f32.mxu0 %vm447_vm2, %v2118_v10 }
 0x724   :  { %v2211_v43 = vpop.f32.mrb[44].mxu0  ;;  %v2314_v40 = vpop.f32.mrb[54].mxu1 }
 0x725   :  { %v7733_v15 = vpop.f32.mrb[45].mxu0  ;;  %v7751_v59 = vpop.f32.mrb[55].mxu1  ;;  %7790 = vmatprep.mubr.msk.f32.mxu1 %vm447_vm2, %v2211_v43 }
 0x726   :  { %7786 = vmatmul.mubr.msk.f32.gmra.mrb[60].mxu0 %vm447_vm2, %v2123_v20 }
 0x728   :  { %v2216_v16 = vpop.f32.mrb[46].mxu0  ;;  %v2319_v9 = vpop.f32.mrb[56].mxu1 }
 0x729   :  { %v7736_v26 = vpop.f32.mrb[47].mxu0  ;;  %v7754_v12 = vpop.f32.mrb[57].mxu1  ;;  %7791 = vmatmul.mubr.msk.f32.vlgmr.msra.gmra.mrb[64].mxu1 %vm447_vm2, %v2216_v16 }
 0x72c   :  { %v2221_v36 = vpop.f32.mrb[48].mxu0 }
 0x72d   :  { %v7739_v61 = vpop.f32.mrb[49].mxu0  ;;  %7793 = vmatprep.mubr.msk.f32.mxu1 %vm447_vm2, %v2221_v36 }
 0x72e   :  { %7794 = vmatmul.mubr.msk.f32.gmra.mrb[66].mxu1 %vm447_vm2, %v2309_v27 }
 0x72f   :  { %7796 = vmatprep.mubr.msk.f32.mxu1 %vm447_vm2, %v2314_v40 }
 0x732   :  { %7797 = vmatmul.mubr.msk.f32.gmra.mrb[68].mxu1 %vm447_vm2, %v2319_v9 }
 0x786   :  { %v7759_v32 = vpop.f32.mrb[50].mxu0 }
 0x787   :  { %2448 = vrot.lane.b32.xlu0 %v7759_v32, %s9007_s20  ;;  %v2411_v7 = vpop.f32.mrb[51].mxu0 }
 0x788   :  { %2446 = vrot.lane.b32.xlu1 %v2411_v7, %s9007_s20 }
 0x78b   :  { %v7762_v1 = vpop.f32.mrb[52].mxu0 }
 0x78c   :  { %2452 = vrot.lane.b32.xlu1 %v7762_v1, %s9007_s20  ;;  %v2421_v28 = vpop.f32.mrb[53].mxu0 }
 0x78f   :  { %v7765_v46 = vpop.f32.mrb[54].mxu0 }
 0x790   :  { %2450 = vrot.lane.b32.xlu1 %v2421_v28, %s9007_s20  ;;  %v2431_v39 = vpop.f32.mrb[55].mxu0 }
 0x794   :  { %2456 = vrot.lane.b32.xlu1 %v7765_v46, %s9007_s20 }
 0x798   :  { %2454 = vrot.lane.b32.xlu1 %v2431_v39, %s9007_s20 }
 0x7c6   :  { %v7770_v31 = vpop.f32.mrb[58].mxu1 }
 0x7c7   :  { %2595 = vrot.lane.b32.xlu0 %v7770_v31, %s9007_s20  ;;  %v2558_v51 = vpop.f32.mrb[59].mxu1 }
 0x7c8   :  { %2593 = vrot.lane.b32.xlu1 %v2558_v51, %s9007_s20 }
 0x7cf   :  { %v7773_v19 = vpop.f32.mrb[60].mxu1 }
 0x7d0   :  { %2599 = vrot.lane.b32.xlu1 %v7773_v19, %s9007_s20  ;;  %v2568_v5 = vpop.f32.mrb[61].mxu1 }
 0x7d4   :  { %2597 = vrot.lane.b32.xlu1 %v2568_v5, %s9007_s20 }
 0x7dc   :  { %v7776_v29 = vpop.f32.mrb[62].mxu1 }
 0x7dd   :  { %2603 = vrot.lane.b32.xlu1 %v7776_v29, %s9007_s20  ;;  %v2578_v55 = vpop.f32.mrb[63].mxu1 }
 0x7e1   :  { %2601 = vrot.lane.b32.xlu1 %v2578_v55, %s9007_s20 }
 0x7f0   :  { %v7781_v2 = vpop.f32.mrb[56].mxu0 }
 0x7f1   :  { %v2705_v13 = vpop.f32.mrb[57].mxu0  ;;  %2742 = vrot.lane.b32.xlu0 %v7781_v2, %s9007_s20 }
 0x7f5   :  { %v7784_v3 = vpop.f32.mrb[58].mxu0  ;;  %2740 = vrot.lane.b32.xlu0 %v2705_v13, %s9007_s20 }
 0x7f6   :  { %v2715_v58 = vpop.f32.mrb[59].mxu0 }
 0x7f9   :  { %v7787_v60 = vpop.f32.mrb[60].mxu0  ;;  %2746 = vrot.lane.b32.xlu0 %v7784_v3, %s9007_s20  ;;  %v2449_v10 = vpop.permute.xlu0 %2448 }
 0x7fa   :  { %v2725_v6 = vpop.f32.mrb[61].mxu0  ;;  %v2447_v44 = vpop.permute.xlu1 %2446  ;;  %v2465_v27 = vadd.f32 %v2449_v10, %v9266_v18 }
 0x7fb   :  { %2748 = vrot.lane.b32.xlu1 %v2725_v6, %s9007_s20  ;;  %v2464_v40 = vadd.f32 %v2447_v44, %v9266_v18 }
 0x7fc   :  { %v7792_v53 = vpop.f32.mrb[64].mxu1 }
 0x7fd   :  { %2744 = vrot.lane.b32.xlu0 %v2715_v58, %s9007_s20  ;;  %v2852_v30 = vpop.f32.mrb[65].mxu1 }
 0x7fe   :  { %v2453_v54 = vpop.permute.xlu1 %2452 }
 0x7ff   :  { %v2467_v12 = vadd.f32 %v2453_v54, %v9266_v18 }
 0x801   :  { %2889 = vrot.lane.b32.xlu0 %v7792_v53, %s9007_s20  ;;  %v7795_v14 = vpop.f32.mrb[66].mxu1 }
 0x802   :  { %v2862_v0 = vpop.f32.mrb[67].mxu1  ;;  %v2451_v33 = vpop.permute.xlu1 %2450 }
 0x803   :  { %v2466_v28 = vadd.f32 %v2451_v33, %v9266_v18 }
 0x805   :  { %2887 = vrot.lane.b32.xlu0 %v2852_v30, %s9007_s20  ;;  %v7798_v57 = vpop.f32.mrb[68].mxu1 }
 0x806   :  { %v2872_v63 = vpop.f32.mrb[69].mxu1  ;;  %v2457_v52 = vpop.permute.xlu1 %2456 }
 0x807   :  { %2895 = vrot.lane.b32.xlu1 %v2872_v63, %s9007_s20  ;;  %v2469_v58 = vadd.f32 %v2457_v52, %v9266_v18 }
 0x809   :  { %2893 = vrot.lane.b32.xlu0 %v7795_v14, %s9007_s20 }
 0x80a   :  { %v2455_v20 = vpop.permute.xlu1 %2454 }
 0x80b   :  { %v2468_v5 = vadd.f32 %v2455_v20, %v9266_v18 }
 0x80d   :  { %2891 = vrot.lane.b32.xlu0 %v2862_v0, %s9007_s20 }
 0x811   :  { %2750 = vrot.lane.b32.xlu0 %v7787_v60, %s9007_s20 }
 0x815   :  { %2897 = vrot.lane.b32.xlu0 %v7798_v57, %s9007_s20 }
 0x839   :  { %v2596_v45 = vpop.permute.xlu0 %2595 }
 0x83a   :  { %v2594_v48 = vpop.permute.xlu1 %2593  ;;  %v2612_v43 = vadd.f32 %v2596_v45, %v2465_v27 }
 0x83b   :  { %v2611_v9 = vadd.f32 %v2594_v48, %v2464_v40 }
 0x842   :  { %v2600_v47 = vpop.permute.xlu1 %2599 }
 0x843   :  { %v2614_v32 = vadd.f32 %v2600_v47, %v2467_v12 }
 0x846   :  { %v2598_v8 = vpop.permute.xlu1 %2597 }
 0x847   :  { %v2613_v31 = vadd.f32 %v2598_v8, %v2466_v28 }
 0x84f   :  { %v2604_v59 = vpop.permute.xlu1 %2603 }
 0x850   :  { %v2616_v53 = vadd.f32 %v2604_v59, %v2469_v58  ;;  %v158_v58 = vld [vmem:[%s11278_s3 + $0x8] sm:$0xff] }
 0x853   :  { %v2602_v1 = vpop.permute.xlu1 %2601 }
 0x854   :  { %v2615_v2 = vadd.f32 %v2602_v1, %v2468_v5 }
 0x863   :  { %v2743_v56 = vpop.permute.xlu0 %2742 }
 0x864   :  { %v2759_v15 = vadd.f32 %v2743_v56, %v2612_v43 }
 0x867   :  { %v2741_v62 = vpop.permute.xlu0 %2740 }
 0x868   :  { %v2758_v36 = vadd.f32 %v2741_v62, %v2611_v9 }
 0x86b   :  { %v2747_v25 = vpop.permute.xlu0 %2746 }
 0x86c   :  { %v2761_v46 = vadd.f32 %v2747_v25, %v2614_v32 }
 0x86d   :  { %v2749_v19 = vpop.permute.xlu1 %2748 }
 0x86e   :  { %v2762_v60 = vadd.f32 %v2749_v19, %v2615_v2 }
 0x86f   :  { %v2745_v23 = vpop.permute.xlu0 %2744 }
 0x870   :  { %v2760_v29 = vadd.f32 %v2745_v23, %v2613_v31 }
 0x873   :  { %v2890_v16 = vpop.permute.xlu0 %2889 }
 0x874   :  { %v2906_v26 = vadd.f32 %v2890_v16, %v2759_v15 }
 0x876   :  { %2919 = vrot.lane.b32.xlu0 %v2906_v26, %s9015_s30 }
 0x877   :  { %v2888_v61 = vpop.permute.xlu0 %2887 }
 0x878   :  { %v2905_v7 = vadd.f32 %v2888_v61, %v2758_v36 }
 0x879   :  { %v2896_v3 = vpop.permute.xlu1 %2895 }
 0x87a   :  { %2917 = vrot.lane.b32.xlu1 %v2905_v7, %s9015_s30  ;;  %v2909_v30 = vadd.f32 %v2896_v3, %v2762_v60  ;;  %v160_v60 = vld [vmem:[%s11278_s3 + $0x18] sm:$0xff] }
 0x87b   :  { %v2894_v39 = vpop.permute.xlu0 %2893 }
 0x87c   :  { %v2908_v51 = vadd.f32 %v2894_v39, %v2761_v46 }
 0x87e   :  { %2923 = vrot.lane.b32.xlu0 %v2908_v51, %s9015_s30 }
 0x87f   :  { %v2892_v55 = vpop.permute.xlu0 %2891 }
 0x880   :  { %v2907_v13 = vadd.f32 %v2892_v55, %v2760_v29 }
 0x882   :  { %2921 = vrot.lane.b32.xlu1 %v2907_v13, %s9015_s30 }
 0x883   :  { %v2751_v6 = vpop.permute.xlu0 %2750 }
 0x884   :  { %v2763_v14 = vadd.f32 %v2751_v6, %v2616_v53  ;;  %v8340_v6 = vpack.c.bf16 %v160_v60, %v158_v58  ;;  %v162_v53 = vld [vmem:[%s11278_s3 + $0x28] sm:$0xff] }
 0x886   :  { %2925 = vrot.lane.b32.xlu1 %v2909_v30, %s9015_s30  ;;  %8341 = vmatprep.subr.bf16.mxu0 %v8340_v6  ;;  %v164_v30 = vld [vmem:[%s11278_s3 + $0x38] sm:$0xff] }
 0x887   :  { %v2898_v0 = vpop.permute.xlu0 %2897  ;;  %8343 = vmatpush3.bf16.msra.mxu0 %v8340_v6 }
 0x888   :  { %v2910_v57 = vadd.f32 %v2898_v0, %v2763_v14  ;;  %v8344_v14 = vpack.c.bf16 %v164_v30, %v162_v53  ;;  %v165_v0 = vld [vmem:[%s11279_s4] sm:$0xff] }
 0x88a   :  { %2927 = vrot.lane.b32.xlu0 %v2910_v57, %s9015_s30  ;;  %8345 = vmatprep.subr.bf16.mxu0 %v8344_v14  ;;  %v166_v57 = vld [vmem:[%s11279_s4 + $0x8] sm:$0xff] }
 0x88b   :  { %8347 = vmatpush3.bf16.msra.mxu0 %v8344_v14 }
 0x8e8   :  { %v2920_v63 = vpop.permute.xlu0 %2919 }
 0x8e9   :  { %v10040_v44 = vadd.f32 %v2920_v63, %v9151_v37  ;;  %v167_v63 = vld [vmem:[%s11279_s4 + $0x10] sm:$0xff] }
 0x8eb   :  { %v2944_v18 = vsel %vm182_vm0, %v10040_v44, 0.0 }
 0x8ec   :  { %2945 = vadd.xlane.f32.xlu0 %v2944_v18  ;;  %v2918_v54 = vpop.permute.xlu1 %2917  ;;  %v8348_v18 = vpack.c.bf16 %v166_v57, %v165_v0 }
 0x8ed   :  { %v10045_v33 = vadd.f32 %v2918_v54, %v9143_v34  ;;  %v168_v54 = vld [vmem:[%s11279_s4 + $0x18] sm:$0xff] }
 0x8ee   :  { %8349 = vmatprep.subr.bf16.mxu1 %v8348_v18 }
 0x8ef   :  { %v2941_v10 = vsel %vm182_vm0, %v10045_v33, 0.0  ;;  %8351 = vmatpush3.bf16.msra.mxu1 %v8348_v18 }
 0x8f0   :  { %2942 = vadd.xlane.f32.xlu1 %v2941_v10  ;;  %v2924_v52 = vpop.permute.xlu0 %2923  ;;  %v8352_v10 = vpack.c.bf16 %v168_v54, %v167_v63 }
 0x8f1   :  { %v10053_v37 = vadd.f32 %v2924_v52, %v9155_v41  ;;  %v170_v52 = vld [vmem:[%s11279_s4 + $0x28] sm:$0xff] }
 0x8f2   :  { %8353 = vmatprep.subr.bf16.mxu1 %v8352_v10 }
 0x8f3   :  { %v2950_v62 = vsel %vm182_vm0, %v10053_v37, 0.0  ;;  %8355 = vmatpush3.bf16.msra.mxu1 %v8352_v10 }
 0x8f4   :  { %v2922_v45 = vpop.permute.xlu1 %2921 }
 0x8f5   :  { %v10050_v20 = vadd.f32 %v2922_v45, %v9157_v42 }
 0x8f7   :  { %v2947_v56 = vsel %vm182_vm0, %v10050_v20, 0.0 }
 0x8f8   :  { %2948 = vadd.xlane.f32.xlu0 %v2947_v56  ;;  %v2926_v48 = vpop.permute.xlu1 %2925 }
 0x8f9   :  { %v10058_v34 = vadd.f32 %v2926_v48, %v9171_v50 }
 0x8fb   :  { %v2953_v47 = vsel %vm182_vm0, %v10058_v34, 0.0 }
 0x8fc   :  { %v2928_v25 = vpop.permute.xlu0 %2927  ;;  %2951 = vadd.xlane.f32.xlu0 %v2950_v62  ;;  %2954 = vadd.xlane.f32.xlu1 %v2953_v47 }
 0x8fd   :  { %v10065_v41 = vadd.f32 %v2928_v25, %v9169_v49 }
 0x8ff   :  { %v2956_v42 = vsel %vm182_vm0, %v10065_v41, 0.0 }
 0x900   :  { %2957 = vadd.xlane.f32.xlu0 %v2956_v42 }
 0x979   :  { %v2946_v27 = vpop.xlane.xlu0 %2945 }
 0x97a   :  { %v2960_v8 = vmul.f32 0.03125, %v2946_v27 }
 0x97c   :  { %v10070_v50 = vsub.f32 %v10040_v44, %v2960_v8 }
 0x97d   :  { %v2943_v23 = vpop.xlane.xlu1 %2942 }
 0x97e   :  { %v2959_v43 = vmul.f32 0.03125, %v2943_v23  ;;  %v2972_v40 = vmul.f32 %v10070_v50, %v10070_v50 }
 0x980   :  { %v10075_v15 = vsub.f32 %v10045_v33, %v2959_v43  ;;  %v2980_v49 = vsel %vm182_vm0, %v2972_v40, 0.0 }
 0x981   :  { %2981 = vadd.xlane.f32.xlu0 %v2980_v49 }
 0x982   :  { %v2971_v59 = vmul.f32 %v10075_v15, %v10075_v15 }
 0x984   :  { %v2977_v16 = vsel %vm182_vm0, %v2971_v59, 0.0 }
 0x985   :  { %v2949_v9 = vpop.xlane.xlu0 %2948  ;;  %2978 = vadd.xlane.f32.xlu1 %v2977_v16 }
 0x986   :  { %v2961_v26 = vmul.f32 0.03125, %v2949_v9 }
 0x988   :  { %v10082_v12 = vsub.f32 %v10050_v20, %v2961_v26 }
 0x989   :  { %v2952_v36 = vpop.xlane.xlu0 %2951  ;;  %v2955_v61 = vpop.xlane.xlu1 %2954 }
 0x98a   :  { %v2962_v32 = vmul.f32 0.03125, %v2952_v36  ;;  %v2963_v7 = vmul.f32 0.03125, %v2955_v61  ;;  %v2973_v1 = vmul.f32 %v10082_v12, %v10082_v12 }
 0x98c   :  { %v10087_v28 = vsub.f32 %v10053_v37, %v2962_v32  ;;  %v10090_v46 = vsub.f32 %v10058_v34, %v2963_v7  ;;  %v2983_v39 = vsel %vm182_vm0, %v2973_v1, 0.0 }
 0x98d   :  { %v2958_v31 = vpop.xlane.xlu0 %2957  ;;  %2984 = vadd.xlane.f32.xlu1 %v2983_v39 }
 0x98e   :  { %v2964_v51 = vmul.f32 0.03125, %v2958_v31  ;;  %v2974_v19 = vmul.f32 %v10087_v28, %v10087_v28  ;;  %v2975_v5 = vmul.f32 %v10090_v46, %v10090_v46 }
 0x990   :  { %v10098_v29 = vsub.f32 %v10065_v41, %v2964_v51  ;;  %v2986_v55 = vsel %vm182_vm0, %v2974_v19, 0.0  ;;  %v2989_v2 = vsel %vm182_vm0, %v2975_v5, 0.0 }
 0x991   :  { %2987 = vadd.xlane.f32.xlu0 %v2986_v55  ;;  %2990 = vadd.xlane.f32.xlu1 %v2989_v2 }
 0x992   :  { %v2976_v13 = vmul.f32 %v10098_v29, %v10098_v29 }
 0x994   :  { %v2992_v3 = vsel %vm182_vm0, %v2976_v13, 0.0 }
 0x995   :  { %2993 = vadd.xlane.f32.xlu0 %v2992_v3 }
 0x9a2   :  { %3019 = vrot.lane.b32.xlu1 %v9228_v24, %s9014_s27 }
 0x9ab   :  { %3028 = vrot.lane.b32.xlu0 %v9228_v24, %s9015_s30  ;;  %v169_v24 = vld [vmem:[%s11279_s4 + $0x20] sm:$0xff] }
 0x9ac   :  { %v8356_v45 = vpack.c.bf16 %v170_v52, %v169_v24  ;;  %v174_v24 = vld [vmem:[%s11279_s4 + $0x48] sm:$0xff] }
 0x9ae   :  { %8357 = vmatprep.subr.bf16.mxu1 %v8356_v45 }
 0x9af   :  { %8359 = vmatpush3.bf16.msra.mxu1 %v8356_v45  ;;  %v175_v45 = vld [vmem:[%s11279_s4 + $0x50] sm:$0xff] }
 0xa0e   :  { %v2982_v56 = vpop.xlane.xlu0 %2981 }
 0xa0f   :  { %v2996_v48 = vmul.f32 0.03125, %v2982_v56  ;;  %v176_v56 = vld [vmem:[%s11279_s4 + $0x58] sm:$0xff] }
 0xa11   :  { %v3002_v62 = vadd.f32 1e-06, %v2996_v48  ;;  %v8368_v48 = vpack.c.bf16 %v176_v56, %v175_v45 }
 0xa12   :  { %v2979_v47 = vpop.xlane.xlu1 %2978 }
 0xa13   :  { %v2995_v25 = vmul.f32 0.03125, %v2979_v47  ;;  %8801 = vrsqrt.f32 %v3002_v62  ;;  %v177_v62 = vld [vmem:[%s11279_s4 + $0x60] sm:$0xff]  ;;  %v178_v47 = vld [vmem:[%s11279_s4 + $0x68] sm:$0xff] }
 0xa15   :  { %v3001_v42 = vadd.f32 1e-06, %v2995_v25  ;;  %v8372_v25 = vpack.c.bf16 %v178_v47, %v177_v62  ;;  %v3186_v62 = vsub.s32 3, %v9216_v21 }
 0xa17   :  { %8803 = vrsqrt.f32 %v3001_v42  ;;  %v179_v42 = vld [vmem:[%s11279_s4 + $0x70] sm:$0xff] }
 0xa1a   :  { %v2985_v27 = vpop.xlane.xlu1 %2984 }
 0xa1b   :  { %v2997_v8 = vmul.f32 0.03125, %v2985_v27  ;;  %v180_v27 = vld [vmem:[%s11279_s4 + $0x78] sm:$0xff] }
 0xa1d   :  { %v3003_v23 = vadd.f32 1e-06, %v2997_v8  ;;  %v8802_v16 = vpop.eup %8801  ;;  %v8376_v8 = vpack.c.bf16 %v180_v27, %v179_v42 }
 0xa1e   :  { %v2988_v43 = vpop.xlane.xlu0 %2987  ;;  %v2991_v40 = vpop.xlane.xlu1 %2990  ;;  %v3014_v1 = vmul.f32 %v8802_v16, %v10070_v50 }
 0xa1f   :  { %8805 = vrsqrt.f32 %v3003_v23  ;;  %v2998_v49 = vmul.f32 0.03125, %v2988_v43  ;;  %v2999_v59 = vmul.f32 0.03125, %v2991_v40  ;;  %v3039_v23 = vsub.s32 2, %v9216_v21  ;;  %v8977_v43 = vld [vmem:[%s11280_s5] sm:$0xff] }
 0xa20   :  { %v3187_v47 = vrot.slane %v8977_v43, %v3186_v62 }
 0xa21   :  { %v8804_v9 = vpop.eup %8803  ;;  %v3004_v26 = vadd.f32 1e-06, %v2998_v49  ;;  %v3005_v36 = vadd.f32 1e-06, %v2999_v59  ;;  %v3040_v40 = vrot.slane %v8977_v43, %v3039_v23 }
 0xa22   :  { %v2994_v61 = vpop.xlane.xlu0 %2993  ;;  %v3020_v32 = vpop.permute.xlu1 %3019  ;;  %v3013_v7 = vmul.f32 %v8804_v9, %v10075_v15 }
 0xa23   :  { %8807 = vrsqrt.f32 %v3004_v26  ;;  %v3000_v39 = vmul.f32 0.03125, %v2994_v61  ;;  %v3023_v19 = vmul.f32 %v3020_v32, %v3014_v1 }
 0xa24   :  { %8809 = vrsqrt.f32 %v3005_v36  ;;  %v3022_v31 = vmul.f32 %v3020_v32, %v3013_v7 }
 0xa25   :  { %v3006_v51 = vadd.f32 1e-06, %v3000_v39 }
 0xa26   :  { %v3029_v5 = vpop.permute.xlu0 %3028 }
 0xa27   :  { %8811 = vrsqrt.f32 %v3006_v51  ;;  %v3032_v55 = vadd.f32 %v3029_v5, %v3023_v19  ;;  %v3031_v2 = vadd.f32 %v3029_v5, %v3022_v31 }
 0xa29   :  { %v8806_v13 = vpop.eup %8805  ;;  %7807 = vmatprep.mubr.msk.f32.mxu0 %vm182_vm0, %v3031_v2 }
 0xa2a   :  { %7808 = vmatmul.mubr.msk.f32.vlgmr.msra.gmra.mrb[62].mxu0 %vm182_vm0, %v3032_v55  ;;  %v3015_v3 = vmul.f32 %v8806_v13, %v10082_v12 }
 0xa2c   :  { %v3024_v15 = vmul.f32 %v3020_v32, %v3015_v3 }
 0xa2d   :  { %v8808_v58 = vpop.eup %8807 }
 0xa2e   :  { %v8810_v50 = vpop.eup %8809  ;;  %v3033_v60 = vadd.f32 %v3029_v5, %v3024_v15  ;;  %v3016_v6 = vmul.f32 %v8808_v58, %v10087_v28  ;;  %v171_v28 = vld [vmem:[%s11279_s4 + $0x30] sm:$0xff] }
 0xa2f   :  { %v3017_v53 = vmul.f32 %v8810_v50, %v10090_v46  ;;  %v172_v46 = vld [vmem:[%s11279_s4 + $0x38] sm:$0xff] }
 0xa30   :  { %7810 = vmatprep.mubr.msk.f32.mxu0 %vm182_vm0, %v3033_v60  ;;  %v3025_v30 = vmul.f32 %v3020_v32, %v3016_v6  ;;  %v8360_v10 = vpack.c.bf16 %v172_v46, %v171_v28 }
 0xa31   :  { %v8812_v14 = vpop.eup %8811  ;;  %v3026_v0 = vmul.f32 %v3020_v32, %v3017_v53 }
 0xa32   :  { %v3034_v57 = vadd.f32 %v3029_v5, %v3025_v30  ;;  %v3018_v63 = vmul.f32 %v8812_v14, %v10098_v29  ;;  %8361 = vmatprep.subr.bf16.mxu1 %v8360_v10  ;;  %v173_v29 = vld [vmem:[%s11279_s4 + $0x40] sm:$0xff] }
 0xa33   :  { %v3035_v18 = vadd.f32 %v3029_v5, %v3026_v0  ;;  %8363 = vmatpush3.bf16.msra.mxu1 %v8360_v10  ;;  %v8364_v52 = vpack.c.bf16 %v174_v24, %v173_v29 }
 0xa34   :  { %7811 = vmatmul.mubr.msk.f32.gmra.mrb[64].mxu0 %vm182_vm0, %v3034_v57  ;;  %v3027_v12 = vmul.f32 %v3020_v32, %v3018_v63 }
 0xa35   :  { %7813 = vmatprep.mubr.msk.f32.mxu0 %vm182_vm0, %v3035_v18  ;;  %8365 = vmatprep.subr.bf16.mxu1 %v8364_v52 }
 0xa36   :  { %v3036_v54 = vadd.f32 %v3029_v5, %v3027_v12 }
 0xa37   :  { %8367 = vmatpush3.bf16.msra.mxu1 %v8364_v52 }
 0xa38   :  { %7814 = vmatmul.mubr.msk.f32.gmra.mrb[66].mxu0 %vm182_vm0, %v3036_v54  ;;  %8369 = vmatprep.subr.bf16.mxu1 %v8368_v48 }
 0xa3b   :  { %8371 = vmatpush3.bf16.msra.mxu1 %v8368_v48 }
 0xa3c   :  { %8373 = vmatprep.subr.bf16.mxu1 %v8372_v25 }
 0xa3f   :  { %8375 = vmatpush3.bf16.msra.mxu1 %v8372_v25 }
 0xa40   :  { %8377 = vmatprep.subr.bf16.mxu1 %v8376_v8 }
 0xa43   :  { %8379 = vmatpush3.bf16.msra.mxu1 %v8376_v8 }
 0xa44   :  { %8392 = vmatprep.subr.bf16.mxu1 %v9011_v35 }
 0xafd   :  { %v7809_v49 = vpop.f32.mrb[62].mxu0 }
 0xafe   :  { %v3131_v59 = vadd.f32 %v7809_v49, %v3040_v40  ;;  %v3125_v16 = vpop.f32.mrb[63].mxu0 }
 0xaff   :  { %v3126_v9 = vadd.f32 %v3125_v16, %v3040_v40 }
 0xb00   :  { %v3161_v26 = vmul.f32 0.70710677, %v3131_v59  ;;  %v3155_v60 = vmul.f32 0.5, %v3131_v59 }
 0xb01   :  { %v3160_v36 = vmul.f32 0.70710677, %v3126_v9  ;;  %v3154_v15 = vmul.f32 0.5, %v3126_v9 }
 0xb02   :  { %8813 = verf.f32 %v3161_v26 }
 0xb03   :  { %8815 = verf.f32 %v3160_v36 }
 0xb07   :  { %v7812_v61 = vpop.f32.mrb[64].mxu0 }
 0xb08   :  { %v3141_v32 = vadd.f32 %v7812_v61, %v3040_v40  ;;  %v3135_v7 = vpop.f32.mrb[65].mxu0 }
 0xb09   :  { %v3136_v1 = vadd.f32 %v3135_v7, %v3040_v40 }
 0xb0a   :  { %v3163_v39 = vmul.f32 0.70710677, %v3141_v32  ;;  %v3157_v12 = vmul.f32 0.5, %v3141_v32 }
 0xb0b   :  { %v3162_v31 = vmul.f32 0.70710677, %v3136_v1  ;;  %v7815_v51 = vpop.f32.mrb[66].mxu0  ;;  %v3156_v63 = vmul.f32 0.5, %v3136_v1 }
 0xb0c   :  { %v8814_v19 = vpop.eup %8813  ;;  %8817 = verf.f32 %v3163_v39  ;;  %v3151_v5 = vadd.f32 %v7815_v51, %v3040_v40  ;;  %v3145_v55 = vpop.f32.mrb[67].mxu0 }
 0xb0d   :  { %v8816_v2 = vpop.eup %8815  ;;  %v3173_v13 = vadd.f32 1.0, %v8814_v19  ;;  %8819 = verf.f32 %v3162_v31  ;;  %v3146_v3 = vadd.f32 %v3145_v55, %v3040_v40 }
 0xb0e   :  { %v3172_v58 = vadd.f32 1.0, %v8816_v2  ;;  %v3165_v50 = vmul.f32 0.70710677, %v3151_v5  ;;  %v3159_v45 = vmul.f32 0.5, %v3151_v5 }
 0xb0f   :  { %v3164_v6 = vmul.f32 0.70710677, %v3146_v3  ;;  %v3179_v30 = vmul.f32 %v3173_v13, %v3155_v60  ;;  %v3158_v24 = vmul.f32 0.5, %v3146_v3 }
 0xb10   :  { %8821 = verf.f32 %v3165_v50  ;;  %v3178_v53 = vmul.f32 %v3172_v58, %v3154_v15 }
 0xb11   :  { %8823 = verf.f32 %v3164_v6 }
 0xb12   :  { %7848 = vmatprep.mubr.f32.mxu1 %v3178_v53 }
 0xb13   :  { %7849 = vmatmul.mubr.f32.vlgmr.msra.gmra.mrb[70].mxu1 %v3179_v30 }
 0xb16   :  { %v8818_v14 = vpop.eup %8817 }
 0xb17   :  { %v8820_v0 = vpop.eup %8819  ;;  %v3175_v57 = vadd.f32 1.0, %v8818_v14 }
 0xb18   :  { %v3174_v18 = vadd.f32 1.0, %v8820_v0 }
 0xb19   :  { %v3181_v29 = vmul.f32 %v3175_v57, %v3157_v12 }
 0xb1a   :  { %v8822_v54 = vpop.eup %8821  ;;  %v3180_v28 = vmul.f32 %v3174_v18, %v3156_v63 }
 0xb1b   :  { %v8824_v46 = vpop.eup %8823  ;;  %v3177_v10 = vadd.f32 1.0, %v8822_v54 }
 0xb1c   :  { %v3176_v52 = vadd.f32 1.0, %v8824_v46  ;;  %7851 = vmatprep.mubr.f32.mxu1 %v3180_v28 }
 0xb1d   :  { %7852 = vmatmul.mubr.f32.gmra.mrb[72].mxu1 %v3181_v29  ;;  %v3183_v48 = vmul.f32 %v3177_v10, %v3159_v45 }
 0xb1e   :  { %v3182_v56 = vmul.f32 %v3176_v52, %v3158_v24 }
 0xb20   :  { %7854 = vmatprep.mubr.f32.mxu1 %v3182_v56 }
 0xb21   :  { %7855 = vmatmul.mubr.f32.gmra.mrb[74].mxu1 %v3183_v48 }
 0xb22   :  { %7895 = vmatprep.mubr.msk.f32.mxu1 %vm9012_vm1, %v9013_v38 }
 0xbe6   :  { %v7850_v25 = vpop.f32.mrb[70].mxu1 }
 0xbe7   :  { %v3260_v42 = vadd.f32 %v7850_v25, %v3187_v47  ;;  %v3254_v27 = vpop.f32.mrb[71].mxu1  ;;  %v6946_v25 = vld [vmem:[%s11278_s3 + $0x40] sm:$0xff] }
 0xbe8   :  { %v3255_v8 = vadd.f32 %v3254_v27, %v3187_v47 }
 0xbe9   :  { %v10194_v40 = vadd.f32 %v3260_v42, %v10040_v44  ;;  %v6948_v42 = vld [vmem:[%s11278_s3 + $0x50] sm:$0xff] }
 0xbea   :  { %v10197_v49 = vadd.f32 %v3255_v8, %v10045_v33  ;;  %v8380_v8 = vpack.c.bf16 %v6948_v42, %v6946_v25 }
 0xbeb   :  { %v3320_v59 = vsel %vm182_vm0, %v10194_v40, 0.0 }
 0xbec   :  { %3321 = vadd.xlane.f32.xlu0 %v3320_v59  ;;  %v3317_v16 = vsel %vm182_vm0, %v10197_v49, 0.0  ;;  %8381 = vmatprep.subr.bf16.mxu0 %v8380_v8  ;;  %v6950_v59 = vld [vmem:[%s11278_s3 + $0x60] sm:$0xff] }
 0xbed   :  { %3318 = vadd.xlane.f32.xlu1 %v3317_v16  ;;  %8383 = vmatpush3.bf16.msra.mxu0 %v8380_v8  ;;  %v6952_v16 = vld [vmem:[%s11278_s3 + $0x70] sm:$0xff] }
 0xbf0   :  { %v7853_v9 = vpop.f32.mrb[72].mxu1 }
 0xbf1   :  { %v3270_v43 = vadd.f32 %v7853_v9, %v3187_v47  ;;  %v3264_v26 = vpop.f32.mrb[73].mxu1  ;;  %v8384_v9 = vpack.c.bf16 %v6952_v16, %v6950_v59 }
 0xbf2   :  { %v3265_v36 = vadd.f32 %v3264_v26, %v3187_v47 }
 0xbf3   :  { %v10204_v61 = vadd.f32 %v3270_v43, %v10053_v37  ;;  %8385 = vmatprep.subr.bf16.mxu0 %v8384_v9 }
 0xbf4   :  { %v10207_v44 = vadd.f32 %v3265_v36, %v10050_v20  ;;  %v7856_v33 = vpop.f32.mrb[74].mxu1  ;;  %8387 = vmatpush3.bf16.msra.mxu0 %v8384_v9 }
 0xbf5   :  { %v3280_v32 = vadd.f32 %v7856_v33, %v3187_v47  ;;  %v3274_v7 = vpop.f32.mrb[75].mxu1  ;;  %v3326_v1 = vsel %vm182_vm0, %v10204_v61, 0.0  ;;  %8388 = vmatprep.subr.bf16.mxu0 %v9011_v35 }
 0xbf6   :  { %v3275_v39 = vadd.f32 %v3274_v7, %v3187_v47  ;;  %3327 = vadd.xlane.f32.xlu0 %v3326_v1  ;;  %v3323_v31 = vsel %vm182_vm0, %v10207_v44, 0.0  ;;  %v10262_v47 = vld [vmem:[%s11280_s5 + $0x8] sm:$0xff] }
 0xbf7   :  { %v10214_v51 = vadd.f32 %v3280_v32, %v10065_v41  ;;  %3324 = vadd.xlane.f32.xlu1 %v3323_v31  ;;  %v10272_v27 = vrot.slane %v10262_v47, %v9219_v22 }
 0xbf8   :  { %v10217_v37 = vadd.f32 %v3275_v39, %v10058_v34 }
 0xbf9   :  { %v3332_v20 = vsel %vm182_vm0, %v10214_v51, 0.0 }
 0xbfa   :  { %3333 = vadd.xlane.f32.xlu0 %v3332_v20  ;;  %v3329_v19 = vsel %vm182_vm0, %v10217_v37, 0.0 }
 0xbfb   :  { %3330 = vadd.xlane.f32.xlu1 %v3329_v19 }
 0xc79   :  { %v3322_v5 = vpop.xlane.xlu0 %3321 }
 0xc7a   :  { %v3336_v55 = vmul.f32 0.03125, %v3322_v5  ;;  %v3319_v2 = vpop.xlane.xlu1 %3318 }
 0xc7b   :  { %v3335_v13 = vmul.f32 0.03125, %v3319_v2 }
 0xc7c   :  { %v10224_v3 = vsub.f32 %v10194_v40, %v3336_v55 }
 0xc7d   :  { %v10227_v41 = vsub.f32 %v10197_v49, %v3335_v13 }
 0xc7e   :  { %v3348_v34 = vmul.f32 %v10224_v3, %v10224_v3 }
 0xc7f   :  { %v3347_v15 = vmul.f32 %v10227_v41, %v10227_v41 }
 0xc80   :  { %v3356_v58 = vsel %vm182_vm0, %v3348_v34, 0.0 }
 0xc81   :  { %3357 = vadd.xlane.f32.xlu0 %v3356_v58  ;;  %v3353_v50 = vsel %vm182_vm0, %v3347_v15, 0.0 }
 0xc82   :  { %3354 = vadd.xlane.f32.xlu1 %v3353_v50 }
 0xc83   :  { %v3328_v60 = vpop.xlane.xlu0 %3327 }
 0xc84   :  { %v3338_v6 = vmul.f32 0.03125, %v3328_v60  ;;  %v3325_v53 = vpop.xlane.xlu1 %3324 }
 0xc85   :  { %v3337_v30 = vmul.f32 0.03125, %v3325_v53 }
 0xc86   :  { %v10236_v14 = vsub.f32 %v10204_v61, %v3338_v6 }
 0xc87   :  { %v10239_v0 = vsub.f32 %v10207_v44, %v3337_v30  ;;  %v3334_v57 = vpop.xlane.xlu0 %3333 }
 0xc88   :  { %v3340_v63 = vmul.f32 0.03125, %v3334_v57  ;;  %v3331_v18 = vpop.xlane.xlu1 %3330  ;;  %v3350_v12 = vmul.f32 %v10236_v14, %v10236_v14 }
 0xc89   :  { %v3339_v54 = vmul.f32 0.03125, %v3331_v18  ;;  %v3349_v28 = vmul.f32 %v10239_v0, %v10239_v0 }
 0xc8a   :  { %v10246_v46 = vsub.f32 %v10214_v51, %v3340_v63  ;;  %v3362_v10 = vsel %vm182_vm0, %v3350_v12, 0.0 }
 0xc8b   :  { %v10250_v29 = vsub.f32 %v10217_v37, %v3339_v54  ;;  %3363 = vadd.xlane.f32.xlu0 %v3362_v10  ;;  %v3359_v24 = vsel %vm182_vm0, %v3349_v28, 0.0 }
 0xc8c   :  { %3360 = vadd.xlane.f32.xlu1 %v3359_v24  ;;  %v3352_v52 = vmul.f32 %v10246_v46, %v10246_v46 }
 0xc8d   :  { %v3351_v45 = vmul.f32 %v10250_v29, %v10250_v29 }
 0xc8e   :  { %v3368_v56 = vsel %vm182_vm0, %v3352_v52, 0.0 }
 0xc8f   :  { %3369 = vadd.xlane.f32.xlu0 %v3368_v56  ;;  %v3365_v48 = vsel %vm182_vm0, %v3351_v45, 0.0 }
 0xc90   :  { %3366 = vadd.xlane.f32.xlu1 %v3365_v48 }
 0xca1   :  { %3406 = vrot.lane.b32.xlu1 %v10272_v27, %s9007_s20 }
 0xd0e   :  { %v3358_v43 = vpop.xlane.xlu0 %3357 }
 0xd0f   :  { %v3372_v26 = vmul.f32 0.03125, %v3358_v43  ;;  %v3355_v36 = vpop.xlane.xlu1 %3354 }
 0xd10   :  { %v3371_v33 = vmul.f32 0.03125, %v3355_v36 }
 0xd11   :  { %v3378_v32 = vadd.f32 1e-06, %v3372_v26 }
 0xd12   :  { %v3377_v7 = vadd.f32 1e-06, %v3371_v33 }
 0xd13   :  { %8825 = vrsqrt.f32 %v3378_v32 }
 0xd14   :  { %8827 = vrsqrt.f32 %v3377_v7 }
 0xd18   :  { %v3364_v1 = vpop.xlane.xlu0 %3363 }
 0xd19   :  { %v3374_v39 = vmul.f32 0.03125, %v3364_v1  ;;  %v3361_v31 = vpop.xlane.xlu1 %3360 }
 0xd1a   :  { %v3373_v20 = vmul.f32 0.03125, %v3361_v31 }
 0xd1b   :  { %v3380_v19 = vadd.f32 1e-06, %v3374_v39 }
 0xd1c   :  { %v3379_v5 = vadd.f32 1e-06, %v3373_v20  ;;  %v3370_v55 = vpop.xlane.xlu0 %3369 }
 0xd1d   :  { %v8826_v2 = vpop.eup %8825  ;;  %8829 = vrsqrt.f32 %v3380_v19  ;;  %v3376_v13 = vmul.f32 0.03125, %v3370_v55  ;;  %v3367_v34 = vpop.xlane.xlu1 %3366 }
 0xd1e   :  { %v8828_v15 = vpop.eup %8827  ;;  %v3390_v58 = vmul.f32 %v8826_v2, %v10224_v3  ;;  %8831 = vrsqrt.f32 %v3379_v5  ;;  %v3375_v50 = vmul.f32 0.03125, %v3367_v34 }
 0xd1f   :  { %v3382_v60 = vadd.f32 1e-06, %v3376_v13  ;;  %v3389_v6 = vmul.f32 %v8828_v15, %v10227_v41 }
 0xd20   :  { %v3400_v53 = vmul.f32 %v10272_v27, %v3390_v58  ;;  %v3381_v30 = vadd.f32 1e-06, %v3375_v50 }
 0xd21   :  { %8833 = vrsqrt.f32 %v3382_v60  ;;  %v3407_v57 = vpop.permute.xlu1 %3406  ;;  %v3399_v63 = vmul.f32 %v10272_v27, %v3389_v6 }
 0xd22   :  { %8835 = vrsqrt.f32 %v3381_v30  ;;  %v3410_v12 = vadd.f32 %v3407_v57, %v3400_v53 }
 0xd23   :  { %v3409_v18 = vadd.f32 %v3407_v57, %v3399_v63 }
 0xd25   :  { %7865 = vmatprep.mubr.msk.f32.mxu0 %vm182_vm0, %v3409_v18 }
 0xd26   :  { %7866 = vmatmul.mubr.msk.f32.vlgmr.msra.gmra.mrb[68].mxu0 %vm182_vm0, %v3410_v12 }
 0xd27   :  { %v8830_v3 = vpop.eup %8829 }
 0xd28   :  { %v8832_v54 = vpop.eup %8831  ;;  %v3392_v28 = vmul.f32 %v8830_v3, %v10236_v14 }
 0xd29   :  { %v3391_v41 = vmul.f32 %v8832_v54, %v10239_v0 }
 0xd2a   :  { %v3402_v10 = vmul.f32 %v10272_v27, %v3392_v28 }
 0xd2b   :  { %v8834_v24 = vpop.eup %8833  ;;  %v3401_v52 = vmul.f32 %v10272_v27, %v3391_v41 }
 0xd2c   :  { %v8836_v45 = vpop.eup %8835  ;;  %v3394_v56 = vmul.f32 %v8834_v24, %v10246_v46  ;;  %v3412_v42 = vadd.f32 %v3407_v57, %v3402_v10  ;;  %v10306_v46 = vrot.slane %v10262_v47, %v284_v17 }
 0xd2d   :  { %v3411_v48 = vadd.f32 %v3407_v57, %v3401_v52  ;;  %v3393_v25 = vmul.f32 %v8836_v45, %v10250_v29 }
 0xd2e   :  { %v3404_v8 = vmul.f32 %v10272_v27, %v3394_v56 }
 0xd2f   :  { %7868 = vmatprep.mubr.msk.f32.mxu0 %vm182_vm0, %v3411_v48  ;;  %v3403_v14 = vmul.f32 %v10272_v27, %v3393_v25 }
 0xd30   :  { %7869 = vmatmul.mubr.msk.f32.gmra.mrb[70].mxu0 %vm182_vm0, %v3412_v42  ;;  %v3414_v59 = vadd.f32 %v3407_v57, %v3404_v8 }
 0xd31   :  { %v3413_v0 = vadd.f32 %v3407_v57, %v3403_v14 }
 0xd33   :  { %7871 = vmatprep.mubr.msk.f32.mxu0 %vm182_vm0, %v3413_v0 }
 0xd34   :  { %7872 = vmatmul.mubr.msk.f32.gmra.mrb[72].mxu0 %vm182_vm0, %v3414_v59 }
 0xd35   :  { %7880 = vmatprep.mubr.msk.f32.mxu0 %vm9012_vm1, %v9013_v38 }
 0xdf9   :  { %v7867_v29 = vpop.f32.mrb[68].mxu0 }
 0xdfa   :  { %v10309_v16 = vadd.f32 %v7867_v29, %v10306_v46  ;;  %v3503_v9 = vpop.f32.mrb[69].mxu0 }
 0xdfb   :  { %v10312_v43 = vadd.f32 %v3503_v9, %v10306_v46 }
 0xdfc   :  { %3540 = vrot.lane.b32.xlu1 %v10309_v16, %s9008_s24 }
 0xdfd   :  { %3538 = vrot.lane.b32.xlu0 %v10312_v43, %s9008_s24  ;;  %v8603_v39 = vpack.i.bf16 %v10309_v16, %v10312_v43 }
 0xe03   :  { %v7870_v26 = vpop.f32.mrb[70].mxu0 }
 0xe04   :  { %v10319_v36 = vadd.f32 %v7870_v26, %v10306_v46  ;;  %v3513_v17 = vpop.f32.mrb[71].mxu0 }
 0xe05   :  { %v10322_v47 = vadd.f32 %v3513_v17, %v10306_v46 }
 0xe06   :  { %3544 = vrot.lane.b32.xlu1 %v10319_v36, %s9008_s24 }
 0xe07   :  { %v7873_v33 = vpop.f32.mrb[72].mxu0  ;;  %3542 = vrot.lane.b32.xlu0 %v10322_v47, %s9008_s24 }
 0xe08   :  { %v3523_v32 = vpop.f32.mrb[73].mxu0  ;;  %v10340_v1 = vadd.f32 %v7873_v33, %v10306_v46 }
 0xe09   :  { %v10329_v7 = vadd.f32 %v3523_v32, %v10306_v46 }
 0xe0b   :  { %3546 = vrot.lane.b32.xlu1 %v10329_v7, %s9008_s24  ;;  %3552 = vrot.lane.b32.xlu0 %v10309_v16, %s9009_s25  ;;  %v8608_v31 = vpack.i.bf16 %v10329_v7, %v10319_v36 }
 0xe0f   :  { %3550 = vrot.lane.b32.xlu1 %v10312_v43, %s9009_s25  ;;  %3556 = vrot.lane.b32.xlu0 %v10319_v36, %s9009_s25 }
 0xe13   :  { %3548 = vrot.lane.b32.xlu1 %v10340_v1, %s9008_s24  ;;  %3554 = vrot.lane.b32.xlu0 %v10322_v47, %s9009_s25 }
 0xe17   :  { %3558 = vrot.lane.b32.xlu1 %v10329_v7, %s9009_s25  ;;  %3564 = vrot.lane.b32.xlu0 %v10309_v16, %s9010_s26 }
 0xe1b   :  { %3562 = vrot.lane.b32.xlu1 %v10312_v43, %s9010_s26  ;;  %3568 = vrot.lane.b32.xlu0 %v10319_v36, %s9010_s26 }
 0xe1f   :  { %3560 = vrot.lane.b32.xlu1 %v10340_v1, %s9009_s25  ;;  %3566 = vrot.lane.b32.xlu0 %v10322_v47, %s9010_s26 }
 0xe23   :  { %3570 = vrot.lane.b32.xlu1 %v10329_v7, %s9010_s26  ;;  %8604 = vrot.lane.b32.xlu0 %v8603_v39, %s9007_s20 }
 0xe27   :  { %3572 = vrot.lane.b32.xlu1 %v10340_v1, %s9010_s26  ;;  %3578 = vrot.lane.b32.xlu0 %v10322_v47, %s9007_s20 }
 0xe2b   :  { %8609 = vrot.lane.b32.xlu1 %v8608_v31, %s9007_s20  ;;  %3676 = vrot.lane.b32.xlu0 %v10340_v1, %s9007_s20 }
 0xe6e   :  { %v10372_v20 = vpop.permute.xlu1 %3540 }
 0xe6f   :  { %v10374_v19 = vpop.permute.xlu0 %3538 }
 0xe70   :  { %v8613_v5 = vpack.i.bf16 %v10372_v20, %v10374_v19 }
 0xe72   :  { %8614 = vrot.lane.b32.xlu1 %v8613_v5, %s9007_s20 }
 0xe78   :  { %v10379_v55 = vpop.permute.xlu1 %3544 }
 0xe79   :  { %v10381_v2 = vpop.permute.xlu0 %3542 }
 0xe7a   :  { %3774 = vrot.lane.b32.xlu0 %v10381_v2, %s9007_s20 }
 0xe7d   :  { %v10385_v13 = vpop.permute.xlu1 %3546  ;;  %v10387_v34 = vpop.permute.xlu0 %3552 }
 0xe7e   :  { %v8618_v15 = vpack.i.bf16 %v10385_v13, %v10379_v55 }
 0xe80   :  { %8619 = vrot.lane.b32.xlu1 %v8618_v15, %s9007_s20 }
 0xe81   :  { %v10392_v58 = vpop.permute.xlu1 %3550  ;;  %v10394_v50 = vpop.permute.xlu0 %3556 }
 0xe82   :  { %v8623_v60 = vpack.i.bf16 %v10387_v34, %v10392_v58 }
 0xe84   :  { %8624 = vrot.lane.b32.xlu1 %v8623_v60, %s9007_s20 }
 0xe85   :  { %v10399_v6 = vpop.permute.xlu1 %3548  ;;  %v10401_v53 = vpop.permute.xlu0 %3554 }
 0xe86   :  { %3872 = vrot.lane.b32.xlu0 %v10399_v6, %s9007_s20 }
 0xe89   :  { %v10405_v30 = vpop.permute.xlu1 %3558  ;;  %v10407_v57 = vpop.permute.xlu0 %3564 }
 0xe8a   :  { %v8628_v63 = vpack.i.bf16 %v10405_v30, %v10394_v50  ;;  %3970 = vrot.lane.b32.xlu0 %v10401_v53, %s9007_s20 }
 0xe8c   :  { %8629 = vrot.lane.b32.xlu1 %v8628_v63, %s9007_s20 }
 0xe8d   :  { %v10414_v18 = vpop.permute.xlu1 %3562  ;;  %v10416_v12 = vpop.permute.xlu0 %3568 }
 0xe8e   :  { %v10420_v3 = vpack.i.bf16 %v10407_v57, %v10414_v18 }
 0xe90   :  { %8634 = vrot.lane.b32.xlu1 %v10420_v3, %s9007_s20 }
 0xe91   :  { %v10424_v54 = vpop.permute.xlu1 %3560  ;;  %v10426_v28 = vpop.permute.xlu0 %3566 }
 0xe92   :  { %4068 = vrot.lane.b32.xlu0 %v10424_v54, %s9007_s20 }
 0xe95   :  { %v10430_v41 = vpop.permute.xlu1 %3570  ;;  %v8605_v10 = vpop.permute.xlu0 %8604 }
 0xe96   :  { %v10434_v24 = vpack.i.bf16 %v10430_v41, %v10416_v12  ;;  %v8607_v52 = vunpack.i.h.bf16 %v8605_v10  ;;  %v8606_v45 = vunpack.i.l.bf16 %v8605_v10  ;;  %4166 = vrot.lane.b32.xlu0 %v10426_v28, %s9007_s20 }
 0xe98   :  { %v8389_v56 = vpack.c.bf16 %v8607_v52, %v8606_v45  ;;  %8639 = vrot.lane.b32.xlu1 %v10434_v24, %s9007_s20 }
 0xe99   :  { %v10440_v48 = vpop.permute.xlu1 %3572  ;;  %v3579_v0 = vpop.permute.xlu0 %3578 }
 0xe9a   :  { %8644 = vrot.lane.b32.xlu0 %v8603_v39, %s9014_s27  ;;  %8391 = vmatpush3.bf16.xpose.msk.msra.mxu0 %vm9418_vm3, %v8389_v56 }
 0xe9b   :  { %7878 = vmatprep.subr.mxu0 %v9013_v38 }
 0xe9c   :  { %4264 = vrot.lane.b32.xlu1 %v10440_v48, %s9007_s20 }
 0xe9d   :  { %v8610_v25 = vpop.permute.xlu1 %8609  ;;  %v3677_v59 = vpop.permute.xlu0 %3676 }
 0xe9e   :  { %v8612_v42 = vunpack.i.h.bf16 %v8610_v25  ;;  %v8611_v8 = vunpack.i.l.bf16 %v8610_v25  ;;  %4674 = vrot.lane.b32.xlu0 %v10322_v47, %s9014_s27 }
 0xea0   :  { %v8393_v14 = vpack.c.bf16 %v8612_v42, %v8611_v8  ;;  %8649 = vrot.lane.b32.xlu1 %v8608_v31, %s9014_s27 }
 0xea2   :  { %8395 = vmatpush3.bf16.xpose.msk.msra.mxu1 %vm9418_vm3, %v8393_v14  ;;  %4772 = vrot.lane.b32.xlu0 %v10340_v1, %s9014_s27 }
 0xea3   :  { %7879 = vmatpush3.xpose.msk.msra.mxu0 %vm447_vm2, %v3579_v0  ;;  %7893 = vmatprep.subr.mxu1 %v9013_v38 }
 0xea4   :  { %8654 = vrot.lane.b32.xlu1 %v8613_v5, %s9014_s27  ;;  %8396 = vmatprep.subr.bf16.mxu0 %v9011_v35 }
 0xea6   :  { %7881 = vmatmul.mubr.msk.f32.vlgmr.msra.gmra.mrb[74].mxu0 %vm447_vm2, %v10312_v43  ;;  %4968 = vrot.lane.b32.xlu0 %v10399_v6, %s9014_s27 }
 0xea7   :  { %7883 = vmatprep.mubr.msk.f32.mxu0 %vm9012_vm1, %v9013_v38 }
 0xea8   :  { %4870 = vrot.lane.b32.xlu1 %v10381_v2, %s9014_s27 }
 0xeaa   :  { %7884 = vmatmul.mubr.msk.f32.gmra.mrb[76].mxu0 %vm447_vm2, %v10309_v16  ;;  %5164 = vrot.lane.b32.xlu0 %v10424_v54, %s9014_s27 }
 0xeab   :  { %7894 = vmatpush3.xpose.msk.msra.mxu1 %vm447_vm2, %v3677_v59  ;;  %7886 = vmatprep.mubr.msk.f32.mxu0 %vm9012_vm1, %v9013_v38 }
 0xeac   :  { %8659 = vrot.lane.b32.xlu1 %v8623_v60, %s9014_s27  ;;  %8400 = vmatprep.subr.bf16.mxu1 %v9011_v35 }
 0xeae   :  { %7887 = vmatmul.mubr.msk.f32.gmra.mrb[78].mxu0 %vm447_vm2, %v10322_v47  ;;  %7896 = vmatmul.mubr.msk.f32.vlgmr.msra.gmra.mrb[76].mxu1 %vm447_vm2, %v10319_v36 }
 0xeaf   :  { %8664 = vrot.lane.b32.xlu0 %v8618_v15, %s9014_s27  ;;  %7898 = vmatprep.mubr.msk.f32.mxu1 %vm9012_vm1, %v9013_v38 }
 0xeb0   :  { %5066 = vrot.lane.b32.xlu1 %v10401_v53, %s9014_s27  ;;  %7910 = vmatprep.mubr.msk.f32.mxu0 %vm9012_vm1, %v9013_v38 }
 0xeb2   :  { %7899 = vmatmul.mubr.msk.f32.gmra.mrb[78].mxu1 %vm447_vm2, %v10329_v7 }
 0xeb3   :  { %8669 = vrot.lane.b32.xlu0 %v8628_v63, %s9014_s27  ;;  %7901 = vmatprep.mubr.msk.f32.mxu1 %vm9012_vm1, %v9013_v38 }
 0xeb6   :  { %7902 = vmatmul.mubr.msk.f32.gmra.mrb[80].mxu1 %vm447_vm2, %v10340_v1 }
 0xeb7   :  { %7925 = vmatprep.mubr.msk.f32.mxu1 %vm9012_vm1, %v9013_v38 }
 0xee4   :  { %v8615_v29 = vpop.permute.xlu1 %8614 }
 0xee5   :  { %v8617_v16 = vunpack.i.h.bf16 %v8615_v29  ;;  %v8616_v9 = vunpack.i.l.bf16 %v8615_v29 }
 0xee7   :  { %v8397_v43 = vpack.c.bf16 %v8617_v16, %v8616_v9 }
 0xee9   :  { %8399 = vmatpush3.bf16.xpose.msk.msra.mxu0 %vm9418_vm3, %v8397_v43 }
 0xeea   :  { %7908 = vmatprep.subr.mxu0 %v9013_v38 }
 0xeec   :  { %v3775_v26 = vpop.permute.xlu0 %3774 }
 0xef1   :  { %7909 = vmatpush3.xpose.msk.msra.mxu0 %vm447_vm2, %v3775_v26 }
 0xef2   :  { %v8620_v36 = vpop.permute.xlu1 %8619  ;;  %8404 = vmatprep.subr.bf16.mxu0 %v9011_v35 }
 0xef3   :  { %v8622_v17 = vunpack.i.h.bf16 %v8620_v36  ;;  %v8621_v47 = vunpack.i.l.bf16 %v8620_v36 }
 0xef4   :  { %7911 = vmatmul.mubr.msk.f32.vlgmr.msra.gmra.mrb[80].mxu0 %vm447_vm2, %v10374_v19 }
 0xef5   :  { %v8401_v33 = vpack.c.bf16 %v8622_v17, %v8621_v47  ;;  %7913 = vmatprep.mubr.msk.f32.mxu0 %vm9012_vm1, %v9013_v38 }
 0xef6   :  { %v8625_v32 = vpop.permute.xlu1 %8624 }
 0xef7   :  { %v8627_v7 = vunpack.i.h.bf16 %v8625_v32  ;;  %v8626_v1 = vunpack.i.l.bf16 %v8625_v32  ;;  %8403 = vmatpush3.bf16.xpose.msk.msra.mxu1 %vm9418_vm3, %v8401_v33 }
 0xef8   :  { %7914 = vmatmul.mubr.msk.f32.gmra.mrb[82].mxu0 %vm447_vm2, %v10372_v20  ;;  %7923 = vmatprep.subr.mxu1 %v9013_v38  ;;  %v3873_v31 = vpop.permute.xlu0 %3872 }
 0xef9   :  { %v8405_v39 = vpack.c.bf16 %v8627_v7, %v8626_v1  ;;  %7916 = vmatprep.mubr.msk.f32.mxu0 %vm9012_vm1, %v9013_v38 }
 0xefb   :  { %8407 = vmatpush3.bf16.xpose.msk.msra.mxu0 %vm9418_vm3, %v8405_v39 }
 0xefc   :  { %7917 = vmatmul.mubr.msk.f32.gmra.mrb[84].mxu0 %vm447_vm2, %v10381_v2  ;;  %7938 = vmatprep.subr.mxu0 %v9013_v38  ;;  %v3971_v15 = vpop.permute.xlu0 %3970 }
 0xefd   :  { %7940 = vmatprep.mubr.msk.f32.mxu0 %vm9012_vm1, %v9013_v38 }
 0xefe   :  { %v8630_v19 = vpop.permute.xlu1 %8629 }
 0xeff   :  { %v8632_v20 = vunpack.i.h.bf16 %v8630_v19  ;;  %v8631_v5 = vunpack.i.l.bf16 %v8630_v19  ;;  %7924 = vmatpush3.xpose.msk.msra.mxu1 %vm447_vm2, %v3873_v31 }
 0xf00   :  { %8408 = vmatprep.subr.bf16.mxu1 %v9011_v35 }
 0xf01   :  { %v8409_v60 = vpack.c.bf16 %v8632_v20, %v8631_v5 }
 0xf02   :  { %v8635_v63 = vpop.permute.xlu1 %8634  ;;  %7926 = vmatmul.mubr.msk.f32.vlgmr.msra.gmra.mrb[82].mxu1 %vm447_vm2, %v10379_v55 }
 0xf03   :  { %v8637_v10 = vunpack.i.h.bf16 %v8635_v63  ;;  %v8636_v2 = vunpack.i.l.bf16 %v8635_v63  ;;  %7939 = vmatpush3.xpose.msk.msra.mxu0 %vm447_vm2, %v3971_v15  ;;  %8411 = vmatpush3.bf16.xpose.msk.msra.mxu1 %vm9418_vm3, %v8409_v60 }
 0xf04   :  { %v4069_v52 = vpop.permute.xlu0 %4068  ;;  %7928 = vmatprep.mubr.msk.f32.mxu1 %vm9012_vm1, %v9013_v38  ;;  %8412 = vmatprep.subr.bf16.mxu0 %v9011_v35 }
 0xf05   :  { %v8413_v45 = vpack.c.bf16 %v8637_v10, %v8636_v2  ;;  %7953 = vmatprep.subr.mxu1 %v9013_v38 }
 0xf06   :  { %7929 = vmatmul.mubr.msk.f32.gmra.mrb[84].mxu1 %vm447_vm2, %v10385_v13  ;;  %7941 = vmatmul.mubr.msk.f32.vlgmr.msra.gmra.mrb[86].mxu0 %vm447_vm2, %v10392_v58 }
 0xf07   :  { %8415 = vmatpush3.bf16.xpose.msk.msra.mxu0 %vm9418_vm3, %v8413_v45  ;;  %7931 = vmatprep.mubr.msk.f32.mxu1 %vm9012_vm1, %v9013_v38 }
 0xf08   :  { %v4167_v55 = vpop.permute.xlu0 %4166  ;;  %7943 = vmatprep.mubr.msk.f32.mxu0 %vm9012_vm1, %v9013_v38  ;;  %7968 = vmatprep.subr.mxu0 %v9013_v38 }
 0xf0a   :  { %v8640_v56 = vpop.permute.xlu1 %8639  ;;  %7932 = vmatmul.mubr.msk.f32.gmra.mrb[86].mxu1 %vm447_vm2, %v10399_v6  ;;  %7944 = vmatmul.mubr.msk.f32.gmra.mrb[88].mxu0 %vm447_vm2, %v10387_v34 }
 0xf0b   :  { %v8642_v13 = vunpack.i.h.bf16 %v8640_v56  ;;  %v8641_v58 = vunpack.i.l.bf16 %v8640_v56  ;;  %7954 = vmatpush3.xpose.msk.msra.mxu1 %vm447_vm2, %v4069_v52  ;;  %7946 = vmatprep.mubr.msk.f32.mxu0 %vm9012_vm1, %v9013_v38 }
 0xf0c   :  { %v8645_v25 = vpop.permute.xlu0 %8644  ;;  %7955 = vmatprep.mubr.msk.f32.mxu1 %vm9012_vm1, %v9013_v38  ;;  %8416 = vmatprep.subr.bf16.mxu1 %v9011_v35 }
 0xf0d   :  { %v8417_v42 = vpack.c.bf16 %v8642_v13, %v8641_v58  ;;  %v8647_v8 = vunpack.i.h.bf16 %v8645_v25  ;;  %v8646_v14 = vunpack.i.l.bf16 %v8645_v25 }
 0xf0e   :  { %v4265_v6 = vpop.permute.xlu1 %4264  ;;  %7947 = vmatmul.mubr.msk.f32.gmra.mrb[90].mxu0 %vm447_vm2, %v10401_v53  ;;  %7956 = vmatmul.mubr.msk.f32.vlgmr.msra.gmra.mrb[88].mxu1 %vm447_vm2, %v10394_v50 }
 0xf0f   :  { %7969 = vmatpush3.xpose.msk.msra.mxu0 %vm447_vm2, %v4167_v55  ;;  %8419 = vmatpush3.bf16.xpose.msk.msra.mxu1 %vm9418_vm3, %v8417_v42  ;;  %v8421_v34 = vpack.c.bf16 %v8647_v8, %v8646_v14  ;;  %vm6757_vm3 = vcmask 458118  }
 0xf10   :  { %7958 = vmatprep.mubr.msk.f32.mxu1 %vm9012_vm1, %v9013_v38  ;;  %7970 = vmatprep.mubr.msk.f32.mxu0 %vm9012_vm1, %v9013_v38  ;;  %v4675_v0 = vpop.permute.xlu0 %4674 }
 0xf11   :  { %8420 = vmatprep.subr.bf16.mxu0 %v9011_v35  ;;  %7983 = vmatprep.subr.mxu1 %v9013_v38 }
 0xf12   :  { %v8650_v53 = vpop.permute.xlu1 %8649  ;;  %7959 = vmatmul.mubr.msk.f32.gmra.mrb[90].mxu1 %vm447_vm2, %v10405_v30  ;;  %7971 = vmatmul.mubr.msk.f32.vlgmr.msra.gmra.mrb[92].mxu0 %vm447_vm2, %v10414_v18 }
 0xf13   :  { %8422 = vmatpush3.bf16.msra.mxu0 %v8421_v34  ;;  %7961 = vmatprep.mubr.msk.f32.mxu1 %vm9012_vm1, %v9013_v38  ;;  %v8652_v11 = vunpack.i.h.bf16 %v8650_v53  ;;  %v8651_v50 = vunpack.i.l.bf16 %v8650_v53 }
 0xf14   :  { %7973 = vmatprep.mubr.msk.f32.mxu0 %vm9012_vm1, %v9013_v38  ;;  %7998 = vmatprep.subr.mxu0 %v9013_v38 }
 0xf15   :  { %v8424_v30 = vpack.c.bf16 %v8652_v11, %v8651_v50 }
 0xf16   :  { %7962 = vmatmul.mubr.msk.f32.gmra.mrb[92].mxu1 %vm447_vm2, %v10424_v54  ;;  %7974 = vmatmul.mubr.msk.f32.gmra.mrb[94].mxu0 %vm447_vm2, %v10407_v57  ;;  %v4773_v57 = vpop.permute.xlu0 %4772 }
 0xf17   :  { %7984 = vmatpush3.xpose.msk.msra.mxu1 %vm447_vm2, %v4265_v6  ;;  %7999 = vmatpush3.msra.mxu0 %v4675_v0 }
 0xf18   :  { %7976 = vmatprep.mubr.msk.f32.mxu0 %vm9012_vm1, %v9013_v38  ;;  %7985 = vmatprep.mubr.msk.f32.mxu1 %vm9012_vm1, %v9013_v38 }
 0xf19   :  { %8423 = vmatprep.subr.bf16.mxu1 %v9011_v35  ;;  %8426 = vmatprep.subr.bf16.mxu0 %v9011_v35 }
 0xf1a   :  { %7977 = vmatmul.mubr.msk.f32.gmra.mrb[96].mxu0 %vm447_vm2, %v10426_v28  ;;  %7986 = vmatmul.mubr.msk.f32.vlgmr.msra.gmra.mrb[94].mxu1 %vm447_vm2, %v10416_v12 }
 0xf1b   :  { %8425 = vmatpush3.bf16.msra.mxu1 %v8424_v30  ;;  %7988 = vmatprep.mubr.msk.f32.mxu1 %vm9012_vm1, %v9013_v38 }
 0xf1c   :  { %8013 = vmatprep.subr.mxu1 %v9013_v38  ;;  %8000 = vmatprep.mubr.msk.f32.mxu0 %vm9012_vm1, %v9013_v38 }
 0xf1e   :  { %7989 = vmatmul.mubr.msk.f32.gmra.mrb[96].mxu1 %vm447_vm2, %v10430_v41 }
 0xf1f   :  { %8014 = vmatpush3.msra.mxu1 %v4773_v57  ;;  %7991 = vmatprep.mubr.msk.f32.mxu1 %vm9012_vm1, %v9013_v38 }
 0xf20   :  { %8429 = vmatprep.subr.bf16.mxu1 %v9011_v35 }
 0xf22   :  { %7992 = vmatmul.mubr.msk.f32.gmra.mrb[98].mxu1 %vm447_vm2, %v10440_v48 }
 0xf23   :  { %8015 = vmatprep.mubr.msk.f32.mxu1 %vm9012_vm1, %v9013_v38 }
 0xf79   :  { %v3658_v18 = vpop.f32.mrb[74].mxu0 }
 0xf7a   :  { %v4358_v12 = vmul.f32 0.35355338, %v3658_v18  ;;  %v7882_v54 = vpop.f32.mrb[75].mxu0 }
 0xf7c   :  { %v10603_v59 = vadd.f32 %v4358_v12, %v9581_v4 }
 0xf7d   :  { %v3663_v29 = vpop.f32.mrb[76].mxu0 }
 0xf7e   :  { %v4359_v41 = vmul.f32 0.35355338, %v3663_v29  ;;  %v7885_v16 = vpop.f32.mrb[77].mxu0  ;;  %v4406_v9 = vsel %vm1274_vm5, %v10603_v59, -inf }
 0xf7f   :  { %4407 = vmax.xlane.f32.xlu0 %v4406_v9 }
 0xf80   :  { %v10608_v43 = vadd.f32 %v4359_v41, %v9581_v4 }
 0xf81   :  { %v3668_v26 = vpop.f32.mrb[78].mxu0  ;;  %v3756_v36 = vpop.f32.mrb[76].mxu1 }
 0xf82   :  { %v4360_v17 = vmul.f32 0.35355338, %v3668_v26  ;;  %v4361_v47 = vmul.f32 0.35355338, %v3756_v36  ;;  %v7888_v33 = vpop.f32.mrb[79].mxu0  ;;  %v7897_v32 = vpop.f32.mrb[77].mxu1 }
 0xf83   :  { %v4409_v7 = vsel %vm1274_vm5, %v10608_v43, -inf }
 0xf84   :  { %v10613_v1 = vadd.f32 %v4360_v17, %v9581_v4  ;;  %4410 = vmax.xlane.f32.xlu1 %v4409_v7  ;;  %v10616_v31 = vadd.f32 %v4361_v47, %v9581_v4 }
 0xf85   :  { %v3761_v39 = vpop.f32.mrb[78].mxu1 }
 0xf86   :  { %v4362_v19 = vmul.f32 0.35355338, %v3761_v39  ;;  %v7900_v20 = vpop.f32.mrb[79].mxu1  ;;  %v4412_v5 = vsel %vm1274_vm5, %v10613_v1, -inf  ;;  %v4415_v2 = vsel %vm1274_vm5, %v10616_v31, -inf }
 0xf87   :  { %4413 = vmax.xlane.f32.xlu0 %v4412_v5 }
 0xf88   :  { %v10621_v60 = vadd.f32 %v4362_v19, %v9581_v4 }
 0xf89   :  { %v3766_v15 = vpop.f32.mrb[80].mxu1 }
 0xf8a   :  { %v4363_v63 = vmul.f32 0.35355338, %v3766_v15  ;;  %v7903_v10 = vpop.f32.mrb[81].mxu1  ;;  %v4418_v45 = vsel %vm1274_vm5, %v10621_v60, -inf }
 0xf8b   :  { %4416 = vmax.xlane.f32.xlu0 %v4415_v2 }
 0xf8c   :  { %v10626_v52 = vadd.f32 %v4363_v63, %v9581_v4 }
 0xf8e   :  { %v4421_v55 = vsel %vm1274_vm5, %v10626_v52, -inf }
 0xf8f   :  { %4419 = vmax.xlane.f32.xlu0 %v4418_v45 }
 0xf93   :  { %4422 = vmax.xlane.f32.xlu0 %v4421_v55 }
 0xfc7   :  { %v3854_v56 = vpop.f32.mrb[80].mxu0 }
 0xfc8   :  { %v4364_v13 = vmul.f32 0.35355338, %v3854_v56  ;;  %v7912_v58 = vpop.f32.mrb[81].mxu0 }
 0xfca   :  { %v10633_v25 = vadd.f32 %v4364_v13, %v9581_v4 }
 0xfcb   :  { %v3859_v42 = vpop.f32.mrb[82].mxu0 }
 0xfcc   :  { %v4365_v8 = vmul.f32 0.35355338, %v3859_v42  ;;  %v7915_v14 = vpop.f32.mrb[83].mxu0  ;;  %v4424_v6 = vsel %vm1274_vm5, %v10633_v25, -inf }
 0xfcd   :  { %4425 = vmax.xlane.f32.xlu1 %v4424_v6 }
 0xfce   :  { %v10638_v34 = vadd.f32 %v4365_v8, %v9581_v4 }
 0xfcf   :  { %v3864_v53 = vpop.f32.mrb[84].mxu0 }
 0xfd0   :  { %v4366_v11 = vmul.f32 0.35355338, %v3864_v53  ;;  %v7918_v50 = vpop.f32.mrb[85].mxu0  ;;  %v4427_v0 = vsel %vm1274_vm5, %v10638_v34, -inf }
 0xfd1   :  { %4428 = vmax.xlane.f32.xlu1 %v4427_v0 }
 0xfd2   :  { %v10643_v30 = vadd.f32 %v4366_v11, %v9581_v4 }
 0xfd4   :  { %v4430_v57 = vsel %vm1274_vm5, %v10643_v30, -inf }
 0xfd5   :  { %v3952_v18 = vpop.f32.mrb[82].mxu1  ;;  %4431 = vmax.xlane.f32.xlu1 %v4430_v57 }
 0xfd6   :  { %v4367_v12 = vmul.f32 0.35355338, %v3952_v18  ;;  %v7927_v54 = vpop.f32.mrb[83].mxu1 }
 0xfd8   :  { %v10648_v29 = vadd.f32 %v4367_v12, %v9581_v4 }
 0xfd9   :  { %v3957_v41 = vpop.f32.mrb[84].mxu1  ;;  %v4050_v16 = vpop.f32.mrb[86].mxu0 }
 0xfda   :  { %v4368_v9 = vmul.f32 0.35355338, %v3957_v41  ;;  %v4370_v26 = vmul.f32 0.35355338, %v4050_v16  ;;  %v7930_v36 = vpop.f32.mrb[85].mxu1  ;;  %v7942_v17 = vpop.f32.mrb[87].mxu0 }
 0xfdb   :  { %v4433_v47 = vsel %vm1274_vm5, %v10648_v29, -inf }
 0xfdc   :  { %v10653_v33 = vadd.f32 %v4368_v9, %v9581_v4  ;;  %v10656_v32 = vadd.f32 %v4370_v26, %v9581_v4  ;;  %4434 = vmax.xlane.f32.xlu0 %v4433_v47 }
 0xfdd   :  { %v3962_v7 = vpop.f32.mrb[86].mxu1  ;;  %v4055_v39 = vpop.f32.mrb[88].mxu0 }
 0xfde   :  { %v4369_v19 = vmul.f32 0.35355338, %v3962_v7  ;;  %v4371_v20 = vmul.f32 0.35355338, %v4055_v39  ;;  %v7933_v5 = vpop.f32.mrb[87].mxu1  ;;  %v7945_v15 = vpop.f32.mrb[89].mxu0 }
 0xfdf   :  { %v4436_v63 = vsel %vm1274_vm5, %v10653_v33, -inf  ;;  %v4442_v10 = vsel %vm1274_vm5, %v10656_v32, -inf }
 0xfe0   :  { %v10663_v2 = vadd.f32 %v4369_v19, %v9581_v4  ;;  %v10666_v45 = vadd.f32 %v4371_v20, %v9581_v4  ;;  %4437 = vmax.xlane.f32.xlu0 %v4436_v63  ;;  %4443 = vmax.xlane.f32.xlu1 %v4442_v10 }
 0xfe1   :  { %v4060_v55 = vpop.f32.mrb[90].mxu0  ;;  %v4148_v56 = vpop.f32.mrb[88].mxu1 }
 0xfe2   :  { %v4372_v13 = vmul.f32 0.35355338, %v4060_v55  ;;  %v4373_v58 = vmul.f32 0.35355338, %v4148_v56  ;;  %v7948_v42 = vpop.f32.mrb[91].mxu0  ;;  %v7957_v8 = vpop.f32.mrb[89].mxu1 }
 0xfe3   :  { %v4439_v14 = vsel %vm1274_vm5, %v10663_v2, -inf  ;;  %v4445_v6 = vsel %vm1274_vm5, %v10666_v45, -inf }
 0xfe4   :  { %v10673_v53 = vadd.f32 %v4372_v13, %v9581_v4  ;;  %v10676_v11 = vadd.f32 %v4373_v58, %v9581_v4  ;;  %4440 = vmax.xlane.f32.xlu0 %v4439_v14  ;;  %4446 = vmax.xlane.f32.xlu1 %v4445_v6 }
 0xfe5   :  { %v4153_v50 = vpop.f32.mrb[90].mxu1  ;;  %v4246_v0 = vpop.f32.mrb[92].mxu0 }
 0xfe6   :  { %v4374_v57 = vmul.f32 0.35355338, %v4153_v50  ;;  %v4376_v18 = vmul.f32 0.35355338, %v4246_v0  ;;  %v7960_v12 = vpop.f32.mrb[91].mxu1  ;;  %v7972_v54 = vpop.f32.mrb[93].mxu0 }
 0xfe7   :  { %v4451_v41 = vsel %vm1274_vm5, %v10676_v11, -inf  ;;  %v4448_v16 = vsel %vm1274_vm5, %v10673_v53, -inf }
 0xfe8   :  { %v10683_v9 = vadd.f32 %v4374_v57, %v9581_v4  ;;  %v10686_v26 = vadd.f32 %v4376_v18, %v9581_v4  ;;  %4452 = vmax.xlane.f32.xlu0 %v4451_v41  ;;  %4449 = vmax.xlane.f32.xlu1 %v4448_v16  ;;  %v10712_v41 = vpop.permute.xlu0 %4968 }
 0xfe9   :  { %v4158_v36 = vpop.f32.mrb[92].mxu1  ;;  %v4251_v17 = vpop.f32.mrb[94].mxu0 }
 0xfea   :  { %v4375_v47 = vmul.f32 0.35355338, %v4158_v36  ;;  %v4377_v7 = vmul.f32 0.35355338, %v4251_v17  ;;  %v7963_v39 = vpop.f32.mrb[93].mxu1  ;;  %v7975_v19 = vpop.f32.mrb[95].mxu0 }
 0xfeb   :  { %v4454_v20 = vsel %vm1274_vm5, %v10683_v9, -inf  ;;  %v4460_v5 = vsel %vm1274_vm5, %v10686_v26, -inf  ;;  %v10714_v36 = vpop.permute.xlu1 %8654 }
 0xfec   :  { %v10693_v15 = vadd.f32 %v4375_v47, %v9581_v4  ;;  %v10696_v63 = vadd.f32 %v4377_v7, %v9581_v4  ;;  %4455 = vmax.xlane.f32.xlu0 %v4454_v20  ;;  %4461 = vmax.xlane.f32.xlu1 %v4460_v5  ;;  %v10716_v17 = vpop.permute.xlu0 %5164 }
 0xfed   :  { %v4256_v10 = vpop.f32.mrb[96].mxu0  ;;  %v4344_v55 = vpop.f32.mrb[94].mxu1 }
 0xfee   :  { %v4378_v56 = vmul.f32 0.35355338, %v4256_v10  ;;  %v4379_v13 = vmul.f32 0.35355338, %v4344_v55  ;;  %v7978_v58 = vpop.f32.mrb[97].mxu0  ;;  %v7987_v42 = vpop.f32.mrb[95].mxu1 }
 0xfef   :  { %v4457_v8 = vsel %vm1274_vm5, %v10693_v15, -inf  ;;  %v4463_v14 = vsel %vm1274_vm5, %v10696_v63, -inf  ;;  %v10718_v47 = vpop.permute.xlu1 %4870 }
 0xff0   :  { %v10703_v6 = vadd.f32 %v4378_v56, %v9581_v4  ;;  %v10706_v50 = vadd.f32 %v4379_v13, %v9581_v4  ;;  %4458 = vmax.xlane.f32.xlu0 %v4457_v8  ;;  %4464 = vmax.xlane.f32.xlu1 %v4463_v14  ;;  %v10720_v7 = vpop.permute.xlu0 %8664 }
 0xff1   :  { %v4349_v0 = vpop.f32.mrb[96].mxu1 }
 0xff2   :  { %v7990_v57 = vpop.f32.mrb[97].mxu1  ;;  %v4469_v18 = vsel %vm1274_vm5, %v10706_v50, -inf  ;;  %v4466_v12 = vsel %vm1274_vm5, %v10703_v6, -inf  ;;  %v4380_v42 = vmul.f32 0.35355338, %v4349_v0 }
 0xff3   :  { %v10722_v39 = vpop.permute.xlu1 %8659 }
 0xff4   :  { %4470 = vmax.xlane.f32.xlu0 %v4469_v18  ;;  %4467 = vmax.xlane.f32.xlu1 %v4466_v12  ;;  %v10724_v19 = vpop.permute.xlu0 %8669  ;;  %v10733_v14 = vadd.f32 %v4380_v42, %v9581_v4 }
 0xff5   :  { %v4354_v54 = vpop.f32.mrb[98].mxu1 }
 0xff6   :  { %v7993_v16 = vpop.f32.mrb[99].mxu1  ;;  %v4381_v18 = vmul.f32 0.35355338, %v4354_v54 }
 0xff7   :  { %v10726_v5 = vpop.permute.xlu1 %5066 }
0x100c   :  { %v4408_v20 = vpop.xlane.xlu0 %4407 }
0x100d   :  { %v4478_v10 = vsub.f32 %v10603_v59, %v4408_v20  ;;  %v4472_v59 = vsel %vm1274_vm5, %v10733_v14, -inf }
0x100f   :  { %v4502_v55 = vmul.f32 1.442695, %v4478_v10 }
0x1011   :  { %8837 = vpow2.f32 %v4502_v55  ;;  %v4411_v56 = vpop.xlane.xlu1 %4410 }
0x1012   :  { %v4479_v13 = vsub.f32 %v10608_v43, %v4411_v56  ;;  %v10742_v43 = vadd.f32 %v4381_v18, %v9581_v4 }
0x1014   :  { %v4504_v58 = vmul.f32 1.442695, %v4479_v13  ;;  %v4475_v16 = vsel %vm1274_vm5, %v10742_v43, -inf  ;;  %v4414_v20 = vpop.xlane.xlu0 %4413 }
0x1015   :  { %v4480_v13 = vsub.f32 %v10613_v1, %v4414_v20 }
0x1016   :  { %8839 = vpow2.f32 %v4504_v58 }
0x1017   :  { %v4506_v18 = vmul.f32 1.442695, %v4480_v13 }
0x1018   :  { %v4417_v54 = vpop.xlane.xlu0 %4416 }
0x1019   :  { %v4481_v4 = vsub.f32 %v10616_v31, %v4417_v54 }
0x101b   :  { %v10730_v8 = vpop.eup %8837  ;;  %v4508_v55 = vmul.f32 1.442695, %v4481_v4 }
0x101c   :  { %v4550_v57 = vsel %vm1274_vm5, %v10730_v8, 0.0  ;;  %v4420_v10 = vpop.xlane.xlu0 %4419 }
0x101d   :  { %4551 = vadd.xlane.f32.xlu0 %v4550_v57  ;;  %v4482_v56 = vsub.f32 %v10621_v60, %v4420_v10  ;;  %8841 = vpow2.f32 %v4508_v55 }
0x101f   :  { %v4510_v42 = vmul.f32 1.442695, %v4482_v56 }
0x1020   :  { %v10737_v12 = vpop.eup %8839  ;;  %v4423_v58 = vpop.xlane.xlu0 %4422 }
0x1021   :  { %4473 = vmax.xlane.f32.xlu0 %v4472_v59  ;;  %v4553_v0 = vsel %vm1274_vm5, %v10737_v12, 0.0  ;;  %v4483_v57 = vsub.f32 %v10626_v52, %v4423_v58  ;;  %8843 = vpow2.f32 %v4510_v42 }
0x1022   :  { %4554 = vadd.xlane.f32.xlu1 %v4553_v0  ;;  %8845 = vpow2.f32 %v4506_v18 }
0x1026   :  { %4476 = vmax.xlane.f32.xlu1 %v4475_v16 }
0x1037   :  { %8679 = vrot.lane.b32.xlu1 %v10434_v24, %s9014_s27  ;;  %8674 = vrot.lane.b32.xlu0 %v10420_v3, %s9014_s27  ;;  %v4512_v24 = vmul.f32 1.442695, %v4483_v57  ;;  %v10756_v3 = vpop.eup %8841 }
0x1038   :  { %v4559_v31 = vsel %vm1274_vm5, %v10756_v3, 0.0  ;;  %v10760_v59 = vpop.eup %8843 }
0x1039   :  { %8847 = vpow2.f32 %v4512_v24  ;;  %v10762_v60 = vpop.eup %8845  ;;  %v4562_v1 = vsel %vm1274_vm5, %v10760_v59, 0.0 }
0x103a   :  { %v4556_v52 = vsel %vm1274_vm5, %v10762_v60, 0.0 }
0x1043   :  { %v10766_v0 = vpop.eup %8847 }
0x1044   :  { %v4565_v10 = vsel %vm1274_vm5, %v10766_v0, 0.0 }
0x1056   :  { %4560 = vadd.xlane.f32.xlu0 %v4559_v31 }
0x105a   :  { %4563 = vadd.xlane.f32.xlu0 %v4562_v1  ;;  %v4426_v16 = vpop.xlane.xlu1 %4425 }
0x105b   :  { %4557 = vadd.xlane.f32.xlu1 %v4556_v52  ;;  %v4484_v20 = vsub.f32 %v10633_v25, %v4426_v16 }
0x105d   :  { %v4514_v54 = vmul.f32 1.442695, %v4484_v20 }
0x105e   :  { %4566 = vadd.xlane.f32.xlu0 %v4565_v10  ;;  %v4429_v4 = vpop.xlane.xlu1 %4428 }
0x105f   :  { %8849 = vpow2.f32 %v4514_v54  ;;  %v4485_v55 = vsub.f32 %v10638_v34, %v4429_v4 }
0x1061   :  { %v4516_v56 = vmul.f32 1.442695, %v4485_v55 }
0x1062   :  { %v4432_v13 = vpop.xlane.xlu1 %4431 }
0x1063   :  { %8851 = vpow2.f32 %v4516_v56  ;;  %v4486_v58 = vsub.f32 %v10643_v30, %v4432_v13 }
0x1065   :  { %v4518_v42 = vmul.f32 1.442695, %v4486_v58 }
0x1067   :  { %8853 = vpow2.f32 %v4518_v42 }
0x1069   :  { %v10775_v57 = vpop.eup %8849  ;;  %v4435_v18 = vpop.xlane.xlu0 %4434 }
0x106a   :  { %v4487_v25 = vsub.f32 %v10648_v29, %v4435_v18  ;;  %v4568_v24 = vsel %vm1274_vm5, %v10775_v57, 0.0 }
0x106b   :  { %4569 = vadd.xlane.f32.xlu1 %v4568_v24 }
0x106c   :  { %v4520_v31 = vmul.f32 1.442695, %v4487_v25 }
0x106d   :  { %v10780_v1 = vpop.eup %8851  ;;  %v4438_v34 = vpop.xlane.xlu0 %4437 }
0x106e   :  { %v4444_v52 = vpop.xlane.xlu1 %4443  ;;  %8855 = vpow2.f32 %v4520_v31  ;;  %v4488_v16 = vsub.f32 %v10653_v33, %v4438_v34  ;;  %v4571_v20 = vsel %vm1274_vm5, %v10780_v1, 0.0 }
0x106f   :  { %v4490_v30 = vsub.f32 %v10656_v32, %v4444_v52  ;;  %4572 = vadd.xlane.f32.xlu1 %v4571_v20 }
0x1070   :  { %v4522_v10 = vmul.f32 1.442695, %v4488_v16 }
0x1071   :  { %v4526_v54 = vmul.f32 1.442695, %v4490_v30  ;;  %v10786_v29 = vpop.eup %8853  ;;  %v4441_v4 = vpop.xlane.xlu0 %4440 }
0x1072   :  { %v4447_v55 = vpop.xlane.xlu1 %4446  ;;  %v4574_v13 = vsel %vm1274_vm5, %v10786_v29, 0.0  ;;  %v4489_v32 = vsub.f32 %v10663_v2, %v4441_v4 }
0x1073   :  { %v4491_v56 = vsub.f32 %v10666_v45, %v4447_v55  ;;  %8857 = vpow2.f32 %v4526_v54  ;;  %4575 = vadd.xlane.f32.xlu1 %v4574_v13 }
0x1074   :  { %8859 = vpow2.f32 %v4522_v10  ;;  %v4524_v31 = vmul.f32 1.442695, %v4489_v32 }
0x1075   :  { %v4528_v33 = vmul.f32 1.442695, %v4491_v56  ;;  %v4453_v58 = vpop.xlane.xlu0 %4452 }
0x1076   :  { %v4450_v42 = vpop.xlane.xlu1 %4449  ;;  %v4493_v2 = vsub.f32 %v10676_v11, %v4453_v58 }
0x1077   :  { %v4492_v18 = vsub.f32 %v10673_v53, %v4450_v42  ;;  %8861 = vpow2.f32 %v4528_v33 }
0x1078   :  { %v10793_v25 = vpop.eup %8855 }
0x1079   :  { %v4530_v24 = vmul.f32 1.442695, %v4492_v18  ;;  %v4456_v34 = vpop.xlane.xlu0 %4455  ;;  %v4577_v52 = vsel %vm1274_vm5, %v10793_v25, 0.0 }
0x107a   :  { %v4462_v45 = vpop.xlane.xlu1 %4461  ;;  %4578 = vadd.xlane.f32.xlu0 %v4577_v52  ;;  %v4494_v53 = vsub.f32 %v10683_v9, %v4456_v34 }
0x107b   :  { %v4496_v16 = vsub.f32 %v10686_v26, %v4462_v45  ;;  %8863 = vpow2.f32 %v4530_v24  ;;  %v4532_v26 = vmul.f32 1.442695, %v4493_v2 }
0x107c   :  { %8865 = vpow2.f32 %v4524_v31  ;;  %v4534_v32 = vmul.f32 1.442695, %v4494_v53 }
0x107d   :  { %v10799_v30 = vpop.eup %8857  ;;  %v4538_v20 = vmul.f32 1.442695, %v4496_v16  ;;  %v4459_v54 = vpop.xlane.xlu0 %4458 }
0x107e   :  { %v4465_v10 = vpop.xlane.xlu1 %4464  ;;  %v4586_v55 = vsel %vm1274_vm5, %v10799_v30, 0.0  ;;  %v10805_v56 = vpop.eup %8859  ;;  %v4495_v13 = vsub.f32 %v10693_v15, %v4459_v54 }
0x107f   :  { %v4497_v4 = vsub.f32 %v10696_v63, %v4465_v10  ;;  %4587 = vadd.xlane.f32.xlu1 %v4586_v55  ;;  %8867 = vpow2.f32 %v4538_v20  ;;  %v4580_v18 = vsel %vm1274_vm5, %v10805_v56, 0.0 }
0x1080   :  { %v4536_v15 = vmul.f32 1.442695, %v4495_v13 }
0x1081   :  { %v4540_v11 = vmul.f32 1.442695, %v4497_v4  ;;  %v10808_v33 = vpop.eup %8861  ;;  %v4471_v58 = vpop.xlane.xlu0 %4470 }
0x1082   :  { %v4468_v9 = vpop.xlane.xlu1 %4467  ;;  %v4589_v63 = vsel %vm1274_vm5, %v10808_v33, 0.0  ;;  %v4499_v31 = vsub.f32 %v10706_v50, %v4471_v58 }
0x1083   :  { %v4498_v42 = vsub.f32 %v10703_v6, %v4468_v9  ;;  %8869 = vpow2.f32 %v4540_v11  ;;  %4590 = vadd.xlane.f32.xlu0 %v4589_v63  ;;  %4581 = vadd.xlane.f32.xlu1 %v4580_v18 }
0x1084   :  { %8871 = vpow2.f32 %v4532_v26  ;;  %v4544_v52 = vmul.f32 1.442695, %v4499_v31 }
0x1085   :  { %v10815_v24 = vpop.eup %8863  ;;  %8873 = vpow2.f32 %v4534_v32  ;;  %v4542_v34 = vmul.f32 1.442695, %v4498_v42 }
0x1086   :  { %v4592_v6 = vsel %vm1274_vm5, %v10815_v24, 0.0  ;;  %v10820_v45 = vpop.eup %8865  ;;  %8875 = vpow2.f32 %v4536_v15 }
0x1087   :  { %4593 = vadd.xlane.f32.xlu1 %v4592_v6  ;;  %8877 = vpow2.f32 %v4542_v34  ;;  %v4583_v16 = vsel %vm1274_vm5, %v10820_v45, 0.0  ;;  %v8657_v34 = vunpack.i.h.bf16 %v10714_v36  ;;  %v8656_v6 = vunpack.i.l.bf16 %v10714_v36 }
0x1088   :  { %8879 = vpow2.f32 %v4544_v52 }
0x1089   :  { %v10824_v2 = vpop.eup %8867 }
0x108a   :  { %v4604_v54 = vsel %vm1274_vm5, %v10824_v2, 0.0 }
0x108b   :  { %4584 = vadd.xlane.f32.xlu1 %v4583_v16 }
0x108d   :  { %v10826_v53 = vpop.eup %8869 }
0x108e   :  { %v10828_v50 = vpop.eup %8871  ;;  %v4607_v20 = vsel %vm1274_vm5, %v10826_v53, 0.0 }
0x108f   :  { %v10834_v10 = vpop.eup %8873  ;;  %4608 = vadd.xlane.f32.xlu0 %v4607_v20  ;;  %4605 = vadd.xlane.f32.xlu1 %v4604_v54  ;;  %v4595_v26 = vsel %vm1274_vm5, %v10828_v50, 0.0 }
0x1090   :  { %v10836_v4 = vpop.eup %8875  ;;  %v4598_v55 = vsel %vm1274_vm5, %v10834_v10, 0.0 }
0x1091   :  { %v10842_v13 = vpop.eup %8877  ;;  %v4601_v11 = vsel %vm1274_vm5, %v10836_v4, 0.0 }
0x1092   :  { %v4610_v32 = vsel %vm1274_vm5, %v10842_v13, 0.0  ;;  %v10848_v9 = vpop.eup %8879 }
0x1093   :  { %4599 = vadd.xlane.f32.xlu0 %v4598_v55  ;;  %4596 = vadd.xlane.f32.xlu1 %v4595_v26  ;;  %v4613_v58 = vsel %vm1274_vm5, %v10848_v9, 0.0  ;;  %v8427_v26 = vpack.c.bf16 %v8657_v34, %v8656_v6  ;;  %v8667_v34 = vunpack.i.h.bf16 %v10720_v7  ;;  %v8666_v6 = vunpack.i.l.bf16 %v10720_v7 }
0x1097   :  { %4602 = vadd.xlane.f32.xlu0 %v4601_v11  ;;  %4611 = vadd.xlane.f32.xlu1 %v4610_v32  ;;  %v8979_v32 = vld [vmem:[%s11278_s3 + $0x50] sm:$0xff] }
0x109b   :  { %4614 = vadd.xlane.f32.xlu1 %v4613_v58  ;;  %v8980_v58 = vld [vmem:[%s11278_s3 + $0x60] sm:$0xff] }
0x10aa   :  { %v4552_v42 = vpop.xlane.xlu0 %4551 }
0x10ab   :  { %8881 = vrcp.f32 %v4552_v42 }
0x10ae   :  { %v4474_v63 = vpop.xlane.xlu0 %4473 }
0x10af   :  { %v4500_v18 = vsub.f32 %v10733_v14, %v4474_v63  ;;  %v4555_v15 = vpop.xlane.xlu1 %4554 }
0x10b0   :  { %8883 = vrcp.f32 %v4555_v15 }
0x10b1   :  { %v4546_v31 = vmul.f32 1.442695, %v4500_v18 }
0x10b3   :  { %8885 = vpow2.f32 %v4546_v31  ;;  %v4477_v52 = vpop.xlane.xlu1 %4476 }
0x10b4   :  { %v4501_v16 = vsub.f32 %v10742_v43, %v4477_v52 }
0x10b5   :  { %v8882_v20 = vpop.eup %8881 }
0x10b6   :  { %v4646_v54 = vmul.f32 %v8882_v20, %v10730_v8  ;;  %v4548_v55 = vmul.f32 1.442695, %v4501_v16  ;;  %v8430_v20 = vpack.c.bf16 %v8667_v34, %v8666_v6 }
0x10b7   :  { %v10897_v63 = vpop.permute.xlu1 %8679 }
0x10b8   :  { %8887 = vpow2.f32 %v4548_v55  ;;  %8001 = vmatmul.mubr.msk.f32.vlgmr.msra.gmra.mrb[98].mxu0 %vm1274_vm5, %v4646_v54 }
0x10b9   :  { %8428 = vmatpush3.bf16.msra.mxu0 %v8427_v26  ;;  %8003 = vmatprep.mubr.msk.f32.mxu0 %vm9012_vm1, %v9013_v38 }
0x10ba   :  { %v8884_v14 = vpop.eup %8883  ;;  %8028 = vmatprep.subr.mxu0 %v9013_v38 }
0x10bb   :  { %v4647_v36 = vmul.f32 %v8884_v14, %v10737_v12 }
0x10bd   :  { %v10862_v11 = vpop.eup %8885  ;;  %8004 = vmatmul.mubr.msk.f32.gmra.mrb[100].mxu0 %vm1274_vm5, %v4647_v36 }
0x10be   :  { %8029 = vmatpush3.msra.mxu0 %v10718_v47  ;;  %v4616_v8 = vsel %vm1274_vm5, %v10862_v11, 0.0  ;;  %8006 = vmatprep.mubr.msk.f32.mxu0 %vm9012_vm1, %v9013_v38  ;;  %v8978_v47 = vld [vmem:[%s11278_s3 + $0x40] sm:$0xff] }
0x10bf   :  { %4617 = vadd.xlane.f32.xlu0 %v4616_v8  ;;  %8432 = vmatprep.subr.bf16.mxu0 %v9011_v35  ;;  %v8661_v8 = vunpack.i.l.bf16 %v10722_v39 }
0x10c2   :  { %v10871_v43 = vpop.eup %8887 }
0x10c3   :  { %v4619_v12 = vsel %vm1274_vm5, %v10871_v43, 0.0 }
0x10c4   :  { %4620 = vadd.xlane.f32.xlu1 %v4619_v12 }
0x10d5   :  { %5360 = vrot.lane.b32.xlu1 %v10440_v48, %s9014_s27  ;;  %5262 = vrot.lane.b32.xlu0 %v10426_v28, %s9014_s27  ;;  %v8981_v28 = vld [vmem:[%s11278_s3 + $0x70] sm:$0xff]  ;;  %v10895_v48 = vpop.permute.xlu0 %8674 }
0x10d9   :  { %5455 = vrot.lane.b32.xlu0 %v8978_v47, %s9015_s30  ;;  %5602 = vrot.lane.b32.xlu1 %v8979_v32, %s9015_s30 }
0x10dd   :  { %5749 = vrot.lane.b32.xlu0 %v8980_v58, %s9015_s30  ;;  %5896 = vrot.lane.b32.xlu1 %v8981_v28, %s9015_s30 }
0x10e3   :  { %v4561_v42 = vpop.xlane.xlu0 %4560 }
0x10e4   :  { %8889 = vrcp.f32 %v4561_v42 }
0x10e7   :  { %v4564_v18 = vpop.xlane.xlu0 %4563 }
0x10e8   :  { %8891 = vrcp.f32 %v4564_v18  ;;  %v4558_v15 = vpop.xlane.xlu1 %4557  ;;  %v8671_v18 = vunpack.i.l.bf16 %v10724_v19 }
0x10e9   :  { %8893 = vrcp.f32 %v4558_v15 }
0x10eb   :  { %v4567_v31 = vpop.xlane.xlu0 %4566 }
0x10ec   :  { %8895 = vrcp.f32 %v4567_v31 }
0x10ee   :  { %v8890_v52 = vpop.eup %8889 }
0x10ef   :  { %v4649_v16 = vmul.f32 %v8890_v52, %v10756_v3  ;;  %v8677_v52 = vunpack.i.h.bf16 %v10895_v48 }
0x10f1   :  { %8016 = vmatmul.mubr.msk.f32.vlgmr.msra.gmra.mrb[100].mxu1 %vm1274_vm5, %v4649_v16  ;;  %v8676_v16 = vunpack.i.l.bf16 %v10895_v48 }
0x10f2   :  { %v8892_v54 = vpop.eup %8891  ;;  %8431 = vmatpush3.bf16.msra.mxu1 %v8430_v20  ;;  %8018 = vmatprep.mubr.msk.f32.mxu1 %vm9012_vm1, %v9013_v38 }
0x10f3   :  { %v8894_v55 = vpop.eup %8893  ;;  %8043 = vmatprep.subr.mxu1 %v9013_v38  ;;  %v4650_v26 = vmul.f32 %v8892_v54, %v10760_v59 }
0x10f4   :  { %v4648_v14 = vmul.f32 %v8894_v55, %v10762_v60  ;;  %v8662_v60 = vunpack.i.h.bf16 %v10722_v39 }
0x10f5   :  { %8019 = vmatmul.mubr.msk.f32.gmra.mrb[102].mxu1 %vm1274_vm5, %v4650_v26 }
0x10f6   :  { %v8896_v7 = vpop.eup %8895  ;;  %8007 = vmatmul.mubr.msk.f32.gmra.mrb[102].mxu0 %vm1274_vm5, %v4648_v14  ;;  %8044 = vmatpush3.msra.mxu1 %v10712_v41  ;;  %v8433_v47 = vpack.c.bf16 %v8662_v60, %v8661_v8 }
0x10f7   :  { %8021 = vmatprep.mubr.msk.f32.mxu1 %vm9012_vm1, %v9013_v38  ;;  %v4651_v3 = vmul.f32 %v8896_v7, %v10766_v0  ;;  %8030 = vmatprep.mubr.msk.f32.mxu0 %vm9012_vm1, %v9013_v38 }
0x10f8   :  { %v4570_v36 = vpop.xlane.xlu1 %4569  ;;  %8435 = vmatprep.subr.bf16.mxu1 %v9011_v35 }
0x10f9   :  { %8022 = vmatmul.mubr.msk.f32.gmra.mrb[104].mxu1 %vm1274_vm5, %v4651_v3  ;;  %8897 = vrcp.f32 %v4570_v36 }
0x10fa   :  { %8045 = vmatprep.mubr.msk.f32.mxu1 %vm9012_vm1, %v9013_v38 }
0x10fc   :  { %v4573_v59 = vpop.xlane.xlu1 %4572 }
0x10fd   :  { %8899 = vrcp.f32 %v4573_v59 }
0x1100   :  { %v4576_v41 = vpop.xlane.xlu1 %4575 }
0x1101   :  { %8901 = vrcp.f32 %v4576_v41  ;;  %v8681_v41 = vunpack.i.l.bf16 %v10897_v63 }
0x1103   :  { %v8898_v0 = vpop.eup %8897 }
0x1104   :  { %v4652_v12 = vmul.f32 %v8898_v0, %v10775_v57 }
0x1106   :  { %8031 = vmatmul.mubr.msk.f32.vlgmr.msra.gmra.mrb[104].mxu0 %vm1274_vm5, %v4652_v12 }
0x1107   :  { %v8900_v32 = vpop.eup %8899  ;;  %v4579_v58 = vpop.xlane.xlu0 %4578  ;;  %8434 = vmatpush3.bf16.msra.mxu0 %v8433_v47  ;;  %8033 = vmatprep.mubr.msk.f32.mxu0 %vm9012_vm1, %v9013_v38 }
0x1108   :  { %8903 = vrcp.f32 %v4579_v58  ;;  %8058 = vmatprep.subr.mxu0 %v9013_v38  ;;  %v4653_v28 = vmul.f32 %v8900_v32, %v10780_v1  ;;  %v8672_v1 = vunpack.i.h.bf16 %v10724_v19 }
0x110a   :  { %8034 = vmatmul.mubr.msk.f32.gmra.mrb[106].mxu0 %vm1274_vm5, %v4653_v28 }
0x110b   :  { %v8902_v39 = vpop.eup %8901  ;;  %8059 = vmatpush3.msra.mxu0 %v10726_v5  ;;  %8036 = vmatprep.mubr.msk.f32.mxu0 %vm9012_vm1, %v9013_v38 }
0x110c   :  { %v4588_v57 = vpop.xlane.xlu1 %4587  ;;  %v4654_v42 = vmul.f32 %v8902_v39, %v10786_v29  ;;  %8438 = vmatprep.subr.bf16.mxu0 %v9011_v35  ;;  %v8436_v29 = vpack.c.bf16 %v8672_v1, %v8671_v18 }
0x110d   :  { %8905 = vrcp.f32 %v4588_v57 }
0x110e   :  { %8037 = vmatmul.mubr.msk.f32.gmra.mrb[108].mxu0 %vm1274_vm5, %v4654_v42 }
0x110f   :  { %8060 = vmatprep.mubr.msk.f32.mxu0 %vm9012_vm1, %v9013_v38 }
0x1110   :  { %v4591_v15 = vpop.xlane.xlu0 %4590  ;;  %v4582_v5 = vpop.xlane.xlu1 %4581 }
0x1111   :  { %8907 = vrcp.f32 %v4591_v15 }
0x1112   :  { %v8904_v31 = vpop.eup %8903  ;;  %8909 = vrcp.f32 %v4582_v5 }
0x1113   :  { %v4655_v34 = vmul.f32 %v8904_v31, %v10793_v25  ;;  %v8439_v25 = vpack.c.bf16 %v8677_v52, %v8676_v16 }
0x1114   :  { %v4594_v6 = vpop.xlane.xlu1 %4593 }
0x1115   :  { %8911 = vrcp.f32 %v4594_v6  ;;  %8046 = vmatmul.mubr.msk.f32.vlgmr.msra.gmra.mrb[106].mxu1 %vm1274_vm5, %v4655_v34 }
0x1116   :  { %8437 = vmatpush3.bf16.msra.mxu1 %v8436_v29  ;;  %8048 = vmatprep.mubr.msk.f32.mxu1 %vm9012_vm1, %v9013_v38 }
0x1117   :  { %v8906_v19 = vpop.eup %8905  ;;  %8073 = vmatprep.subr.mxu1 %v9013_v38 }
0x1118   :  { %v4658_v20 = vmul.f32 %v8906_v19, %v10799_v30  ;;  %v4585_v54 = vpop.xlane.xlu1 %4584 }
0x1119   :  { %8913 = vrcp.f32 %v4585_v54 }
0x111a   :  { %8061 = vmatmul.mubr.msk.f32.vlgmr.msra.gmra.mrb[110].mxu0 %vm1274_vm5, %v4658_v20  ;;  %8074 = vmatpush3.msra.mxu1 %v10716_v17 }
0x111b   :  { %v8908_v48 = vpop.eup %8907  ;;  %8440 = vmatpush3.bf16.msra.mxu0 %v8439_v25  ;;  %8063 = vmatprep.mubr.msk.f32.mxu0 %vm9012_vm1, %v9013_v38 }
0x111c   :  { %v8910_v55 = vpop.eup %8909  ;;  %v4609_v26 = vpop.xlane.xlu0 %4608  ;;  %v4659_v7 = vmul.f32 %v8908_v48, %v10808_v33  ;;  %8441 = vmatprep.subr.bf16.mxu1 %v9011_v35  ;;  %8088 = vmatprep.subr.mxu0 %v9013_v38 }
0x111d   :  { %v4606_v14 = vpop.xlane.xlu1 %4605  ;;  %v4656_v30 = vmul.f32 %v8910_v55, %v10805_v56 }
0x111e   :  { %8064 = vmatmul.mubr.msk.f32.gmra.mrb[112].mxu0 %vm1274_vm5, %v4659_v7 }
0x111f   :  { %v8912_v3 = vpop.eup %8911  ;;  %8049 = vmatmul.mubr.msk.f32.gmra.mrb[108].mxu1 %vm1274_vm5, %v4656_v30  ;;  %8066 = vmatprep.mubr.msk.f32.mxu0 %vm9012_vm1, %v9013_v38 }
0x1120   :  { %v4600_v17 = vpop.xlane.xlu0 %4599  ;;  %v4660_v59 = vmul.f32 %v8912_v3, %v10815_v24  ;;  %8051 = vmatprep.mubr.msk.f32.mxu1 %vm9012_vm1, %v9013_v38  ;;  %v8682_v24 = vunpack.i.h.bf16 %v10897_v63 }
0x1121   :  { %v4597_v36 = vpop.xlane.xlu1 %4596 }
0x1122   :  { %8915 = vrcp.f32 %v4597_v36  ;;  %8067 = vmatmul.mubr.msk.f32.gmra.mrb[114].mxu0 %vm1274_vm5, %v4660_v59  ;;  %v8442_v12 = vpack.c.bf16 %v8682_v24, %v8681_v41 }
0x1123   :  { %v8914_v35 = vpop.eup %8913  ;;  %8090 = vmatprep.mubr.msk.f32.mxu0 %vm9012_vm1, %v9013_v38  ;;  %8917 = vrcp.f32 %v4600_v17 }
0x1124   :  { %v4657_v56 = vmul.f32 %v8914_v35, %v10820_v45  ;;  %v4603_v33 = vpop.xlane.xlu0 %4602 }
0x1125   :  { %8919 = vrcp.f32 %v4603_v33  ;;  %v4612_v63 = vpop.xlane.xlu1 %4611 }
0x1126   :  { %8052 = vmatmul.mubr.msk.f32.gmra.mrb[110].mxu1 %vm1274_vm5, %v4657_v56  ;;  %8921 = vrcp.f32 %v4606_v14 }
0x1127   :  { %8075 = vmatprep.mubr.msk.f32.mxu1 %vm9012_vm1, %v9013_v38  ;;  %8923 = vrcp.f32 %v4609_v26 }
0x1129   :  { %v4615_v32 = vpop.xlane.xlu1 %4614 }
0x112a   :  { %8925 = vrcp.f32 %v4615_v32 }
0x112b   :  { %8927 = vrcp.f32 %v4612_v63 }
0x112c   :  { %v8916_v60 = vpop.eup %8915 }
0x112d   :  { %v4661_v8 = vmul.f32 %v8916_v60, %v10828_v50  ;;  %v8918_v0 = vpop.eup %8917 }
0x112e   :  { %v4662_v45 = vmul.f32 %v8918_v0, %v10834_v10 }
0x112f   :  { %8076 = vmatmul.mubr.msk.f32.vlgmr.msra.gmra.mrb[112].mxu1 %vm1274_vm5, %v4661_v8  ;;  %v8920_v47 = vpop.eup %8919 }
0x1130   :  { %8443 = vmatpush3.bf16.msra.mxu1 %v8442_v12  ;;  %8078 = vmatprep.mubr.msk.f32.mxu1 %vm9012_vm1, %v9013_v38  ;;  %v4663_v50 = vmul.f32 %v8920_v47, %v10836_v4  ;;  %v8922_v58 = vpop.eup %8921 }
0x1131   :  { %8103 = vmatprep.subr.mxu1 %v9013_v38  ;;  %v4664_v28 = vmul.f32 %v8922_v58, %v10824_v2  ;;  %v8924_v57 = vpop.eup %8923 }
0x1132   :  { %v4665_v1 = vmul.f32 %v8924_v57, %v10826_v53 }
0x1133   :  { %8079 = vmatmul.mubr.msk.f32.gmra.mrb[114].mxu1 %vm1274_vm5, %v4662_v45 }
0x1134   :  { %8081 = vmatprep.mubr.msk.f32.mxu1 %vm9012_vm1, %v9013_v38  ;;  %v8926_v4 = vpop.eup %8925 }
0x1135   :  { %v8928_v15 = vpop.eup %8927  ;;  %v4667_v5 = vmul.f32 %v8926_v4, %v10848_v9 }
0x1136   :  { %v4666_v53 = vmul.f32 %v8928_v15, %v10842_v13 }
0x1137   :  { %8082 = vmatmul.mubr.msk.f32.gmra.mrb[116].mxu1 %vm1274_vm5, %v4663_v50 }
0x1138   :  { %8105 = vmatprep.mubr.msk.f32.mxu1 %vm9012_vm1, %v9013_v38 }
0x114c   :  { %v4618_v10 = vpop.xlane.xlu0 %4617 }
0x114d   :  { %8929 = vrcp.f32 %v4618_v10 }
0x1150   :  { %v5263_v39 = vpop.permute.xlu0 %5262 }
0x1151   :  { %v4621_v42 = vpop.xlane.xlu1 %4620  ;;  %8089 = vmatpush3.msra.mxu0 %v5263_v39 }
0x1152   :  { %8931 = vrcp.f32 %v4621_v42  ;;  %8091 = vmatmul.mubr.msk.f32.vlgmr.msra.gmra.mrb[116].mxu0 %vm1274_vm5, %v4664_v28 }
0x1153   :  { %8093 = vmatprep.mubr.msk.f32.mxu0 %vm9012_vm1, %v9013_v38 }
0x1154   :  { %v5456_v18 = vpop.permute.xlu0 %5455 }
0x1155   :  { %v5361_v31 = vpop.permute.xlu1 %5360  ;;  %8114 = vmatprep.subr.mxu0 %v5456_v18 }
0x1156   :  { %8104 = vmatpush3.msra.mxu1 %v5361_v31  ;;  %8094 = vmatmul.mubr.msk.f32.gmra.mrb[118].mxu0 %vm1274_vm5, %v4665_v1 }
0x1157   :  { %v8930_v2 = vpop.eup %8929  ;;  %8106 = vmatmul.mubr.msk.f32.vlgmr.msra.gmra.mrb[118].mxu1 %vm1274_vm5, %v4667_v5  ;;  %8096 = vmatprep.mubr.msk.f32.mxu0 %vm9012_vm1, %v9013_v38 }
0x1158   :  { %8108 = vmatprep.mubr.msk.f32.mxu1 %vm9012_vm1, %v9013_v38  ;;  %v4668_v34 = vmul.f32 %v8930_v2, %v10862_v11  ;;  %8115 = vmatpush3.msra.mxu0 %v5456_v18  ;;  %v5750_v52 = vpop.permute.xlu0 %5749 }
0x1159   :  { %v5603_v9 = vpop.permute.xlu1 %5602  ;;  %8136 = vmatprep.subr.mxu0 %v5750_v52 }
0x115a   :  { %8097 = vmatmul.mubr.msk.f32.gmra.mrb[120].mxu0 %vm1274_vm5, %v4666_v53  ;;  %8125 = vmatprep.subr.mxu1 %v5603_v9 }
0x115b   :  { %8109 = vmatmul.mubr.msk.f32.gmra.mrb[120].mxu1 %vm1274_vm5, %v4668_v34 }
0x115c   :  { %v8932_v29 = vpop.eup %8931  ;;  %8111 = vmatprep.mubr.msk.f32.mxu1 %vm9012_vm1, %v9013_v38  ;;  %8126 = vmatpush3.msra.mxu1 %v5603_v9  ;;  %vm6743_vm1 = vcmask 324868  }
0x115d   :  { %v4669_v6 = vmul.f32 %v8932_v29, %v10871_v43  ;;  %v5897_v11 = vpop.permute.xlu1 %5896 }
0x115e   :  { %8147 = vmatprep.subr.mxu1 %v5897_v11 }
0x115f   :  { %8112 = vmatmul.mubr.msk.f32.gmra.mrb[122].mxu1 %vm1274_vm5, %v4669_v6  ;;  %vm6767_vm5 = vcmask 516544  }
0x118b   :  { %v4754_v13 = vpop.f32.mrb[98].mxu0 }
0x118c   :  { %v8002_v16 = vpop.f32.mrb[99].mxu0  ;;  %8116 = vmatprep.mubr.msk.f32.mxu0 %vm447_vm2, %v4754_v13 }
0x1190   :  { %v4759_v19 = vpop.f32.mrb[100].mxu0 }
0x1191   :  { %v8005_v20 = vpop.f32.mrb[101].mxu0  ;;  %8117 = vmatmul.mubr.msk.f32.vlgmr.msra.gmra.mrb[122].mxu0 %vm447_vm2, %v4759_v19 }
0x1192   :  { %8137 = vmatpush3.msra.mxu0 %v5750_v52 }
0x11c4   :  { %v4852_v54 = vpop.f32.mrb[100].mxu1 }
0x11c5   :  { %v8017_v38 = vpop.f32.mrb[101].mxu1 }
0x11c8   :  { %v4857_v25 = vpop.f32.mrb[102].mxu1 }
0x11c9   :  { %v4764_v48 = vpop.f32.mrb[102].mxu0  ;;  %v8020_v43 = vpop.f32.mrb[103].mxu1 }
0x11ca   :  { %v8008_v55 = vpop.f32.mrb[103].mxu0  ;;  %8119 = vmatprep.mubr.msk.f32.mxu0 %vm447_vm2, %v4764_v48 }
0x11cb   :  { %8120 = vmatmul.mubr.msk.f32.gmra.mrb[124].mxu0 %vm447_vm2, %v4852_v54 }
0x11cc   :  { %8122 = vmatprep.mubr.msk.f32.mxu0 %vm447_vm2, %v4857_v25  ;;  %v4862_v26 = vpop.f32.mrb[104].mxu1 }
0x11cd   :  { %v8023_v14 = vpop.f32.mrb[105].mxu1 }
0x11cf   :  { %8123 = vmatmul.mubr.msk.f32.gmra.mrb[126].mxu0 %vm447_vm2, %v4862_v26 }
0x11d9   :  { %v4950_v7 = vpop.f32.mrb[104].mxu0 }
0x11da   :  { %v8032_v30 = vpop.f32.mrb[105].mxu0  ;;  %8127 = vmatprep.mubr.msk.f32.mxu1 %vm447_vm2, %v4950_v7 }
0x11dd   :  { %v4955_v3 = vpop.f32.mrb[106].mxu0 }
0x11de   :  { %v8035_v17 = vpop.f32.mrb[107].mxu0  ;;  %8128 = vmatmul.mubr.msk.f32.vlgmr.msra.gmra.mrb[124].mxu1 %vm447_vm2, %v4955_v3 }
0x11df   :  { %8148 = vmatpush3.msra.mxu1 %v5897_v11 }
0x11e1   :  { %v4960_v36 = vpop.f32.mrb[108].mxu0 }
0x11e2   :  { %v8038_v59 = vpop.f32.mrb[109].mxu0  ;;  %8130 = vmatprep.mubr.msk.f32.mxu1 %vm447_vm2, %v4960_v36 }
0x11e8   :  { %v5048_v35 = vpop.f32.mrb[106].mxu1 }
0x11e9   :  { %v8047_v56 = vpop.f32.mrb[107].mxu1  ;;  %8131 = vmatmul.mubr.msk.f32.gmra.mrb[126].mxu1 %vm447_vm2, %v5048_v35 }
0x11ed   :  { %v5146_v33 = vpop.f32.mrb[110].mxu0 }
0x11ee   :  { %v8062_v24 = vpop.f32.mrb[111].mxu0  ;;  %8138 = vmatprep.mubr.msk.f32.mxu0 %vm447_vm2, %v5146_v33 }
0x11f1   :  { %v5151_v41 = vpop.f32.mrb[112].mxu0 }
0x11f2   :  { %v5053_v60 = vpop.f32.mrb[108].mxu1  ;;  %v8065_v8 = vpop.f32.mrb[113].mxu0  ;;  %8139 = vmatmul.mubr.msk.f32.vlgmr.msra.gmra.mrb[128].mxu0 %vm447_vm2, %v5151_v41 }
0x11f3   :  { %v8050_v0 = vpop.f32.mrb[109].mxu1  ;;  %8133 = vmatprep.mubr.msk.f32.mxu1 %vm447_vm2, %v5053_v60 }
0x11f5   :  { %v5156_v12 = vpop.f32.mrb[114].mxu0 }
0x11f6   :  { %v8068_v45 = vpop.f32.mrb[115].mxu0  ;;  %8141 = vmatprep.mubr.msk.f32.mxu0 %vm447_vm2, %v5156_v12 }
0x11f9   :  { %v5058_v47 = vpop.f32.mrb[110].mxu1 }
0x11fa   :  { %v8053_v50 = vpop.f32.mrb[111].mxu1  ;;  %8134 = vmatmul.mubr.msk.f32.gmra.mrb[128].mxu1 %vm447_vm2, %v5058_v47 }
0x1202   :  { %v5244_v63 = vpop.f32.mrb[112].mxu1 }
0x1203   :  { %v8077_v32 = vpop.f32.mrb[113].mxu1  ;;  %8142 = vmatmul.mubr.msk.f32.gmra.mrb[130].mxu0 %vm447_vm2, %v5244_v63 }
0x1206   :  { %v5249_v10 = vpop.f32.mrb[114].mxu1 }
0x1207   :  { %v8080_v58 = vpop.f32.mrb[115].mxu1  ;;  %8144 = vmatprep.mubr.msk.f32.mxu0 %vm447_vm2, %v5249_v10 }
0x120a   :  { %v5254_v28 = vpop.f32.mrb[116].mxu1 }
0x120b   :  { %v8083_v39 = vpop.f32.mrb[117].mxu1  ;;  %8145 = vmatmul.mubr.msk.f32.gmra.mrb[132].mxu0 %vm447_vm2, %v5254_v28 }
0x1225   :  { %v5342_v57 = vpop.f32.mrb[116].mxu0 }
0x1226   :  { %v8092_v42 = vpop.f32.mrb[117].mxu0  ;;  %8149 = vmatprep.mubr.msk.f32.mxu1 %vm447_vm2, %v5342_v57 }
0x1229   :  { %v5347_v4 = vpop.f32.mrb[118].mxu0 }
0x122a   :  { %v5440_v1 = vpop.f32.mrb[118].mxu1  ;;  %v8095_v18 = vpop.f32.mrb[119].mxu0  ;;  %8150 = vmatmul.mubr.msk.f32.vlgmr.msra.gmra.mrb[130].mxu1 %vm447_vm2, %v5347_v4 }
0x122b   :  { %v8107_v15 = vpop.f32.mrb[119].mxu1 }
0x122d   :  { %v5352_v5 = vpop.f32.mrb[120].mxu0 }
0x122e   :  { %v5445_v31 = vpop.f32.mrb[120].mxu1  ;;  %v8098_v2 = vpop.f32.mrb[121].mxu0  ;;  %8152 = vmatprep.mubr.msk.f32.mxu1 %vm447_vm2, %v5352_v5 }
0x122f   :  { %v8110_v53 = vpop.f32.mrb[121].mxu1  ;;  %8153 = vmatmul.mubr.msk.f32.gmra.mrb[132].mxu1 %vm447_vm2, %v5440_v1 }
0x1230   :  { %8155 = vmatprep.mubr.msk.f32.mxu1 %vm447_vm2, %v5445_v31 }
0x1232   :  { %v5450_v34 = vpop.f32.mrb[122].mxu1 }
0x1233   :  { %v8113_v9 = vpop.f32.mrb[123].mxu1  ;;  %8156 = vmatmul.mubr.msk.f32.gmra.mrb[134].mxu1 %vm447_vm2, %v5450_v34  ;;  %vm6750_vm2 = vcmask 391493  }
0x1264   :  { %v8118_v29 = vpop.f32.mrb[122].mxu0 }
0x1265   :  { %5579 = vrot.lane.b32.xlu1 %v8118_v29, %s9007_s20  ;;  %v5542_v6 = vpop.f32.mrb[123].mxu0 }
0x1266   :  { %5577 = vrot.lane.b32.xlu0 %v5542_v6, %s9007_s20 }
0x129e   :  { %v8121_v52 = vpop.f32.mrb[124].mxu0 }
0x129f   :  { %5583 = vrot.lane.b32.xlu0 %v8121_v52, %s9007_s20  ;;  %v5552_v13 = vpop.f32.mrb[125].mxu0 }
0x12a2   :  { %v8124_v11 = vpop.f32.mrb[126].mxu0 }
0x12a3   :  { %5581 = vrot.lane.b32.xlu0 %v5552_v13, %s9007_s20  ;;  %v5562_v16 = vpop.f32.mrb[127].mxu0 }
0x12a7   :  { %5587 = vrot.lane.b32.xlu0 %v8124_v11, %s9007_s20 }
0x12ab   :  { %5585 = vrot.lane.b32.xlu0 %v5562_v16, %s9007_s20 }
0x12b1   :  { %v8129_v19 = vpop.f32.mrb[124].mxu1 }
0x12b2   :  { %v5689_v20 = vpop.f32.mrb[125].mxu1  ;;  %5726 = vrot.lane.b32.xlu1 %v8129_v19, %s9007_s20 }
0x12b3   :  { %5724 = vrot.lane.b32.xlu0 %v5689_v20, %s9007_s20 }
0x12bc   :  { %v8132_v54 = vpop.f32.mrb[126].mxu1 }
0x12bd   :  { %v5699_v38 = vpop.f32.mrb[127].mxu1  ;;  %5730 = vrot.lane.b32.xlu0 %v8132_v54, %s9007_s20 }
0x12c1   :  { %5728 = vrot.lane.b32.xlu0 %v5699_v38, %s9007_s20 }
0x12c5   :  { %v8140_v25 = vpop.f32.mrb[128].mxu0 }
0x12c6   :  { %5873 = vrot.lane.b32.xlu1 %v8140_v25, %s9007_s20  ;;  %v5836_v48 = vpop.f32.mrb[129].mxu0 }
0x12ca   :  { %5871 = vrot.lane.b32.xlu1 %v5836_v48, %s9007_s20 }
0x12cd   :  { %v8135_v43 = vpop.f32.mrb[128].mxu1 }
0x12ce   :  { %v5709_v55 = vpop.f32.mrb[129].mxu1  ;;  %5734 = vrot.lane.b32.xlu0 %v8135_v43, %s9007_s20 }
0x12d2   :  { %5732 = vrot.lane.b32.xlu0 %v5709_v55, %s9007_s20 }
0x12d6   :  { %v8143_v26 = vpop.f32.mrb[130].mxu0 }
0x12d7   :  { %v5846_v14 = vpop.f32.mrb[131].mxu0  ;;  %v5580_v60 = vpop.permute.xlu1 %5579 }
0x12d8   :  { %v5578_v33 = vpop.permute.xlu0 %5577  ;;  %v5596_v50 = vadd.f32 %v5580_v60, %v10306_v46 }
0x12d9   :  { %v5595_v57 = vadd.f32 %v5578_v33, %v10306_v46 }
0x12de   :  { %v8146_v7 = vpop.f32.mrb[132].mxu0 }
0x12df   :  { %v5856_v30 = vpop.f32.mrb[133].mxu0 }
0x12e0   :  { %5879 = vrot.lane.b32.xlu0 %v5856_v30, %s9007_s20 }
0x12fd   :  { %v8151_v3 = vpop.f32.mrb[130].mxu1 }
0x12fe   :  { %v5983_v17 = vpop.f32.mrb[131].mxu1  ;;  %6020 = vrot.lane.b32.xlu1 %v8151_v3, %s9007_s20 }
0x1302   :  { %v8154_v36 = vpop.f32.mrb[132].mxu1  ;;  %5877 = vrot.lane.b32.xlu1 %v8143_v26, %s9007_s20 }
0x1303   :  { %v5993_v59 = vpop.f32.mrb[133].mxu1 }
0x1306   :  { %v8157_v35 = vpop.f32.mrb[134].mxu1  ;;  %6018 = vrot.lane.b32.xlu1 %v5983_v17, %s9007_s20 }
0x1307   :  { %v6003_v56 = vpop.f32.mrb[135].mxu1 }
0x1308   :  { %6026 = vrot.lane.b32.xlu0 %v6003_v56, %s9007_s20 }
0x130a   :  { %5875 = vrot.lane.b32.xlu1 %v5846_v14, %s9007_s20 }
0x130e   :  { %6024 = vrot.lane.b32.xlu1 %v8154_v36, %s9007_s20 }
0x1311   :  { %v5584_v24 = vpop.permute.xlu0 %5583 }
0x1312   :  { %6022 = vrot.lane.b32.xlu1 %v5993_v59, %s9007_s20  ;;  %v5598_v2 = vadd.f32 %v5584_v24, %v10306_v46 }
0x1315   :  { %v5582_v41 = vpop.permute.xlu0 %5581 }
0x1316   :  { %5881 = vrot.lane.b32.xlu1 %v8146_v7, %s9007_s20  ;;  %v5597_v29 = vadd.f32 %v5582_v41, %v10306_v46 }
0x1319   :  { %v5588_v8 = vpop.permute.xlu0 %5587 }
0x131a   :  { %6028 = vrot.lane.b32.xlu1 %v8157_v35, %s9007_s20  ;;  %v5600_v43 = vadd.f32 %v5588_v8, %v10306_v46 }
0x131d   :  { %v5586_v12 = vpop.permute.xlu0 %5585 }
0x131e   :  { %v5599_v19 = vadd.f32 %v5586_v12, %v10306_v46 }
0x1324   :  { %v5727_v0 = vpop.permute.xlu1 %5726 }
0x1325   :  { %v5725_v47 = vpop.permute.xlu0 %5724  ;;  %v5743_v32 = vadd.f32 %v5727_v0, %v5596_v50 }
0x1326   :  { %v5742_v1 = vadd.f32 %v5725_v47, %v5595_v57 }
0x132f   :  { %v5731_v10 = vpop.permute.xlu0 %5730 }
0x1330   :  { %v5745_v34 = vadd.f32 %v5731_v10, %v5598_v2 }
0x1333   :  { %v5729_v42 = vpop.permute.xlu0 %5728 }
0x1334   :  { %v5744_v13 = vadd.f32 %v5729_v42, %v5597_v29 }
0x1338   :  { %v5874_v45 = vpop.permute.xlu1 %5873 }
0x1339   :  { %v5890_v58 = vadd.f32 %v5874_v45, %v5743_v32 }
0x133c   :  { %v5872_v63 = vpop.permute.xlu1 %5871 }
0x133d   :  { %v5889_v18 = vadd.f32 %v5872_v63, %v5742_v1 }
0x1340   :  { %v5735_v15 = vpop.permute.xlu0 %5734 }
0x1341   :  { %v5747_v14 = vadd.f32 %v5735_v15, %v5600_v43  ;;  %v6951_v43 = vld [vmem:[%s11278_s3 + $0x68] sm:$0xff] }
0x1344   :  { %v5733_v9 = vpop.permute.xlu0 %5732 }
0x1345   :  { %v5746_v38 = vadd.f32 %v5733_v9, %v5599_v19 }
0x1352   :  { %v5880_v16 = vpop.permute.xlu0 %5879 }
0x1353   :  { %v5893_v55 = vadd.f32 %v5880_v16, %v5746_v38  ;;  %v6947_v38 = vld [vmem:[%s11278_s3 + $0x48] sm:$0xff] }
0x1370   :  { %v6021_v28 = vpop.permute.xlu1 %6020 }
0x1371   :  { %v6037_v39 = vadd.f32 %v6021_v28, %v5890_v58 }
0x1373   :  { %6050 = vrot.lane.b32.xlu1 %v6037_v39, %s9015_s30 }
0x1374   :  { %v5878_v4 = vpop.permute.xlu1 %5877 }
0x1375   :  { %v5892_v6 = vadd.f32 %v5878_v4, %v5745_v34 }
0x1378   :  { %v6019_v5 = vpop.permute.xlu1 %6018 }
0x1379   :  { %v6036_v31 = vadd.f32 %v6019_v5, %v5889_v18 }
0x137a   :  { %v6027_v48 = vpop.permute.xlu0 %6026 }
0x137b   :  { %6048 = vrot.lane.b32.xlu0 %v6036_v31, %s9015_s30  ;;  %v6040_v7 = vadd.f32 %v6027_v48, %v5893_v55  ;;  %v6953_v55 = vld [vmem:[%s11278_s3 + $0x78] sm:$0xff] }
0x137c   :  { %v5876_v53 = vpop.permute.xlu1 %5875 }
0x137d   :  { %v5891_v20 = vadd.f32 %v5876_v53, %v5744_v13 }
0x1380   :  { %v6025_v52 = vpop.permute.xlu1 %6024 }
0x1381   :  { %v6039_v11 = vadd.f32 %v6025_v52, %v5892_v6 }
0x1383   :  { %6054 = vrot.lane.b32.xlu1 %v6039_v11, %s9015_s30 }
0x1384   :  { %v6023_v54 = vpop.permute.xlu1 %6022 }
0x1385   :  { %v6038_v25 = vadd.f32 %v6023_v54, %v5891_v20 }
0x1387   :  { %6052 = vrot.lane.b32.xlu0 %v6038_v25, %s9015_s30  ;;  %v6949_v25 = vld [vmem:[%s11278_s3 + $0x58] sm:$0xff]  ;;  %s9023_s3 = smov 40  }
0x1388   :  { %v5882_v26 = vpop.permute.xlu1 %5881  ;;  %v8444_v48 = vpack.c.bf16 %v6949_v25, %v6947_v38 }
0x1389   :  { %v5894_v30 = vadd.f32 %v5882_v26, %v5747_v14  ;;  %v8448_v26 = vpack.c.bf16 %v6953_v55, %v6951_v43  ;;  %v6954_v14 = vld [vmem:[%s11279_s4 + $0x80] sm:$0xff] }
0x138a   :  { %8445 = vmatprep.subr.bf16.mxu0 %v8444_v48 }
0x138b   :  { %6056 = vrot.lane.b32.xlu0 %v6040_v7, %s9015_s30  ;;  %8447 = vmatpush3.bf16.msra.mxu0 %v8444_v48  ;;  %v6955_v7 = vld [vmem:[%s11279_s4 + $0x88] sm:$0xff] }
0x138c   :  { %v6029_v3 = vpop.permute.xlu1 %6028  ;;  %8449 = vmatprep.subr.bf16.mxu0 %v8448_v26 }
0x138d   :  { %v6041_v17 = vadd.f32 %v6029_v3, %v5894_v30  ;;  %v6956_v30 = vld [vmem:[%s11279_s4 + $0x90] sm:$0xff]  ;;  %v8452_v3 = vpack.c.bf16 %v6955_v7, %v6954_v14  ;;  %v6963_v7 = vld [vmem:[%s11279_s4 + $0xc8] sm:$0xff] }
0x138f   :  { %6058 = vrot.lane.b32.xlu1 %v6041_v17, %s9015_s30  ;;  %8451 = vmatpush3.bf16.msra.mxu0 %v8448_v26  ;;  %v6961_v26 = vld [vmem:[%s11279_s4 + $0xb8] sm:$0xff] }
0x1390   :  { %8453 = vmatprep.subr.bf16.mxu1 %v8452_v3 }
0x1391   :  { %8455 = vmatpush3.bf16.msra.mxu1 %v8452_v3  ;;  %v6964_v3 = vld [vmem:[%s11279_s4 + $0xd0] sm:$0xff] }
0x13e5   :  { %v6051_v36 = vpop.permute.xlu1 %6050 }
0x13e6   :  { %v11065_v59 = vadd.f32 %v6051_v36, %v10194_v40  ;;  %v6958_v36 = vld [vmem:[%s11279_s4 + $0xa0] sm:$0xff] }
0x13e8   :  { %v6075_v46 = vsel %vm182_vm0, %v11065_v59, 0.0 }
0x13e9   :  { %6076 = vadd.xlane.f32.xlu1 %v6075_v46  ;;  %v6959_v46 = vld [vmem:[%s11279_s4 + $0xa8] sm:$0xff] }
0x13ed   :  { %v6049_v35 = vpop.permute.xlu0 %6048 }
0x13ee   :  { %v11070_v56 = vadd.f32 %v6049_v35, %v10197_v49  ;;  %v8460_v35 = vpack.c.bf16 %v6959_v46, %v6958_v36  ;;  %v6966_v36 = vld [vmem:[%s11279_s4 + $0xe0] sm:$0xff]  ;;  %v6967_v46 = vld [vmem:[%s11279_s4 + $0xe8] sm:$0xff] }
0x13f0   :  { %v6072_v33 = vsel %vm182_vm0, %v11070_v56, 0.0 }
0x13f1   :  { %6073 = vadd.xlane.f32.xlu0 %v6072_v33 }
0x13f5   :  { %v6055_v24 = vpop.permute.xlu1 %6054 }
0x13f6   :  { %v11075_v41 = vadd.f32 %v6055_v24, %v10204_v61 }
0x13f8   :  { %v6081_v40 = vsel %vm182_vm0, %v11075_v41, 0.0 }
0x13f9   :  { %6082 = vadd.xlane.f32.xlu0 %v6081_v40  ;;  %v6053_v60 = vpop.permute.xlu0 %6052 }
0x13fa   :  { %v6068_v8 = vadd.f32 %v6053_v60, %v10207_v44 }
0x13fc   :  { %v6078_v0 = vsel %vm182_vm0, %v6068_v8, 0.0 }
0x13fd   :  { %6079 = vadd.xlane.f32.xlu0 %v6078_v0  ;;  %v6057_v49 = vpop.permute.xlu0 %6056 }
0x13fe   :  { %v11082_v12 = vadd.f32 %v6057_v49, %v10217_v37 }
0x1400   :  { %v6084_v45 = vsel %vm182_vm0, %v11082_v12, 0.0 }
0x1401   :  { %v6059_v47 = vpop.permute.xlu1 %6058  ;;  %6085 = vadd.xlane.f32.xlu0 %v6084_v45 }
0x1402   :  { %v6071_v61 = vadd.f32 %v6059_v47, %v10214_v51 }
0x1404   :  { %v6087_v50 = vsel %vm182_vm0, %v6071_v61, 0.0 }
0x1405   :  { %6088 = vadd.xlane.f32.xlu1 %v6087_v50 }
0x1476   :  { %v6077_v63 = vpop.xlane.xlu1 %6076 }
0x1477   :  { %v6091_v32 = vmul.f32 0.03125, %v6077_v63 }
0x1479   :  { %v11089_v44 = vsub.f32 %v11065_v59, %v6091_v32 }
0x147b   :  { %v6103_v10 = vmul.f32 %v11089_v44, %v11089_v44 }
0x147d   :  { %v6111_v37 = vsel %vm182_vm0, %v6103_v10, 0.0 }
0x147e   :  { %6112 = vadd.xlane.f32.xlu1 %v6111_v37  ;;  %v6074_v58 = vpop.xlane.xlu0 %6073 }
0x147f   :  { %v6090_v28 = vmul.f32 0.03125, %v6074_v58 }
0x1481   :  { %v11095_v39 = vsub.f32 %v11070_v56, %v6090_v28 }
0x1483   :  { %v6102_v51 = vmul.f32 %v11095_v39, %v11095_v39 }
0x1485   :  { %v6108_v57 = vsel %vm182_vm0, %v6102_v51, 0.0 }
0x1486   :  { %6109 = vadd.xlane.f32.xlu0 %v6108_v57  ;;  %v6083_v42 = vpop.xlane.xlu0 %6082 }
0x1487   :  { %v6093_v4 = vmul.f32 0.03125, %v6083_v42 }
0x1489   :  { %v11101_v1 = vsub.f32 %v11075_v41, %v6093_v4 }
0x148a   :  { %v6080_v18 = vpop.xlane.xlu0 %6079 }
0x148b   :  { %v6092_v15 = vmul.f32 0.03125, %v6080_v18  ;;  %v6105_v5 = vmul.f32 %v11101_v1, %v11101_v1 }
0x148d   :  { %v11105_v31 = vsub.f32 %v6068_v8, %v6092_v15  ;;  %v6117_v2 = vsel %vm182_vm0, %v6105_v5, 0.0 }
0x148e   :  { %6118 = vadd.xlane.f32.xlu1 %v6117_v2  ;;  %v6086_v53 = vpop.xlane.xlu0 %6085 }
0x148f   :  { %v6094_v34 = vmul.f32 0.03125, %v6086_v53  ;;  %v6104_v9 = vmul.f32 %v11105_v31, %v11105_v31 }
0x1491   :  { %v11111_v29 = vsub.f32 %v11082_v12, %v6094_v34  ;;  %v6114_v6 = vsel %vm182_vm0, %v6104_v9, 0.0 }
0x1492   :  { %v6089_v52 = vpop.xlane.xlu1 %6088  ;;  %6115 = vadd.xlane.f32.xlu0 %v6114_v6 }
0x1493   :  { %v6095_v13 = vmul.f32 0.03125, %v6089_v52  ;;  %v6106_v11 = vmul.f32 %v11111_v29, %v11111_v29 }
0x1495   :  { %v11116_v16 = vsub.f32 %v6071_v61, %v6095_v13  ;;  %v6120_v19 = vsel %vm182_vm0, %v6106_v11, 0.0 }
0x1496   :  { %6121 = vadd.xlane.f32.xlu0 %v6120_v19 }
0x1497   :  { %v6107_v20 = vmul.f32 %v11116_v16, %v11116_v16 }
0x1499   :  { %v6123_v54 = vsel %vm182_vm0, %v6107_v20, 0.0 }
0x149a   :  { %6124 = vadd.xlane.f32.xlu1 %v6123_v54 }
0x14ab   :  { %6159 = vrot.lane.b32.xlu1 %v10272_v27, %s9015_s30 }
0x14ac   :  { %6150 = vrot.lane.b32.xlu0 %v10272_v27, %s9014_s27  ;;  %v6957_v27 = vld [vmem:[%s11279_s4 + $0x98] sm:$0xff] }
0x14ad   :  { %v8456_v17 = vpack.c.bf16 %v6957_v27, %v6956_v30  ;;  %v6965_v27 = vld [vmem:[%s11279_s4 + $0xd8] sm:$0xff] }
0x14af   :  { %8457 = vmatprep.subr.bf16.mxu1 %v8456_v17 }
0x14b0   :  { %8459 = vmatpush3.bf16.msra.mxu1 %v8456_v17  ;;  %v8472_v17 = vpack.c.bf16 %v6965_v27, %v6964_v3 }
0x14b1   :  { %8461 = vmatprep.subr.bf16.mxu1 %v8460_v35 }
0x14b4   :  { %8463 = vmatpush3.bf16.msra.mxu1 %v8460_v35  ;;  %v8476_v35 = vpack.c.bf16 %v6967_v46, %v6966_v36 }
0x150b   :  { %v6113_v33 = vpop.xlane.xlu1 %6112 }
0x150c   :  { %v6127_v24 = vmul.f32 0.03125, %v6113_v33  ;;  %v6968_v33 = vld [vmem:[%s11279_s4 + $0xf0] sm:$0xff] }
0x150e   :  { %v6133_v8 = vadd.f32 1e-06, %v6127_v24  ;;  %v6969_v24 = vld [vmem:[%s11279_s4 + $0xf8] sm:$0xff] }
0x1510   :  { %8933 = vrsqrt.f32 %v6133_v8 }
0x1513   :  { %v6110_v40 = vpop.xlane.xlu0 %6109 }
0x1514   :  { %v6126_v60 = vmul.f32 0.03125, %v6110_v40  ;;  %v8480_v40 = vpack.c.bf16 %v6969_v24, %v6968_v33 }
0x1516   :  { %v6132_v0 = vadd.f32 1e-06, %v6126_v60  ;;  %v8982_v60 = vld [vmem:[%s11280_s5 + $0x8] sm:$0xff] }
0x1517   :  { %v6171_v8 = vrot.slane %v8982_v60, %v3039_v23 }
0x1518   :  { %8935 = vrsqrt.f32 %v6132_v0 }
0x151a   :  { %v8934_v10 = vpop.eup %8933 }
0x151b   :  { %v6119_v49 = vpop.xlane.xlu1 %6118  ;;  %v6145_v42 = vmul.f32 %v8934_v10, %v11089_v44 }
0x151c   :  { %v6129_v45 = vmul.f32 0.03125, %v6119_v49 }
0x151e   :  { %v6135_v47 = vadd.f32 1e-06, %v6129_v45 }
0x151f   :  { %v6116_v61 = vpop.xlane.xlu0 %6115 }
0x1520   :  { %8937 = vrsqrt.f32 %v6135_v47  ;;  %v6128_v50 = vmul.f32 0.03125, %v6116_v61 }
0x1522   :  { %v6134_v63 = vadd.f32 1e-06, %v6128_v50  ;;  %v8936_v58 = vpop.eup %8935 }
0x1523   :  { %v6122_v32 = vpop.xlane.xlu0 %6121  ;;  %v6144_v18 = vmul.f32 %v8936_v58, %v11095_v39 }
0x1524   :  { %8939 = vrsqrt.f32 %v6134_v63  ;;  %v6130_v37 = vmul.f32 0.03125, %v6122_v32 }
0x1526   :  { %v6136_v28 = vadd.f32 1e-06, %v6130_v37 }
0x1527   :  { %v6125_v51 = vpop.xlane.xlu1 %6124  ;;  %v6151_v57 = vpop.permute.xlu0 %6150 }
0x1528   :  { %8941 = vrsqrt.f32 %v6136_v28  ;;  %v6131_v4 = vmul.f32 0.03125, %v6125_v51  ;;  %v6154_v2 = vmul.f32 %v6151_v57, %v6145_v42  ;;  %v6153_v53 = vmul.f32 %v6151_v57, %v6144_v18 }
0x152a   :  { %v8938_v15 = vpop.eup %8937  ;;  %v6137_v5 = vadd.f32 1e-06, %v6131_v4 }
0x152b   :  { %v6160_v34 = vpop.permute.xlu1 %6159  ;;  %v6147_v52 = vmul.f32 %v8938_v15, %v11101_v1 }
0x152c   :  { %8943 = vrsqrt.f32 %v6137_v5  ;;  %v6163_v9 = vadd.f32 %v6160_v34, %v6154_v2  ;;  %v6162_v6 = vadd.f32 %v6160_v34, %v6153_v53 }
0x152d   :  { %v6156_v11 = vmul.f32 %v6151_v57, %v6147_v52 }
0x152e   :  { %v8940_v13 = vpop.eup %8939  ;;  %8166 = vmatprep.mubr.msk.f32.mxu0 %vm182_vm0, %v6162_v6 }
0x152f   :  { %8167 = vmatmul.mubr.msk.f32.vlgmr.msra.gmra.mrb[134].mxu0 %vm182_vm0, %v6163_v9  ;;  %v6146_v44 = vmul.f32 %v8940_v13, %v11105_v31  ;;  %v6165_v38 = vadd.f32 %v6160_v34, %v6156_v11 }
0x1531   :  { %v6155_v19 = vmul.f32 %v6151_v57, %v6146_v44 }
0x1532   :  { %v8942_v39 = vpop.eup %8941 }
0x1533   :  { %v6164_v20 = vadd.f32 %v6160_v34, %v6155_v19  ;;  %v6148_v54 = vmul.f32 %v8942_v39, %v11111_v29  ;;  %v6960_v29 = vld [vmem:[%s11279_s4 + $0xb0] sm:$0xff] }
0x1534   :  { %v8464_v14 = vpack.c.bf16 %v6961_v26, %v6960_v29 }
0x1535   :  { %8169 = vmatprep.mubr.msk.f32.mxu0 %vm182_vm0, %v6164_v20  ;;  %v6157_v25 = vmul.f32 %v6151_v57, %v6148_v54 }
0x1536   :  { %v8944_v48 = vpop.eup %8943  ;;  %8170 = vmatmul.mubr.msk.f32.gmra.mrb[136].mxu0 %vm182_vm0, %v6165_v38  ;;  %8465 = vmatprep.subr.bf16.mxu1 %v8464_v14 }
0x1537   :  { %v6166_v1 = vadd.f32 %v6160_v34, %v6157_v25  ;;  %v6149_v43 = vmul.f32 %v8944_v48, %v11116_v16  ;;  %8467 = vmatpush3.bf16.msra.mxu1 %v8464_v14  ;;  %v6962_v16 = vld [vmem:[%s11279_s4 + $0xc0] sm:$0xff]  ;;  %v6318_v14 = vrot.slane %v8982_v60, %v3186_v62 }
0x1538   :  { %v8468_v30 = vpack.c.bf16 %v6963_v7, %v6962_v16 }
0x1539   :  { %8172 = vmatprep.mubr.msk.f32.mxu0 %vm182_vm0, %v6166_v1  ;;  %v6158_v55 = vmul.f32 %v6151_v57, %v6149_v43 }
0x153a   :  { %8469 = vmatprep.subr.bf16.mxu1 %v8468_v30 }
0x153b   :  { %v6167_v31 = vadd.f32 %v6160_v34, %v6158_v55  ;;  %8471 = vmatpush3.bf16.msra.mxu1 %v8468_v30 }
0x153c   :  { %8473 = vmatprep.subr.bf16.mxu1 %v8472_v17 }
0x153d   :  { %8173 = vmatmul.mubr.msk.f32.gmra.mrb[138].mxu0 %vm182_vm0, %v6167_v31 }
0x153f   :  { %8475 = vmatpush3.bf16.msra.mxu1 %v8472_v17 }
0x1540   :  { %8477 = vmatprep.subr.bf16.mxu1 %v8476_v35 }
0x1543   :  { %8479 = vmatpush3.bf16.msra.mxu1 %v8476_v35 }
0x1544   :  { %8481 = vmatprep.subr.bf16.mxu1 %v8480_v40 }
0x1547   :  { %8483 = vmatpush3.bf16.msra.mxu1 %v8480_v40 }
0x1602   :  { %v8168_v0 = vpop.f32.mrb[134].mxu0 }
0x1603   :  { %v6262_v49 = vadd.f32 %v8168_v0, %v6171_v8  ;;  %v6256_v45 = vpop.f32.mrb[135].mxu0 }
0x1604   :  { %v6257_v47 = vadd.f32 %v6256_v45, %v6171_v8 }
0x1605   :  { %v6292_v61 = vmul.f32 0.70710677, %v6262_v49  ;;  %v6286_v34 = vmul.f32 0.5, %v6262_v49 }
0x1606   :  { %v6291_v50 = vmul.f32 0.70710677, %v6257_v47  ;;  %v6285_v5 = vmul.f32 0.5, %v6257_v47 }
0x1607   :  { %8945 = verf.f32 %v6292_v61 }
0x1608   :  { %8947 = verf.f32 %v6291_v50 }
0x1609   :  { %v8171_v63 = vpop.f32.mrb[136].mxu0 }
0x160a   :  { %v6272_v32 = vadd.f32 %v8171_v63, %v6171_v8  ;;  %v6266_v10 = vpop.f32.mrb[137].mxu0 }
0x160b   :  { %v6267_v37 = vadd.f32 %v6266_v10, %v6171_v8 }
0x160c   :  { %v6294_v58 = vmul.f32 0.70710677, %v6272_v32  ;;  %v6288_v20 = vmul.f32 0.5, %v6272_v32 }
0x160d   :  { %v6293_v28 = vmul.f32 0.70710677, %v6267_v37  ;;  %v6287_v19 = vmul.f32 0.5, %v6267_v37 }
0x160e   :  { %8949 = verf.f32 %v6294_v58 }
0x160f   :  { %8951 = verf.f32 %v6293_v28 }
0x1610   :  { %v8174_v51 = vpop.f32.mrb[138].mxu0 }
0x1611   :  { %v8946_v57 = vpop.eup %8945  ;;  %v6282_v42 = vadd.f32 %v8174_v51, %v6171_v8  ;;  %v6276_v23 = vpop.f32.mrb[139].mxu0 }
0x1612   :  { %v8948_v4 = vpop.eup %8947  ;;  %v6304_v18 = vadd.f32 1.0, %v8946_v57  ;;  %v6277_v15 = vadd.f32 %v6276_v23, %v6171_v8 }
0x1613   :  { %v6303_v2 = vadd.f32 1.0, %v8948_v4  ;;  %v6296_v53 = vmul.f32 0.70710677, %v6282_v42  ;;  %v6290_v31 = vmul.f32 0.5, %v6282_v42 }
0x1614   :  { %v6295_v9 = vmul.f32 0.70710677, %v6277_v15  ;;  %v6310_v52 = vmul.f32 %v6304_v18, %v6286_v34  ;;  %v6289_v43 = vmul.f32 0.5, %v6277_v15  ;;  %v6420_v15 = vld [vmem:[%s11282_s7] sm:$0xff] }
0x1615   :  { %8953 = verf.f32 %v6296_v53  ;;  %v6309_v6 = vmul.f32 %v6303_v2, %v6285_v5  ;;  %v6476_v5 = vrot.slane %v6420_v15, %v9219_v22  ;;  %v6416_v2 = vld [vmem:[%s11281_s6] sm:$0xff]  ;;  %v6417_v53 = vld [vmem:[%s11281_s6 + $0x8] sm:$0xff]  ;;  %v6418_v22 = vld [vmem:[%s11281_s6 + $0x10] sm:$0xff] }
0x1616   :  { %8955 = verf.f32 %v6295_v9  ;;  %v8484_v34 = vpack.c.bf16 %v6417_v53, %v6416_v2  ;;  %v8683_v9 = vpack.i.bf16 %v6417_v53, %v6416_v2 }
0x1617   :  { %8207 = vmatprep.mubr.f32.mxu1 %v6309_v6  ;;  %v6419_v6 = vld [vmem:[%s11281_s6 + $0x18] sm:$0xff]  ;;  %s9016_s6 = smov 56  }
0x1618   :  { %v8950_v13 = vpop.eup %8949  ;;  %8208 = vmatmul.mubr.f32.vlgmr.msra.gmra.mrb[136].mxu1 %v6310_v52  ;;  %8485 = vmatprep.subr.bf16.mxu0 %v8484_v34  ;;  %v8488_v52 = vpack.c.bf16 %v6419_v6, %v6418_v22 }
0x1619   :  { %v8952_v44 = vpop.eup %8951  ;;  %v6306_v11 = vadd.f32 1.0, %v8950_v13  ;;  %8487 = vmatpush3.bf16.msra.mxu0 %v8484_v34  ;;  %v8688_v13 = vpack.i.bf16 %v6419_v6, %v6418_v22 }
0x161a   :  { %v6305_v39 = vadd.f32 1.0, %v8952_v44  ;;  %8489 = vmatprep.subr.bf16.mxu0 %v8488_v52 }
0x161b   :  { %v6312_v38 = vmul.f32 %v6306_v11, %v6288_v20 }
0x161c   :  { %v6311_v54 = vmul.f32 %v6305_v39, %v6287_v19 }
0x161d   :  { %8491 = vmatpush3.bf16.msra.mxu0 %v8488_v52 }
0x161e   :  { %8210 = vmatprep.mubr.f32.mxu1 %v6311_v54 }
0x161f   :  { %v8954_v25 = vpop.eup %8953  ;;  %8211 = vmatmul.mubr.f32.gmra.mrb[138].mxu1 %v6312_v38 }
0x1620   :  { %v8956_v48 = vpop.eup %8955  ;;  %v6308_v1 = vadd.f32 1.0, %v8954_v25 }
0x1621   :  { %v6307_v55 = vadd.f32 1.0, %v8956_v48 }
0x1622   :  { %v6314_v26 = vmul.f32 %v6308_v1, %v6290_v31 }
0x1623   :  { %v6313_v29 = vmul.f32 %v6307_v55, %v6289_v43 }
0x1625   :  { %8213 = vmatprep.mubr.f32.mxu1 %v6313_v29 }
0x1626   :  { %8214 = vmatmul.mubr.f32.gmra.mrb[140].mxu1 %v6314_v26 }
0x16eb   :  { %v8209_v16 = vpop.f32.mrb[136].mxu1 }
0x16ec   :  { %v6391_v7 = vadd.f32 %v8209_v16, %v6318_v14  ;;  %v6385_v30 = vpop.f32.mrb[137].mxu1 }
0x16ed   :  { %v6386_v3 = vadd.f32 %v6385_v30, %v6318_v14 }
0x16ee   :  { %v6413_v27 = vadd.f32 %v6391_v7, %v11065_v59 }
0x16ef   :  { %v6412_v17 = vadd.f32 %v6386_v3, %v11070_v56 }
0x16f0   :  { %v6424_v36 = vsel %vm182_vm0, %v6413_v27, 0.0 }
0x16f1   :  { %6425 = vadd.xlane.f32.xlu0 %v6424_v36  ;;  %v6421_v46 = vsel %vm182_vm0, %v6412_v17, 0.0 }
0x16f2   :  { %v8212_v35 = vpop.f32.mrb[138].mxu1  ;;  %6422 = vadd.xlane.f32.xlu1 %v6421_v46 }
0x16f3   :  { %v6400_v33 = vadd.f32 %v8212_v35, %v6318_v14  ;;  %v6395_v24 = vpop.f32.mrb[139].mxu1 }
0x16f5   :  { %v6414_v21 = vadd.f32 %v6400_v33, %v11075_v41 }
0x16f7   :  { %v6427_v62 = vsel %vm182_vm0, %v6414_v21, 0.0 }
0x16f8   :  { %6428 = vadd.xlane.f32.xlu0 %v6427_v62 }
0x16f9   :  { %v8215_v40 = vpop.f32.mrb[140].mxu1 }
0x16fa   :  { %v6404_v60 = vpop.f32.mrb[141].mxu1 }
0x16fb   :  { %v6405_v8 = vadd.f32 %v6404_v60, %v6318_v14 }
0x16fd   :  { %v6415_v59 = vadd.f32 %v6405_v8, %v11082_v12 }
0x16ff   :  { %v6430_v56 = vsel %vm182_vm0, %v6415_v59, 0.0 }
0x1700   :  { %6431 = vadd.xlane.f32.xlu1 %v6430_v56 }
0x177e   :  { %v6426_v0 = vpop.xlane.xlu0 %6425 }
0x177f   :  { %v6434_v49 = vmul.f32 0.03125, %v6426_v0  ;;  %v6423_v45 = vpop.xlane.xlu1 %6422 }
0x1780   :  { %v6433_v47 = vmul.f32 0.03125, %v6423_v45 }
0x1781   :  { %v6438_v61 = vsub.f32 %v6413_v27, %v6434_v49 }
0x1782   :  { %v6437_v50 = vsub.f32 %v6412_v17, %v6433_v47 }
0x1783   :  { %v6442_v63 = vmul.f32 %v6438_v61, %v6438_v61 }
0x1784   :  { %v6441_v32 = vmul.f32 %v6437_v50, %v6437_v50 }
0x1785   :  { %v6429_v41 = vpop.xlane.xlu0 %6428  ;;  %v6448_v10 = vsel %vm182_vm0, %v6442_v63, 0.0 }
0x1786   :  { %v6435_v37 = vmul.f32 0.03125, %v6429_v41  ;;  %6449 = vadd.xlane.f32.xlu1 %v6448_v10  ;;  %v6445_v58 = vsel %vm182_vm0, %v6441_v32, 0.0 }
0x1787   :  { %6446 = vadd.xlane.f32.xlu0 %v6445_v58 }
0x1788   :  { %v6439_v12 = vsub.f32 %v6414_v21, %v6435_v37 }
0x178a   :  { %v6443_v28 = vmul.f32 %v6439_v12, %v6439_v12 }
0x178c   :  { %v6451_v51 = vsel %vm182_vm0, %v6443_v28, 0.0 }
0x178d   :  { %6452 = vadd.xlane.f32.xlu0 %v6451_v51  ;;  %v6432_v57 = vpop.xlane.xlu1 %6431 }
0x178e   :  { %v6436_v42 = vmul.f32 0.03125, %v6432_v57 }
0x1790   :  { %v6440_v23 = vsub.f32 %v6415_v59, %v6436_v42 }
0x1792   :  { %v6444_v4 = vmul.f32 %v6440_v23, %v6440_v23 }
0x1794   :  { %v6454_v18 = vsel %vm182_vm0, %v6444_v4, 0.0 }
0x1795   :  { %6455 = vadd.xlane.f32.xlu1 %v6454_v18 }
0x17a3   :  { %6482 = vrot.lane.b32.xlu0 %v6476_v5, %s9007_s20 }
0x17a6   :  { %6489 = vrot.lane.b32.xlu1 %v6476_v5, %s9014_s27 }
0x17a7   :  { %6609 = vrot.lane.b32.xlu0 %v6476_v5, %s9015_s30 }
0x17aa   :  { %8684 = vrot.lane.b32.xlu1 %v8683_v9, %s9007_s20 }
0x17ae   :  { %8689 = vrot.lane.b32.xlu1 %v8688_v13, %s9007_s20 }
0x1813   :  { %v6450_v44 = vpop.xlane.xlu1 %6449 }
0x1814   :  { %v6458_v11 = vmul.f32 0.03125, %v6450_v44  ;;  %v6447_v19 = vpop.xlane.xlu0 %6446 }
0x1815   :  { %v6457_v39 = vmul.f32 0.03125, %v6447_v19 }
0x1816   :  { %v6462_v20 = vadd.f32 1e-06, %v6458_v11 }
0x1817   :  { %v6461_v54 = vadd.f32 1e-06, %v6457_v39 }
0x1818   :  { %8957 = vrsqrt.f32 %v6462_v20 }
0x1819   :  { %8959 = vrsqrt.f32 %v6461_v54 }
0x181a   :  { %v6453_v38 = vpop.xlane.xlu0 %6452 }
0x181b   :  { %v6459_v25 = vmul.f32 0.03125, %v6453_v38 }
0x181d   :  { %v6463_v48 = vadd.f32 1e-06, %v6459_v25 }
0x181e   :  { %v6483_v16 = vpop.permute.xlu0 %6482 }
0x181f   :  { %8961 = vrsqrt.f32 %v6463_v48 }
0x1822   :  { %v8958_v1 = vpop.eup %8957  ;;  %v6456_v43 = vpop.xlane.xlu1 %6455 }
0x1823   :  { %v8960_v55 = vpop.eup %8959  ;;  %v6460_v31 = vmul.f32 0.03125, %v6456_v43  ;;  %v6470_v29 = vmul.f32 %v8958_v1, %v6438_v61  ;;  %v6610_v42 = vpop.permute.xlu0 %6609 }
0x1824   :  { %v6469_v26 = vmul.f32 %v8960_v55, %v6437_v50 }
0x1825   :  { %v6464_v14 = vadd.f32 1e-06, %v6460_v31  ;;  %v6478_v7 = vmul.f32 %v6476_v5, %v6470_v29 }
0x1826   :  { %v6477_v30 = vmul.f32 %v6476_v5, %v6469_v26  ;;  %v6490_v40 = vpop.permute.xlu1 %6489 }
0x1827   :  { %8963 = vrsqrt.f32 %v6464_v14  ;;  %v6486_v17 = vadd.f32 %v6483_v16, %v6478_v7 }
0x1828   :  { %v6485_v3 = vadd.f32 %v6483_v16, %v6477_v30 }
0x1829   :  { %v8962_v27 = vpop.eup %8961 }
0x182a   :  { %v6471_v36 = vmul.f32 %v8962_v27, %v6439_v12  ;;  %8224 = vmatprep.mubr.msk.f32.mxu0 %vm182_vm0, %v6485_v3  ;;  %v8685_v60 = vpop.permute.xlu1 %8684 }
0x182b   :  { %8225 = vmatmul.mubr.msk.f32.vlgmr.msra.gmra.mrb[140].mxu0 %vm182_vm0, %v6486_v17  ;;  %v8687_v8 = vunpack.i.h.bf16 %v8685_v60  ;;  %v8686_v59 = vunpack.i.l.bf16 %v8685_v60 }
0x182c   :  { %v6479_v46 = vmul.f32 %v6476_v5, %v6471_v36 }
0x182d   :  { %v8492_v56 = vpack.c.bf16 %v8687_v8, %v8686_v59 }
0x182e   :  { %v6487_v35 = vadd.f32 %v6483_v16, %v6479_v46  ;;  %v8690_v0 = vpop.permute.xlu1 %8689 }
0x182f   :  { %v8692_v49 = vunpack.i.h.bf16 %v8690_v0  ;;  %v8691_v45 = vunpack.i.l.bf16 %v8690_v0  ;;  %8493 = vmatprep.subr.bf16.mxu0 %v8492_v56 }
0x1830   :  { %8227 = vmatprep.mubr.msk.f32.mxu0 %vm182_vm0, %v6487_v35  ;;  %8495 = vmatpush3.bf16.msra.mxu0 %v8492_v56 }
0x1831   :  { %v8964_v33 = vpop.eup %8963  ;;  %v8496_v47 = vpack.c.bf16 %v8692_v49, %v8691_v45 }
0x1832   :  { %v6472_v24 = vmul.f32 %v8964_v33, %v6440_v23 }
0x1833   :  { %8497 = vmatprep.subr.bf16.mxu0 %v8496_v47 }
0x1834   :  { %v6480_v21 = vmul.f32 %v6476_v5, %v6472_v24  ;;  %8499 = vmatpush3.bf16.msra.mxu0 %v8496_v47 }
0x1836   :  { %v6488_v62 = vadd.f32 %v6483_v16, %v6480_v21 }
0x1838   :  { %8228 = vmatmul.mubr.msk.f32.gmra.mrb[142].mxu0 %vm182_vm0, %v6488_v62 }
0x18fe   :  { %v8226_v61 = vpop.f32.mrb[140].mxu0 }
0x18ff   :  { %v6576_v50 = vadd.f32 %v8226_v61, %v6490_v40  ;;  %v6570_v63 = vpop.f32.mrb[141].mxu0 }
0x1900   :  { %v6571_v32 = vadd.f32 %v6570_v63, %v6490_v40 }
0x1902   :  { %8965 = vtanh.f32 %v6571_v32 }
0x1903   :  { %8967 = vtanh.f32 %v6576_v50 }
0x190b   :  { %v8229_v41 = vpop.f32.mrb[142].mxu0 }
0x190c   :  { %v8966_v10 = vpop.eup %8965  ;;  %v6586_v37 = vadd.f32 %v8229_v41, %v6490_v40  ;;  %v6580_v58 = vpop.f32.mrb[143].mxu0 }
0x190d   :  { %v8968_v12 = vpop.eup %8967  ;;  %v6581_v28 = vadd.f32 %v6580_v58, %v6490_v40  ;;  %8238 = vmatprep.mubr.msk.f32.mxu0 %vm182_vm0, %v8966_v10 }
0x190e   :  { %8239 = vmatmul.mubr.msk.f32.vlgmr.msra.gmra.mrb[144].mxu0 %vm182_vm0, %v8968_v12 }
0x190f   :  { %8969 = vtanh.f32 %v6581_v28 }
0x1910   :  { %8971 = vtanh.f32 %v6586_v37 }
0x1919   :  { %v8970_v51 = vpop.eup %8969 }
0x191a   :  { %v8972_v57 = vpop.eup %8971  ;;  %8241 = vmatprep.mubr.msk.f32.mxu0 %vm182_vm0, %v8970_v51 }
0x191b   :  { %8242 = vmatmul.mubr.msk.f32.gmra.mrb[146].mxu0 %vm182_vm0, %v8972_v57  ;;  %vm6736_vm0 = vcmask 258243  }
0x19e1   :  { %v8240_v23 = vpop.f32.mrb[144].mxu0 }
0x19e2   :  { %v6690_v4 = vpop.f32.mrb[145].mxu0  ;;  %v6696_v34 = vadd.f32 %v8240_v23, %v6610_v42 }
0x19e3   :  { %v6691_v18 = vadd.f32 %v6690_v4, %v6610_v42 }
0x19e5   :  { %6759 = vrot.lane.b32.xlu1 %v6691_v18, %s9016_s6 }
0x19ee   :  { %v8243_v15 = vpop.f32.mrb[146].mxu0 }
0x19ef   :  { %v6706_v5 = vadd.f32 %v8243_v15, %v6610_v42  ;;  %v6700_v2 = vpop.f32.mrb[147].mxu0 }
0x19f0   :  { %v6701_v53 = vadd.f32 %v6700_v2, %v6610_v42 }
0x19f1   :  { %v6771_v9 = vrot.slane %v6706_v5, 7 }
0x19f2   :  { %v6711_v22 = vrot.slane %v6701_v53, 7 }
0x19f3   :  { %v6772_v6 = vsel %vm6712_vm6, %v6771_v9, %v6696_v34  ;;  %v6778_v52 = vsel %vm6717_vm7, %v6771_v9, %v6696_v34  ;;  %v6784_v13 = vsel %vm6724_vm8, %v6771_v9, %v6696_v34  ;;  %v6790_v44 = vsel %vm6731_vm9, %v6771_v9, %v6696_v34 }
0x19f4   :  { %6761 = vrot.lane.b32.xlu0 %v6711_v22, %s9016_s6  ;;  %6773 = vrot.lane.b32.xlu1 %v6772_v6, %s9014_s27  ;;  %v6725_v11 = vsel %vm6724_vm8, %v6711_v22, %v6691_v18  ;;  %v6718_v19 = vsel %vm6717_vm7, %v6711_v22, %v6691_v18  ;;  %v6739_v39 = vsel %vm6738_vm10, %v6711_v22, %v6691_v18  ;;  %s9017_s27 = smov 72   ;;  %vm6782_vm7 = vcmask 649793  }
0x19f5   :  { %v6732_v20 = vsel %vm6731_vm9, %v6711_v22, %v6691_v18  ;;  %v6753_v54 = vsel %vm6752_vm11, %v6711_v22, %v6691_v18  ;;  %v6746_v38 = vsel %vm6745_vm12, %v6711_v22, %v6691_v18  ;;  %v6796_v25 = vsel %vm6738_vm10, %v6771_v9, %v6696_v34 }
0x19f6   :  { %v6802_v48 = vsel %vm6745_vm12, %v6771_v9, %v6696_v34  ;;  %v6808_v1 = vsel %vm6752_vm11, %v6771_v9, %v6696_v34  ;;  %v6713_v43 = vsel %vm6712_vm6, %v6711_v22, %v6691_v18  ;;  %vm6776_vm6 = vcmask 583168  }
0x19f7   :  { %6716 = vst.msk [vmem:[#allocation2] sm:$0x3] %vm6715_vm13, %v6713_v43  ;;  %vm6788_vm8 = vcmask 716418   ;;  %vm6794_vm9 = vcmask 783043   ;;  %vm6800_vm10 = vcmask 849668   ;;  %vm6806_vm11 = vcmask 916293  }
0x19f8   :  { %6779 = vrot.lane.b32.xlu0 %v6778_v52, %s9017_s27  ;;  %6785 = vrot.lane.b32.xlu1 %v6784_v13, %s9018_s29  ;;  %vm6812_vm12 = vcmask 982918   ;;  %vm6820_vm13 = vcmask 1048519  }
0x19fc   :  { %6726 = vrot.lane.b32.xlu0 %v6725_v11, %s9019_s9  ;;  %6719 = vrot.lane.b32.xlu1 %v6718_v19, %s9020_s10 }
0x1a00   :  { %6740 = vrot.lane.b32.xlu0 %v6739_v39, %s9015_s30  ;;  %6733 = vrot.lane.b32.xlu1 %v6732_v20, %s9021_s0 }
0x1a04   :  { %6754 = vrot.lane.b32.xlu0 %v6753_v54, %s9022_s11  ;;  %6747 = vrot.lane.b32.xlu1 %v6746_v38, %s9023_s3 }
0x1a08   :  { %6791 = vrot.lane.b32.xlu0 %v6790_v44, %s9024_s12  ;;  %6797 = vrot.lane.b32.xlu1 %v6796_v25, %s9007_s20  ;;  %s9025_s20 = smov [#allocation2]  }
0x1a0c   :  { %6803 = vrot.lane.b32.xlu0 %v6802_v48, %s9010_s26  ;;  %6809 = vrot.lane.b32.xlu1 %v6808_v1, %s9009_s25 }
0x1a10   :  { %6814 = vrot.lane.b32.xlu0 %v6696_v34, %s9008_s24  ;;  %6816 = vrot.lane.b32.xlu1 %v6771_v9, %s9008_s24  ;;  %s6830_s24 = sshll.u32 %s9025_s20, 4  ;;  %s6831_s24 = int_to_ptr.vmem [resolvable:$true] %s6830_s24 }
0x1a11   :  { %s8983_s25 = scalar_lea.vmem %s6831_s24, 32  ;;  %p8988_p1 = scmp.lt.s32.totalorder %s6831_s24, %s6831_s24 }
0x1a12   :  { %p8984_p0 = scmp.ne.s32.totalorder %s6831_s24, %s8983_s25  ;;  %p8989_p2 = scmp.lt.s32.totalorder %s8983_s25, %s8983_s25 }
0x1a14   :  { %p8990_p3 = por %p8989_p2, %p8988_p1 }
0x1a16   :  { %p8991_p4 = pnand %p8990_p3, %p8984_p0 }
0x1a57   :  { %v6760_v55 = vpop.permute.xlu1 %6759 }
0x1a66   :  { %v6762_v31 = vpop.permute.xlu0 %6761  ;;  %v6774_v29 = vpop.permute.xlu1 %6773 }
0x1a6a   :  { %v6780_v26 = vpop.permute.xlu0 %6779  ;;  %v6786_v14 = vpop.permute.xlu1 %6785 }
0x1a6e   :  { %v6727_v16 = vpop.permute.xlu0 %6726  ;;  %v6720_v7 = vpop.permute.xlu1 %6719 }
0x1a6f   :  { %6723 = vst.msk [vmem:[#allocation2 - $0x1] sm:$0x6] %vm6722_vm14, %v6720_v7  ;;  %vm6822_vm14 = vcmask 1041344  }
0x1a70   :  { %6730 = vst.msk [vmem:[#allocation2 - $0x2] sm:$0xc] %vm6729_vm15, %v6727_v16 }
0x1a72   :  { %v6741_v30 = vpop.permute.xlu0 %6740  ;;  %v6734_v3 = vpop.permute.xlu1 %6733 }
0x1a73   :  { %6737 = vst.msk [vmem:[#allocation2 - $0x3] sm:$0x18] %vm6736_vm0, %v6734_v3 }
0x1a74   :  { %6744 = vst.msk [vmem:[#allocation2 - $0x4] sm:$0x30] %vm6743_vm1, %v6741_v30 }
0x1a76   :  { %v6755_v27 = vpop.permute.xlu0 %6754  ;;  %v6748_v17 = vpop.permute.xlu1 %6747 }
0x1a77   :  { %6751 = vst.msk [vmem:[#allocation2 - $0x5] sm:$0x60] %vm6750_vm2, %v6748_v17 }
0x1a78   :  { %6758 = vst.msk [vmem:[#allocation2 - $0x6] sm:$0xc0] %vm6757_vm3, %v6755_v27 }
0x1a79   :  { %6766 = vst.msk [vmem:[#allocation2 - $0x7] sm:$0x80] %vm6765_vm4, %v6760_v55 }
0x1a7a   :  { %6768 = vst.msk [vmem:[#allocation2 + $0x1] sm:$0x1] %vm6767_vm5, %v6762_v31  ;;  %v6792_v36 = vpop.permute.xlu0 %6791  ;;  %v6798_v46 = vpop.permute.xlu1 %6797 }
0x1a7b   :  { %6777 = vst.msk [vmem:[#allocation2] sm:$0x3] %vm6776_vm6, %v6774_v29 }
0x1a7c   :  { %6783 = vst.msk [vmem:[#allocation2 - $0x1] sm:$0x6] %vm6782_vm7, %v6780_v26 }
0x1a7d   :  { %6789 = vst.msk [vmem:[#allocation2 - $0x2] sm:$0xc] %vm6788_vm8, %v6786_v14 }
0x1a7e   :  { %6795 = vst.msk [vmem:[#allocation2 - $0x3] sm:$0x18] %vm6794_vm9, %v6792_v36  ;;  %v6804_v35 = vpop.permute.xlu0 %6803  ;;  %v6810_v33 = vpop.permute.xlu1 %6809 }
0x1a7f   :  { %6801 = vst.msk [vmem:[#allocation2 - $0x4] sm:$0x30] %vm6800_vm10, %v6798_v46 }
0x1a80   :  { %6807 = vst.msk [vmem:[#allocation2 - $0x5] sm:$0x60] %vm6806_vm11, %v6804_v35 }
0x1a81   :  { %6813 = vst.msk [vmem:[#allocation2 - $0x6] sm:$0xc0] %vm6812_vm12, %v6810_v33 }
0x1a82   :  { %v6815_v24 = vpop.permute.xlu0 %6814  ;;  %v6817_v21 = vpop.permute.xlu1 %6816 }
0x1a83   :  { %6821 = vst.msk [vmem:[#allocation2 - $0x7] sm:$0x80] %vm6820_vm13, %v6815_v24 }
0x1a84   :  { %6823 = vst.msk [vmem:[#allocation2 + $0x1] sm:$0x1] %vm6822_vm14, %v6817_v21 }
0x1a85   :  { %8994 = shalt.err (!%p8991_p4)
}
0x1a86   :  { %s8995_s13 = scalar_lea.hbm %s11283_s8, 32 }
0x1a87   :  { %p8996_p5 = scmp.ne.s32.totalorder %s11283_s8, %s8995_s13  ;;  %p8999_p6 = scmp.lt.u32.totalorder %s8995_s13, %s11283_s8 }
0x1a89   :  { %p9001_p7 = pnand %p8999_p6, %p8996_p5 }
0x1a8b   :  { %9004 = shalt.err (!%p9001_p7)
}
0x1a8c   :  { %6833 = dma.vmem_to_hbm [thread:$0]  %s6831_s24, 32, %s11283_s8, [#allocation3]  }
0x1a8d   :  { %9005 = dma.done.wait [#allocation3], 32  }
0x1a8e   :  { %9006 = vsyncadd [#allocation3], 4294967264 }
0x1a8f   :  { %6837 = vsyncpa [#allocation3], 1 }

</bundles_post_ra>
